<compile_context>
chip_gen: v7x
topology: tpu7x:2x2x1
jax: 0.10.0
libtpu: 0.0.40
codegen_flags: <defaults>
</compile_context>

<pallas_src>
import functools

import numpy as np
import jax
import jax.numpy as jnp
from jax.experimental import pallas as pl
from jax.experimental.pallas import tpu as pltpu

SPLINE_ORDER = 3   # KANLinear default
LANE = 128


def _round_up(n, m):
    return -(-n // m) * m


def _pad_axis(a, axis, size):
    pad = size - a.shape[axis]
    if pad <= 0:
        return a
    widths = [(0, 0)] * a.ndim
    widths[axis] = (0, pad)
    return jnp.pad(a, widths)


# ------------------------------ fused kernel ------------------------------

def _dnn_kan_kernel(depth, spline_order, knots, inv_kh, h, P,
                    x_ref,
                    bw_in_ref, sw_in_ref,
                    bw_hid_ref, sw_hid_ref,
                    bw_out_ref, sw_out_ref,
                    out_ref):
    """Fused forward: input KAN -> [tanh, hidden KAN] * depth -> output KAN.

    knots / inv_kh / h are compile-time Python constants (uniform grid), so no
    knot tensors or broadcast slabs ever exist inside the kernel.
    """
    n0 = len(knots) - 1   # number of order-0 intervals (NG - 1)

    def kan_layer(x, bw_ref, sw_ref, pre_tanh):
        # x: (TB, P) f32, features (padded to a multiple of 128) on the lanes.
        if pre_tanh:                                           # fused nn.Tanh
            x = jnp.tanh(x)

        # --- base path: SiLU(x) @ W_base, bf16 operands, f32 accumulation ---
        acc = jnp.dot((x * jax.nn.sigmoid(x)).astype(jnp.bfloat16),
                      bw_ref[...], preferred_element_type=jnp.float32)

        # --- spline path: Cox-de Boor on per-knot lane-dense (TB, P) chunks ---
        # diff_j = x - g[j]; uniform grid => every denominator is k*h and
        # right = (k+1)/k - left (compile-time constants).
        diffs = [x - knots[j] for j in range(n0)]
        bases = [((d >= 0.0) & (d < h)).astype(jnp.float32) for d in diffs]
        for k in range(1, spline_order + 1):
            inv = inv_kh[k - 1]
            c = (k + 1.0) / k
            new_bases = []
            for j in range(len(bases) - 1):
                left = diffs[j] * inv
                new_bases.append(left * bases[j] + (c - left) * bases[j + 1])
            bases = new_bases
        # (TB, NB*P) flat, lane-major: lane index = knot_group * P + feature.
        bflat = jnp.concatenate([b.astype(jnp.bfloat16) for b in bases], axis=1)

        # --- the whole spline contraction as ONE full-K MXU matmul ---
        acc = acc + jnp.dot(bflat, sw_ref[...],
                            preferred_element_type=jnp.float32)
        return acc

    y = kan_layer(x_ref[...], bw_in_ref, sw_in_ref, False)      # self.input
    for _ in range(depth):                                       # [Tanh, hidden]*depth
        y = kan_layer(y, bw_hid_ref, sw_hid_ref, True)
    y = kan_layer(y, bw_out_ref, sw_out_ref, False)              # self.output
    out_ref[...] = y.astype(out_ref.dtype)


def dnn_kanlayer_pallas(x, knots, padded_params, *, depth, grid_size,
                        spline_order=SPLINE_ORDER, out_features=None,
                        batch_tile=None):
    """x: (B, in_f) f32.  padded_params: (bw, sw_flat) per layer, already
    padded / flattened / bf16 via pack_kan_params.  knots: uniform grid values
    (python floats, shared by all layers)."""
    (bw_in, sw_in), (bw_hid, sw_hid), (bw_out, sw_out) = padded_params
    B = x.shape[0]
    P = bw_in.shape[0]                     # common padded feature width
    O = bw_out.shape[1]                    # padded output width
    NB = grid_size + spline_order
    assert sw_in.shape[0] == NB * P and sw_hid.shape[0] == NB * P
    assert sw_out.shape[0] == NB * P

    # pad activations: features -> lane-dense P, batch -> multiple of the tile
    x_p = _pad_axis(x.astype(jnp.float32), 1, P)
    B8 = _round_up(B, 8)
    if batch_tile is None:
        # >= 2 grid steps when the batch allows it (v7x: 2 TensorCores shard
        # the "parallel" axis); cap at 256 (v6e sweet spot; sweep 128 on v5e).
        batch_tile = min(256, max(8, _round_up(pl.cdiv(B8, 2), 8)))
    TB = batch_tile
    B_pad = _round_up(B8, TB)
    x_p = _pad_axis(x_p, 0, B_pad)

    h = 2.0 / grid_size                                          # grid_range = [-1, 1]
    inv_kh = tuple(1.0 / (k * h) for k in range(1, spline_order + 1))
    kernel = functools.partial(
        _dnn_kan_kernel, depth, spline_order,
        tuple(float(v) for v in knots), inv_kh, h, P)

    # All weights use constant index maps -> DMA'd once, VMEM-resident across
    # the whole batch grid (~0.9 MB in bf16 at these sizes).  If width is ever
    # scaled past ~384-512, single-buffer / stream sw_* manually instead.
    out = pl.pallas_call(
        kernel,
        out_shape=jax.ShapeDtypeStruct((B_pad, O), jnp.float32),
        grid=(B_pad // TB,),
        in_specs=[
            pl.BlockSpec((TB, P), lambda i: (i, 0)),             # x tile
            pl.BlockSpec((P, P), lambda i: (0, 0)),              # input base W
            pl.BlockSpec((NB * P, P), lambda i: (0, 0)),         # input spline W (flat)
            pl.BlockSpec((P, P), lambda i: (0, 0)),              # hidden base W
            pl.BlockSpec((NB * P, P), lambda i: (0, 0)),         # hidden spline W (flat)
            pl.BlockSpec((P, O), lambda i: (0, 0)),              # output base W
            pl.BlockSpec((NB * P, O), lambda i: (0, 0)),         # output spline W (flat)
        ],
        out_specs=pl.BlockSpec((TB, O), lambda i: (i, 0)),
        compiler_params=pltpu.CompilerParams(
            dimension_semantics=("parallel",),
            vmem_limit_bytes=32 * 1024 * 1024),
    )(x_p, bw_in, sw_in, bw_hid, sw_hid, bw_out, sw_out)

    if out_features is None:
        out_features = O
    return out[:B, :out_features]


# ---------------- parameter setup (plain JAX glue) ----------------

def init_kan_params(key, in_f, out_f, grid_size, spline_order=SPLINE_ORDER):
    """Deterministic synthetic init matching KANLinear parameter shapes."""
    h = 2.0 / grid_size  # grid_range = [-1, 1]
    grid_knots = (jnp.arange(-spline_order, grid_size + spline_order + 1,
                             dtype=jnp.float32) * h - 1.0)       # (NG,)
    k1, k2, k3 = jax.random.split(key, 3)
    bound = (6.0 / in_f) ** 0.5
    base_w = jax.random.uniform(k1, (out_f, in_f), jnp.float32, -bound, bound)
    spline_w = jax.random.uniform(k2, (out_f, in_f, grid_size + spline_order),
                                  jnp.float32, -0.1, 0.1)
    spline_scaler = jax.random.uniform(k3, (out_f, in_f), jnp.float32, -bound, bound)
    scaled = spline_w * spline_scaler[..., None]                 # (OUT, IN, NB)
    return grid_knots, base_w, scaled


def pack_kan_params(base_w, scaled_spline_w, in_pad, out_pad):
    """Transpose + zero-pad + flatten a layer's weights into the fused layout.

    base_w: (OUT, IN)          -> (IN_pad, OUT_pad)       bf16
    scaled_spline_w: (OUT, IN, NB) -> (NB*IN_pad, OUT_pad) bf16,
        row index = knot * IN_pad + feature (matches the kernel's bflat lanes).
    """
    bw = _pad_axis(_pad_axis(base_w.T, 0, in_pad), 1, out_pad)   # (IN_p, OUT_p)
    sw = jnp.transpose(scaled_spline_w, (2, 1, 0))               # (NB, IN, OUT)
    sw = _pad_axis(_pad_axis(sw, 1, in_pad), 2, out_pad)         # (NB, IN_p, OUT_p)
    sw = sw.reshape(sw.shape[0] * in_pad, out_pad)               # (NB*IN_p, OUT_p)
    return bw.astype(jnp.bfloat16), sw.astype(jnp.bfloat16)


# ---------------- pure-JAX reference for a sanity check ----------------

def _kan_ref(x, grid_knots, base_w, scaled_spline_w, pre_tanh,
             spline_order=SPLINE_ORDER):
    if pre_tanh:
        x = jnp.tanh(x)
    g = grid_knots
    base = (x * jax.nn.sigmoid(x)) @ base_w.T
    xe = x[:, :, None]
    bases = ((xe >= g[:-1]) & (xe < g[1:])).astype(jnp.float32)
    for k in range(1, spline_order + 1):
        bases = ((xe - g[:-(k + 1)]) / (g[k:-1] - g[:-(k + 1)]) * bases[..., :-1]
                 + (g[k + 1:] - xe) / (g[k + 1:] - g[1:-k]) * bases[..., 1:])
    spline = jnp.einsum('bin,oin->bo', bases, scaled_spline_w)
    return base + spline


def dnn_kanlayer_ref(x, raw_params, depth):
    (g_i, bw_i, sw_i), (g_h, bw_h, sw_h), (g_o, bw_o, sw_o) = raw_params
    y = _kan_ref(x, g_i, bw_i, sw_i, False)
    for _ in range(depth):
        y = _kan_ref(y, g_h, bw_h, sw_h, True)
    y = _kan_ref(y, g_o, bw_o, sw_o, False)
    return y


if __name__ == "__main__":
    # DNN_kanlayer(inputsize=4, width=32, depth=2, outputsize=2,
    #              params={'Tanh': nn.Tanh()}, grid=5, activation='Tanh')
    inputsize, width, depth, outputsize, grid_size = 4, 32, 2, 2, 5
    batch = 8

    key = jax.random.PRNGKey(0)
    kx, kin, khid, kout = jax.random.split(key, 4)
    x = jax.random.uniform(kx, (batch, inputsize), jnp.float32, -1.0, 1.0)

    raw_in = init_kan_params(kin, inputsize, width, grid_size)     # self.input
    raw_hid = init_kan_params(khid, width, width, grid_size)       # self.hidden (shared)
    raw_out = init_kan_params(kout, width, outputsize, grid_size)  # self.output

    # One common padded feature width so every layer shares the same 128-lane
    # knot-group stride inside the kernel.
    P = _round_up(max(inputsize, width), LANE)
    O = _round_up(outputsize, LANE)
    padded_params = (
        pack_kan_params(raw_in[1], raw_in[2], P, P),
        pack_kan_params(raw_hid[1], raw_hid[2], P, P),
        pack_kan_params(raw_out[1], raw_out[2], P, O),
    )
    knots = tuple(float(v) for v in np.asarray(raw_in[0]))   # uniform, shared grid

    y = dnn_kanlayer_pallas(x, knots, padded_params, depth=depth,
                            grid_size=grid_size, out_features=outputsize)
    y = jax.block_until_ready(y)

    y_ref = dnn_kanlayer_ref(x, (raw_in, raw_hid, raw_out), depth)
    assert y.shape == (batch, outputsize)
    # bf16 MXU operands (f32 accumulation) vs. the pure-f32 reference across a
    # 4-layer fused stack -> looser tolerance than the old all-f32 kernel.
    assert jnp.allclose(y, y_ref, atol=5e-2, rtol=5e-2), (y, y_ref)

    print("KERNEL_OK")
</pallas_src>

<mosaic_0001>
module attributes {stable_mosaic.version = 11 : i64} {
  func.func @_dnn_kan_kernel(%arg0: i32, %arg1: memref<8x128xf32, #tpu.memory_space<vmem>>, %arg2: memref<128x128xbf16, #tpu.memory_space<vmem>>, %arg3: memref<1024x128xbf16, #tpu.memory_space<vmem>>, %arg4: memref<128x128xbf16, #tpu.memory_space<vmem>>, %arg5: memref<1024x128xbf16, #tpu.memory_space<vmem>>, %arg6: memref<128x128xbf16, #tpu.memory_space<vmem>>, %arg7: memref<1024x128xbf16, #tpu.memory_space<vmem>>, %arg8: memref<8x128xf32, #tpu.memory_space<vmem>>) attributes {dimension_semantics = [#tpu.dimension_semantics<parallel>], iteration_bounds = array<i64: 1>, scalar_prefetch = 0 : i64, scratch_operands = 0 : i64, tpu.core_type = #tpu.core_type<tc>, window_params = [{transform_indices = @transform_0, window_bounds = array<i64: 8, 128>}, {pipeline_mode = #tpu.pipeline_mode<synchronous>, transform_indices = @transform_1, window_bounds = array<i64: 128, 128>}, {pipeline_mode = #tpu.pipeline_mode<synchronous>, transform_indices = @transform_2, window_bounds = array<i64: 1024, 128>}, {pipeline_mode = #tpu.pipeline_mode<synchronous>, transform_indices = @transform_3, window_bounds = array<i64: 128, 128>}, {pipeline_mode = #tpu.pipeline_mode<synchronous>, transform_indices = @transform_4, window_bounds = array<i64: 1024, 128>}, {pipeline_mode = #tpu.pipeline_mode<synchronous>, transform_indices = @transform_5, window_bounds = array<i64: 128, 128>}, {pipeline_mode = #tpu.pipeline_mode<synchronous>, transform_indices = @transform_6, window_bounds = array<i64: 1024, 128>}, {transform_indices = @transform_7, window_bounds = array<i64: 8, 128>}]} {
    %c0 = arith.constant 0 : index
    %c0_0 = arith.constant 0 : index
    %0 = vector.load %arg1[%c0, %c0_0] : memref<8x128xf32, #tpu.memory_space<vmem>>, vector<8x128xf32>
    %1 = arith.negf %0 : vector<8x128xf32>
    %2 = math.exp %1 : vector<8x128xf32>
    %cst = arith.constant 1.000000e+00 : f32
    %3 = vector.broadcast %cst : f32 to vector<8x128xf32>
    %4 = arith.addf %3, %2 : vector<8x128xf32>
    %5 = arith.divf %3, %4 : vector<8x128xf32>
    %6 = arith.mulf %0, %5 : vector<8x128xf32>
    %7 = arith.truncf %6 : vector<8x128xf32> to vector<8x128xbf16>
    %c0_1 = arith.constant 0 : index
    %c0_2 = arith.constant 0 : index
    %8 = vector.load %arg2[%c0_1, %c0_2] : memref<128x128xbf16, #tpu.memory_space<vmem>>, vector<128x128xbf16>
    %cst_3 = arith.constant dense<0.000000e+00> : vector<8x128xf32>
    %9 = tpu.matmul %7, %8, %cst_3 {dimension_numbers = #tpu.dot_dimension_numbers<[1], [0], [0], [1], [0, 0, 1, 1], [], []>} : vector<8x128xbf16>, vector<128x128xbf16>, vector<8x128xf32> -> vector<8x128xf32>
    %cst_4 = arith.constant -2.200000e+00 : f32
    %10 = vector.broadcast %cst_4 : f32 to vector<8x128xf32>
    %11 = arith.subf %0, %10 : vector<8x128xf32>
    %cst_5 = arith.constant -1.800000e+00 : f32
    %12 = vector.broadcast %cst_5 : f32 to vector<8x128xf32>
    %13 = arith.subf %0, %12 : vector<8x128xf32>
    %cst_6 = arith.constant -1.400000e+00 : f32
    %14 = vector.broadcast %cst_6 : f32 to vector<8x128xf32>
    %15 = arith.subf %0, %14 : vector<8x128xf32>
    %cst_7 = arith.constant -1.000000e+00 : f32
    %16 = vector.broadcast %cst_7 : f32 to vector<8x128xf32>
    %17 = arith.subf %0, %16 : vector<8x128xf32>
    %cst_8 = arith.constant -6.000000e-01 : f32
    %18 = vector.broadcast %cst_8 : f32 to vector<8x128xf32>
    %19 = arith.subf %0, %18 : vector<8x128xf32>
    %cst_9 = arith.constant -0.199999988 : f32
    %20 = vector.broadcast %cst_9 : f32 to vector<8x128xf32>
    %21 = arith.subf %0, %20 : vector<8x128xf32>
    %cst_10 = arith.constant 0.200000048 : f32
    %22 = vector.broadcast %cst_10 : f32 to vector<8x128xf32>
    %23 = arith.subf %0, %22 : vector<8x128xf32>
    %cst_11 = arith.constant 6.000000e-01 : f32
    %24 = vector.broadcast %cst_11 : f32 to vector<8x128xf32>
    %25 = arith.subf %0, %24 : vector<8x128xf32>
    %cst_12 = arith.constant 1.000000e+00 : f32
    %26 = vector.broadcast %cst_12 : f32 to vector<8x128xf32>
    %27 = arith.subf %0, %26 : vector<8x128xf32>
    %cst_13 = arith.constant 1.4000001 : f32
    %28 = vector.broadcast %cst_13 : f32 to vector<8x128xf32>
    %29 = arith.subf %0, %28 : vector<8x128xf32>
    %cst_14 = arith.constant 1.800000e+00 : f32
    %30 = vector.broadcast %cst_14 : f32 to vector<8x128xf32>
    %31 = arith.subf %0, %30 : vector<8x128xf32>
    %cst_15 = arith.constant 0.000000e+00 : f32
    %32 = vector.broadcast %cst_15 : f32 to vector<8x128xf32>
    %33 = arith.cmpf oge, %11, %32 : vector<8x128xf32>
    %cst_16 = arith.constant 4.000000e-01 : f32
    %34 = vector.broadcast %cst_16 : f32 to vector<8x128xf32>
    %35 = arith.cmpf olt, %11, %34 : vector<8x128xf32>
    %36 = arith.andi %33, %35 : vector<8x128xi1>
    %37 = arith.extui %36 : vector<8x128xi1> to vector<8x128xi32>
    %38 = arith.sitofp %37 : vector<8x128xi32> to vector<8x128xf32>
    %cst_17 = arith.constant 0.000000e+00 : f32
    %39 = vector.broadcast %cst_17 : f32 to vector<8x128xf32>
    %40 = arith.cmpf oge, %13, %39 : vector<8x128xf32>
    %cst_18 = arith.constant 4.000000e-01 : f32
    %41 = vector.broadcast %cst_18 : f32 to vector<8x128xf32>
    %42 = arith.cmpf olt, %13, %41 : vector<8x128xf32>
    %43 = arith.andi %40, %42 : vector<8x128xi1>
    %44 = arith.extui %43 : vector<8x128xi1> to vector<8x128xi32>
    %45 = arith.sitofp %44 : vector<8x128xi32> to vector<8x128xf32>
    %cst_19 = arith.constant 0.000000e+00 : f32
    %46 = vector.broadcast %cst_19 : f32 to vector<8x128xf32>
    %47 = arith.cmpf oge, %15, %46 : vector<8x128xf32>
    %cst_20 = arith.constant 4.000000e-01 : f32
    %48 = vector.broadcast %cst_20 : f32 to vector<8x128xf32>
    %49 = arith.cmpf olt, %15, %48 : vector<8x128xf32>
    %50 = arith.andi %47, %49 : vector<8x128xi1>
    %51 = arith.extui %50 : vector<8x128xi1> to vector<8x128xi32>
    %52 = arith.sitofp %51 : vector<8x128xi32> to vector<8x128xf32>
    %cst_21 = arith.constant 0.000000e+00 : f32
    %53 = vector.broadcast %cst_21 : f32 to vector<8x128xf32>
    %54 = arith.cmpf oge, %17, %53 : vector<8x128xf32>
    %cst_22 = arith.constant 4.000000e-01 : f32
    %55 = vector.broadcast %cst_22 : f32 to vector<8x128xf32>
    %56 = arith.cmpf olt, %17, %55 : vector<8x128xf32>
    %57 = arith.andi %54, %56 : vector<8x128xi1>
    %58 = arith.extui %57 : vector<8x128xi1> to vector<8x128xi32>
    %59 = arith.sitofp %58 : vector<8x128xi32> to vector<8x128xf32>
    %cst_23 = arith.constant 0.000000e+00 : f32
    %60 = vector.broadcast %cst_23 : f32 to vector<8x128xf32>
    %61 = arith.cmpf oge, %19, %60 : vector<8x128xf32>
    %cst_24 = arith.constant 4.000000e-01 : f32
    %62 = vector.broadcast %cst_24 : f32 to vector<8x128xf32>
    %63 = arith.cmpf olt, %19, %62 : vector<8x128xf32>
    %64 = arith.andi %61, %63 : vector<8x128xi1>
    %65 = arith.extui %64 : vector<8x128xi1> to vector<8x128xi32>
    %66 = arith.sitofp %65 : vector<8x128xi32> to vector<8x128xf32>
    %cst_25 = arith.constant 0.000000e+00 : f32
    %67 = vector.broadcast %cst_25 : f32 to vector<8x128xf32>
    %68 = arith.cmpf oge, %21, %67 : vector<8x128xf32>
    %cst_26 = arith.constant 4.000000e-01 : f32
    %69 = vector.broadcast %cst_26 : f32 to vector<8x128xf32>
    %70 = arith.cmpf olt, %21, %69 : vector<8x128xf32>
    %71 = arith.andi %68, %70 : vector<8x128xi1>
    %72 = arith.extui %71 : vector<8x128xi1> to vector<8x128xi32>
    %73 = arith.sitofp %72 : vector<8x128xi32> to vector<8x128xf32>
    %cst_27 = arith.constant 0.000000e+00 : f32
    %74 = vector.broadcast %cst_27 : f32 to vector<8x128xf32>
    %75 = arith.cmpf oge, %23, %74 : vector<8x128xf32>
    %cst_28 = arith.constant 4.000000e-01 : f32
    %76 = vector.broadcast %cst_28 : f32 to vector<8x128xf32>
    %77 = arith.cmpf olt, %23, %76 : vector<8x128xf32>
    %78 = arith.andi %75, %77 : vector<8x128xi1>
    %79 = arith.extui %78 : vector<8x128xi1> to vector<8x128xi32>
    %80 = arith.sitofp %79 : vector<8x128xi32> to vector<8x128xf32>
    %cst_29 = arith.constant 0.000000e+00 : f32
    %81 = vector.broadcast %cst_29 : f32 to vector<8x128xf32>
    %82 = arith.cmpf oge, %25, %81 : vector<8x128xf32>
    %cst_30 = arith.constant 4.000000e-01 : f32
    %83 = vector.broadcast %cst_30 : f32 to vector<8x128xf32>
    %84 = arith.cmpf olt, %25, %83 : vector<8x128xf32>
    %85 = arith.andi %82, %84 : vector<8x128xi1>
    %86 = arith.extui %85 : vector<8x128xi1> to vector<8x128xi32>
    %87 = arith.sitofp %86 : vector<8x128xi32> to vector<8x128xf32>
    %cst_31 = arith.constant 0.000000e+00 : f32
    %88 = vector.broadcast %cst_31 : f32 to vector<8x128xf32>
    %89 = arith.cmpf oge, %27, %88 : vector<8x128xf32>
    %cst_32 = arith.constant 4.000000e-01 : f32
    %90 = vector.broadcast %cst_32 : f32 to vector<8x128xf32>
    %91 = arith.cmpf olt, %27, %90 : vector<8x128xf32>
    %92 = arith.andi %89, %91 : vector<8x128xi1>
    %93 = arith.extui %92 : vector<8x128xi1> to vector<8x128xi32>
    %94 = arith.sitofp %93 : vector<8x128xi32> to vector<8x128xf32>
    %cst_33 = arith.constant 0.000000e+00 : f32
    %95 = vector.broadcast %cst_33 : f32 to vector<8x128xf32>
    %96 = arith.cmpf oge, %29, %95 : vector<8x128xf32>
    %cst_34 = arith.constant 4.000000e-01 : f32
    %97 = vector.broadcast %cst_34 : f32 to vector<8x128xf32>
    %98 = arith.cmpf olt, %29, %97 : vector<8x128xf32>
    %99 = arith.andi %96, %98 : vector<8x128xi1>
    %100 = arith.extui %99 : vector<8x128xi1> to vector<8x128xi32>
    %101 = arith.sitofp %100 : vector<8x128xi32> to vector<8x128xf32>
    %cst_35 = arith.constant 0.000000e+00 : f32
    %102 = vector.broadcast %cst_35 : f32 to vector<8x128xf32>
    %103 = arith.cmpf oge, %31, %102 : vector<8x128xf32>
    %cst_36 = arith.constant 4.000000e-01 : f32
    %104 = vector.broadcast %cst_36 : f32 to vector<8x128xf32>
    %105 = arith.cmpf olt, %31, %104 : vector<8x128xf32>
    %106 = arith.andi %103, %105 : vector<8x128xi1>
    %107 = arith.extui %106 : vector<8x128xi1> to vector<8x128xi32>
    %108 = arith.sitofp %107 : vector<8x128xi32> to vector<8x128xf32>
    %cst_37 = arith.constant 2.500000e+00 : f32
    %109 = vector.broadcast %cst_37 : f32 to vector<8x128xf32>
    %110 = arith.mulf %11, %109 : vector<8x128xf32>
    %111 = arith.mulf %110, %38 : vector<8x128xf32>
    %cst_38 = arith.constant 2.000000e+00 : f32
    %112 = vector.broadcast %cst_38 : f32 to vector<8x128xf32>
    %113 = arith.subf %112, %110 : vector<8x128xf32>
    %114 = arith.mulf %113, %45 : vector<8x128xf32>
    %115 = arith.addf %111, %114 : vector<8x128xf32>
    %cst_39 = arith.constant 2.500000e+00 : f32
    %116 = vector.broadcast %cst_39 : f32 to vector<8x128xf32>
    %117 = arith.mulf %13, %116 : vector<8x128xf32>
    %118 = arith.mulf %117, %45 : vector<8x128xf32>
    %cst_40 = arith.constant 2.000000e+00 : f32
    %119 = vector.broadcast %cst_40 : f32 to vector<8x128xf32>
    %120 = arith.subf %119, %117 : vector<8x128xf32>
    %121 = arith.mulf %120, %52 : vector<8x128xf32>
    %122 = arith.addf %118, %121 : vector<8x128xf32>
    %cst_41 = arith.constant 2.500000e+00 : f32
    %123 = vector.broadcast %cst_41 : f32 to vector<8x128xf32>
    %124 = arith.mulf %15, %123 : vector<8x128xf32>
    %125 = arith.mulf %124, %52 : vector<8x128xf32>
    %cst_42 = arith.constant 2.000000e+00 : f32
    %126 = vector.broadcast %cst_42 : f32 to vector<8x128xf32>
    %127 = arith.subf %126, %124 : vector<8x128xf32>
    %128 = arith.mulf %127, %59 : vector<8x128xf32>
    %129 = arith.addf %125, %128 : vector<8x128xf32>
    %cst_43 = arith.constant 2.500000e+00 : f32
    %130 = vector.broadcast %cst_43 : f32 to vector<8x128xf32>
    %131 = arith.mulf %17, %130 : vector<8x128xf32>
    %132 = arith.mulf %131, %59 : vector<8x128xf32>
    %cst_44 = arith.constant 2.000000e+00 : f32
    %133 = vector.broadcast %cst_44 : f32 to vector<8x128xf32>
    %134 = arith.subf %133, %131 : vector<8x128xf32>
    %135 = arith.mulf %134, %66 : vector<8x128xf32>
    %136 = arith.addf %132, %135 : vector<8x128xf32>
    %cst_45 = arith.constant 2.500000e+00 : f32
    %137 = vector.broadcast %cst_45 : f32 to vector<8x128xf32>
    %138 = arith.mulf %19, %137 : vector<8x128xf32>
    %139 = arith.mulf %138, %66 : vector<8x128xf32>
    %cst_46 = arith.constant 2.000000e+00 : f32
    %140 = vector.broadcast %cst_46 : f32 to vector<8x128xf32>
    %141 = arith.subf %140, %138 : vector<8x128xf32>
    %142 = arith.mulf %141, %73 : vector<8x128xf32>
    %143 = arith.addf %139, %142 : vector<8x128xf32>
    %cst_47 = arith.constant 2.500000e+00 : f32
    %144 = vector.broadcast %cst_47 : f32 to vector<8x128xf32>
    %145 = arith.mulf %21, %144 : vector<8x128xf32>
    %146 = arith.mulf %145, %73 : vector<8x128xf32>
    %cst_48 = arith.constant 2.000000e+00 : f32
    %147 = vector.broadcast %cst_48 : f32 to vector<8x128xf32>
    %148 = arith.subf %147, %145 : vector<8x128xf32>
    %149 = arith.mulf %148, %80 : vector<8x128xf32>
    %150 = arith.addf %146, %149 : vector<8x128xf32>
    %cst_49 = arith.constant 2.500000e+00 : f32
    %151 = vector.broadcast %cst_49 : f32 to vector<8x128xf32>
    %152 = arith.mulf %23, %151 : vector<8x128xf32>
    %153 = arith.mulf %152, %80 : vector<8x128xf32>
    %cst_50 = arith.constant 2.000000e+00 : f32
    %154 = vector.broadcast %cst_50 : f32 to vector<8x128xf32>
    %155 = arith.subf %154, %152 : vector<8x128xf32>
    %156 = arith.mulf %155, %87 : vector<8x128xf32>
    %157 = arith.addf %153, %156 : vector<8x128xf32>
    %cst_51 = arith.constant 2.500000e+00 : f32
    %158 = vector.broadcast %cst_51 : f32 to vector<8x128xf32>
    %159 = arith.mulf %25, %158 : vector<8x128xf32>
    %160 = arith.mulf %159, %87 : vector<8x128xf32>
    %cst_52 = arith.constant 2.000000e+00 : f32
    %161 = vector.broadcast %cst_52 : f32 to vector<8x128xf32>
    %162 = arith.subf %161, %159 : vector<8x128xf32>
    %163 = arith.mulf %162, %94 : vector<8x128xf32>
    %164 = arith.addf %160, %163 : vector<8x128xf32>
    %cst_53 = arith.constant 2.500000e+00 : f32
    %165 = vector.broadcast %cst_53 : f32 to vector<8x128xf32>
    %166 = arith.mulf %27, %165 : vector<8x128xf32>
    %167 = arith.mulf %166, %94 : vector<8x128xf32>
    %cst_54 = arith.constant 2.000000e+00 : f32
    %168 = vector.broadcast %cst_54 : f32 to vector<8x128xf32>
    %169 = arith.subf %168, %166 : vector<8x128xf32>
    %170 = arith.mulf %169, %101 : vector<8x128xf32>
    %171 = arith.addf %167, %170 : vector<8x128xf32>
    %cst_55 = arith.constant 2.500000e+00 : f32
    %172 = vector.broadcast %cst_55 : f32 to vector<8x128xf32>
    %173 = arith.mulf %29, %172 : vector<8x128xf32>
    %174 = arith.mulf %173, %101 : vector<8x128xf32>
    %cst_56 = arith.constant 2.000000e+00 : f32
    %175 = vector.broadcast %cst_56 : f32 to vector<8x128xf32>
    %176 = arith.subf %175, %173 : vector<8x128xf32>
    %177 = arith.mulf %176, %108 : vector<8x128xf32>
    %178 = arith.addf %174, %177 : vector<8x128xf32>
    %cst_57 = arith.constant 1.250000e+00 : f32
    %179 = vector.broadcast %cst_57 : f32 to vector<8x128xf32>
    %180 = arith.mulf %11, %179 : vector<8x128xf32>
    %181 = arith.mulf %180, %115 : vector<8x128xf32>
    %cst_58 = arith.constant 1.500000e+00 : f32
    %182 = vector.broadcast %cst_58 : f32 to vector<8x128xf32>
    %183 = arith.subf %182, %180 : vector<8x128xf32>
    %184 = arith.mulf %183, %122 : vector<8x128xf32>
    %185 = arith.addf %181, %184 : vector<8x128xf32>
    %cst_59 = arith.constant 1.250000e+00 : f32
    %186 = vector.broadcast %cst_59 : f32 to vector<8x128xf32>
    %187 = arith.mulf %13, %186 : vector<8x128xf32>
    %188 = arith.mulf %187, %122 : vector<8x128xf32>
    %cst_60 = arith.constant 1.500000e+00 : f32
    %189 = vector.broadcast %cst_60 : f32 to vector<8x128xf32>
    %190 = arith.subf %189, %187 : vector<8x128xf32>
    %191 = arith.mulf %190, %129 : vector<8x128xf32>
    %192 = arith.addf %188, %191 : vector<8x128xf32>
    %cst_61 = arith.constant 1.250000e+00 : f32
    %193 = vector.broadcast %cst_61 : f32 to vector<8x128xf32>
    %194 = arith.mulf %15, %193 : vector<8x128xf32>
    %195 = arith.mulf %194, %129 : vector<8x128xf32>
    %cst_62 = arith.constant 1.500000e+00 : f32
    %196 = vector.broadcast %cst_62 : f32 to vector<8x128xf32>
    %197 = arith.subf %196, %194 : vector<8x128xf32>
    %198 = arith.mulf %197, %136 : vector<8x128xf32>
    %199 = arith.addf %195, %198 : vector<8x128xf32>
    %cst_63 = arith.constant 1.250000e+00 : f32
    %200 = vector.broadcast %cst_63 : f32 to vector<8x128xf32>
    %201 = arith.mulf %17, %200 : vector<8x128xf32>
    %202 = arith.mulf %201, %136 : vector<8x128xf32>
    %cst_64 = arith.constant 1.500000e+00 : f32
    %203 = vector.broadcast %cst_64 : f32 to vector<8x128xf32>
    %204 = arith.subf %203, %201 : vector<8x128xf32>
    %205 = arith.mulf %204, %143 : vector<8x128xf32>
    %206 = arith.addf %202, %205 : vector<8x128xf32>
    %cst_65 = arith.constant 1.250000e+00 : f32
    %207 = vector.broadcast %cst_65 : f32 to vector<8x128xf32>
    %208 = arith.mulf %19, %207 : vector<8x128xf32>
    %209 = arith.mulf %208, %143 : vector<8x128xf32>
    %cst_66 = arith.constant 1.500000e+00 : f32
    %210 = vector.broadcast %cst_66 : f32 to vector<8x128xf32>
    %211 = arith.subf %210, %208 : vector<8x128xf32>
    %212 = arith.mulf %211, %150 : vector<8x128xf32>
    %213 = arith.addf %209, %212 : vector<8x128xf32>
    %cst_67 = arith.constant 1.250000e+00 : f32
    %214 = vector.broadcast %cst_67 : f32 to vector<8x128xf32>
    %215 = arith.mulf %21, %214 : vector<8x128xf32>
    %216 = arith.mulf %215, %150 : vector<8x128xf32>
    %cst_68 = arith.constant 1.500000e+00 : f32
    %217 = vector.broadcast %cst_68 : f32 to vector<8x128xf32>
    %218 = arith.subf %217, %215 : vector<8x128xf32>
    %219 = arith.mulf %218, %157 : vector<8x128xf32>
    %220 = arith.addf %216, %219 : vector<8x128xf32>
    %cst_69 = arith.constant 1.250000e+00 : f32
    %221 = vector.broadcast %cst_69 : f32 to vector<8x128xf32>
    %222 = arith.mulf %23, %221 : vector<8x128xf32>
    %223 = arith.mulf %222, %157 : vector<8x128xf32>
    %cst_70 = arith.constant 1.500000e+00 : f32
    %224 = vector.broadcast %cst_70 : f32 to vector<8x128xf32>
    %225 = arith.subf %224, %222 : vector<8x128xf32>
    %226 = arith.mulf %225, %164 : vector<8x128xf32>
    %227 = arith.addf %223, %226 : vector<8x128xf32>
    %cst_71 = arith.constant 1.250000e+00 : f32
    %228 = vector.broadcast %cst_71 : f32 to vector<8x128xf32>
    %229 = arith.mulf %25, %228 : vector<8x128xf32>
    %230 = arith.mulf %229, %164 : vector<8x128xf32>
    %cst_72 = arith.constant 1.500000e+00 : f32
    %231 = vector.broadcast %cst_72 : f32 to vector<8x128xf32>
    %232 = arith.subf %231, %229 : vector<8x128xf32>
    %233 = arith.mulf %232, %171 : vector<8x128xf32>
    %234 = arith.addf %230, %233 : vector<8x128xf32>
    %cst_73 = arith.constant 1.250000e+00 : f32
    %235 = vector.broadcast %cst_73 : f32 to vector<8x128xf32>
    %236 = arith.mulf %27, %235 : vector<8x128xf32>
    %237 = arith.mulf %236, %171 : vector<8x128xf32>
    %cst_74 = arith.constant 1.500000e+00 : f32
    %238 = vector.broadcast %cst_74 : f32 to vector<8x128xf32>
    %239 = arith.subf %238, %236 : vector<8x128xf32>
    %240 = arith.mulf %239, %178 : vector<8x128xf32>
    %241 = arith.addf %237, %240 : vector<8x128xf32>
    %cst_75 = arith.constant 0.833333313 : f32
    %242 = vector.broadcast %cst_75 : f32 to vector<8x128xf32>
    %243 = arith.mulf %11, %242 : vector<8x128xf32>
    %244 = arith.mulf %243, %185 : vector<8x128xf32>
    %cst_76 = arith.constant 1.33333337 : f32
    %245 = vector.broadcast %cst_76 : f32 to vector<8x128xf32>
    %246 = arith.subf %245, %243 : vector<8x128xf32>
    %247 = arith.mulf %246, %192 : vector<8x128xf32>
    %248 = arith.addf %244, %247 : vector<8x128xf32>
    %cst_77 = arith.constant 0.833333313 : f32
    %249 = vector.broadcast %cst_77 : f32 to vector<8x128xf32>
    %250 = arith.mulf %13, %249 : vector<8x128xf32>
    %251 = arith.mulf %250, %192 : vector<8x128xf32>
    %cst_78 = arith.constant 1.33333337 : f32
    %252 = vector.broadcast %cst_78 : f32 to vector<8x128xf32>
    %253 = arith.subf %252, %250 : vector<8x128xf32>
    %254 = arith.mulf %253, %199 : vector<8x128xf32>
    %255 = arith.addf %251, %254 : vector<8x128xf32>
    %cst_79 = arith.constant 0.833333313 : f32
    %256 = vector.broadcast %cst_79 : f32 to vector<8x128xf32>
    %257 = arith.mulf %15, %256 : vector<8x128xf32>
    %258 = arith.mulf %257, %199 : vector<8x128xf32>
    %cst_80 = arith.constant 1.33333337 : f32
    %259 = vector.broadcast %cst_80 : f32 to vector<8x128xf32>
    %260 = arith.subf %259, %257 : vector<8x128xf32>
    %261 = arith.mulf %260, %206 : vector<8x128xf32>
    %262 = arith.addf %258, %261 : vector<8x128xf32>
    %cst_81 = arith.constant 0.833333313 : f32
    %263 = vector.broadcast %cst_81 : f32 to vector<8x128xf32>
    %264 = arith.mulf %17, %263 : vector<8x128xf32>
    %265 = arith.mulf %264, %206 : vector<8x128xf32>
    %cst_82 = arith.constant 1.33333337 : f32
    %266 = vector.broadcast %cst_82 : f32 to vector<8x128xf32>
    %267 = arith.subf %266, %264 : vector<8x128xf32>
    %268 = arith.mulf %267, %213 : vector<8x128xf32>
    %269 = arith.addf %265, %268 : vector<8x128xf32>
    %cst_83 = arith.constant 0.833333313 : f32
    %270 = vector.broadcast %cst_83 : f32 to vector<8x128xf32>
    %271 = arith.mulf %19, %270 : vector<8x128xf32>
    %272 = arith.mulf %271, %213 : vector<8x128xf32>
    %cst_84 = arith.constant 1.33333337 : f32
    %273 = vector.broadcast %cst_84 : f32 to vector<8x128xf32>
    %274 = arith.subf %273, %271 : vector<8x128xf32>
    %275 = arith.mulf %274, %220 : vector<8x128xf32>
    %276 = arith.addf %272, %275 : vector<8x128xf32>
    %cst_85 = arith.constant 0.833333313 : f32
    %277 = vector.broadcast %cst_85 : f32 to vector<8x128xf32>
    %278 = arith.mulf %21, %277 : vector<8x128xf32>
    %279 = arith.mulf %278, %220 : vector<8x128xf32>
    %cst_86 = arith.constant 1.33333337 : f32
    %280 = vector.broadcast %cst_86 : f32 to vector<8x128xf32>
    %281 = arith.subf %280, %278 : vector<8x128xf32>
    %282 = arith.mulf %281, %227 : vector<8x128xf32>
    %283 = arith.addf %279, %282 : vector<8x128xf32>
    %cst_87 = arith.constant 0.833333313 : f32
    %284 = vector.broadcast %cst_87 : f32 to vector<8x128xf32>
    %285 = arith.mulf %23, %284 : vector<8x128xf32>
    %286 = arith.mulf %285, %227 : vector<8x128xf32>
    %cst_88 = arith.constant 1.33333337 : f32
    %287 = vector.broadcast %cst_88 : f32 to vector<8x128xf32>
    %288 = arith.subf %287, %285 : vector<8x128xf32>
    %289 = arith.mulf %288, %234 : vector<8x128xf32>
    %290 = arith.addf %286, %289 : vector<8x128xf32>
    %cst_89 = arith.constant 0.833333313 : f32
    %291 = vector.broadcast %cst_89 : f32 to vector<8x128xf32>
    %292 = arith.mulf %25, %291 : vector<8x128xf32>
    %293 = arith.mulf %292, %234 : vector<8x128xf32>
    %cst_90 = arith.constant 1.33333337 : f32
    %294 = vector.broadcast %cst_90 : f32 to vector<8x128xf32>
    %295 = arith.subf %294, %292 : vector<8x128xf32>
    %296 = arith.mulf %295, %241 : vector<8x128xf32>
    %297 = arith.addf %293, %296 : vector<8x128xf32>
    %298 = arith.truncf %248 : vector<8x128xf32> to vector<8x128xbf16>
    %299 = arith.truncf %255 : vector<8x128xf32> to vector<8x128xbf16>
    %300 = arith.truncf %262 : vector<8x128xf32> to vector<8x128xbf16>
    %301 = arith.truncf %269 : vector<8x128xf32> to vector<8x128xbf16>
    %302 = arith.truncf %276 : vector<8x128xf32> to vector<8x128xbf16>
    %303 = arith.truncf %283 : vector<8x128xf32> to vector<8x128xbf16>
    %304 = arith.truncf %290 : vector<8x128xf32> to vector<8x128xbf16>
    %305 = arith.truncf %297 : vector<8x128xf32> to vector<8x128xbf16>
    %306 = tpu.concatenate %298, %299, %300, %301, %302, %303, %304, %305 in 1 : vector<8x128xbf16>, vector<8x128xbf16>, vector<8x128xbf16>, vector<8x128xbf16>, vector<8x128xbf16>, vector<8x128xbf16>, vector<8x128xbf16>, vector<8x128xbf16> -> vector<8x1024xbf16>
    %c0_91 = arith.constant 0 : index
    %c0_92 = arith.constant 0 : index
    %307 = vector.load %arg3[%c0_91, %c0_92] : memref<1024x128xbf16, #tpu.memory_space<vmem>>, vector<1024x128xbf16>
    %cst_93 = arith.constant dense<0.000000e+00> : vector<8x128xf32>
    %308 = tpu.matmul %306, %307, %cst_93 {dimension_numbers = #tpu.dot_dimension_numbers<[1], [0], [0], [1], [0, 0, 1, 1], [], []>} : vector<8x1024xbf16>, vector<1024x128xbf16>, vector<8x128xf32> -> vector<8x128xf32>
    %309 = arith.addf %9, %308 : vector<8x128xf32>
    %310 = math.tanh %309 : vector<8x128xf32>
    %311 = arith.negf %310 : vector<8x128xf32>
    %312 = math.exp %311 : vector<8x128xf32>
    %cst_94 = arith.constant 1.000000e+00 : f32
    %313 = vector.broadcast %cst_94 : f32 to vector<8x128xf32>
    %314 = arith.addf %313, %312 : vector<8x128xf32>
    %315 = arith.divf %313, %314 : vector<8x128xf32>
    %316 = arith.mulf %310, %315 : vector<8x128xf32>
    %317 = arith.truncf %316 : vector<8x128xf32> to vector<8x128xbf16>
    %c0_95 = arith.constant 0 : index
    %c0_96 = arith.constant 0 : index
    %318 = vector.load %arg4[%c0_95, %c0_96] : memref<128x128xbf16, #tpu.memory_space<vmem>>, vector<128x128xbf16>
    %cst_97 = arith.constant dense<0.000000e+00> : vector<8x128xf32>
    %319 = tpu.matmul %317, %318, %cst_97 {dimension_numbers = #tpu.dot_dimension_numbers<[1], [0], [0], [1], [0, 0, 1, 1], [], []>} : vector<8x128xbf16>, vector<128x128xbf16>, vector<8x128xf32> -> vector<8x128xf32>
    %cst_98 = arith.constant -2.200000e+00 : f32
    %320 = vector.broadcast %cst_98 : f32 to vector<8x128xf32>
    %321 = arith.subf %310, %320 : vector<8x128xf32>
    %cst_99 = arith.constant -1.800000e+00 : f32
    %322 = vector.broadcast %cst_99 : f32 to vector<8x128xf32>
    %323 = arith.subf %310, %322 : vector<8x128xf32>
    %cst_100 = arith.constant -1.400000e+00 : f32
    %324 = vector.broadcast %cst_100 : f32 to vector<8x128xf32>
    %325 = arith.subf %310, %324 : vector<8x128xf32>
    %cst_101 = arith.constant -1.000000e+00 : f32
    %326 = vector.broadcast %cst_101 : f32 to vector<8x128xf32>
    %327 = arith.subf %310, %326 : vector<8x128xf32>
    %cst_102 = arith.constant -6.000000e-01 : f32
    %328 = vector.broadcast %cst_102 : f32 to vector<8x128xf32>
    %329 = arith.subf %310, %328 : vector<8x128xf32>
    %cst_103 = arith.constant -0.199999988 : f32
    %330 = vector.broadcast %cst_103 : f32 to vector<8x128xf32>
    %331 = arith.subf %310, %330 : vector<8x128xf32>
    %cst_104 = arith.constant 0.200000048 : f32
    %332 = vector.broadcast %cst_104 : f32 to vector<8x128xf32>
    %333 = arith.subf %310, %332 : vector<8x128xf32>
    %cst_105 = arith.constant 6.000000e-01 : f32
    %334 = vector.broadcast %cst_105 : f32 to vector<8x128xf32>
    %335 = arith.subf %310, %334 : vector<8x128xf32>
    %cst_106 = arith.constant 1.000000e+00 : f32
    %336 = vector.broadcast %cst_106 : f32 to vector<8x128xf32>
    %337 = arith.subf %310, %336 : vector<8x128xf32>
    %cst_107 = arith.constant 1.4000001 : f32
    %338 = vector.broadcast %cst_107 : f32 to vector<8x128xf32>
    %339 = arith.subf %310, %338 : vector<8x128xf32>
    %cst_108 = arith.constant 1.800000e+00 : f32
    %340 = vector.broadcast %cst_108 : f32 to vector<8x128xf32>
    %341 = arith.subf %310, %340 : vector<8x128xf32>
    %cst_109 = arith.constant 0.000000e+00 : f32
    %342 = vector.broadcast %cst_109 : f32 to vector<8x128xf32>
    %343 = arith.cmpf oge, %321, %342 : vector<8x128xf32>
    %cst_110 = arith.constant 4.000000e-01 : f32
    %344 = vector.broadcast %cst_110 : f32 to vector<8x128xf32>
    %345 = arith.cmpf olt, %321, %344 : vector<8x128xf32>
    %346 = arith.andi %343, %345 : vector<8x128xi1>
    %347 = arith.extui %346 : vector<8x128xi1> to vector<8x128xi32>
    %348 = arith.sitofp %347 : vector<8x128xi32> to vector<8x128xf32>
    %cst_111 = arith.constant 0.000000e+00 : f32
    %349 = vector.broadcast %cst_111 : f32 to vector<8x128xf32>
    %350 = arith.cmpf oge, %323, %349 : vector<8x128xf32>
    %cst_112 = arith.constant 4.000000e-01 : f32
    %351 = vector.broadcast %cst_112 : f32 to vector<8x128xf32>
    %352 = arith.cmpf olt, %323, %351 : vector<8x128xf32>
    %353 = arith.andi %350, %352 : vector<8x128xi1>
    %354 = arith.extui %353 : vector<8x128xi1> to vector<8x128xi32>
    %355 = arith.sitofp %354 : vector<8x128xi32> to vector<8x128xf32>
    %cst_113 = arith.constant 0.000000e+00 : f32
    %356 = vector.broadcast %cst_113 : f32 to vector<8x128xf32>
    %357 = arith.cmpf oge, %325, %356 : vector<8x128xf32>
    %cst_114 = arith.constant 4.000000e-01 : f32
    %358 = vector.broadcast %cst_114 : f32 to vector<8x128xf32>
    %359 = arith.cmpf olt, %325, %358 : vector<8x128xf32>
    %360 = arith.andi %357, %359 : vector<8x128xi1>
    %361 = arith.extui %360 : vector<8x128xi1> to vector<8x128xi32>
    %362 = arith.sitofp %361 : vector<8x128xi32> to vector<8x128xf32>
    %cst_115 = arith.constant 0.000000e+00 : f32
    %363 = vector.broadcast %cst_115 : f32 to vector<8x128xf32>
    %364 = arith.cmpf oge, %327, %363 : vector<8x128xf32>
    %cst_116 = arith.constant 4.000000e-01 : f32
    %365 = vector.broadcast %cst_116 : f32 to vector<8x128xf32>
    %366 = arith.cmpf olt, %327, %365 : vector<8x128xf32>
    %367 = arith.andi %364, %366 : vector<8x128xi1>
    %368 = arith.extui %367 : vector<8x128xi1> to vector<8x128xi32>
    %369 = arith.sitofp %368 : vector<8x128xi32> to vector<8x128xf32>
    %cst_117 = arith.constant 0.000000e+00 : f32
    %370 = vector.broadcast %cst_117 : f32 to vector<8x128xf32>
    %371 = arith.cmpf oge, %329, %370 : vector<8x128xf32>
    %cst_118 = arith.constant 4.000000e-01 : f32
    %372 = vector.broadcast %cst_118 : f32 to vector<8x128xf32>
    %373 = arith.cmpf olt, %329, %372 : vector<8x128xf32>
    %374 = arith.andi %371, %373 : vector<8x128xi1>
    %375 = arith.extui %374 : vector<8x128xi1> to vector<8x128xi32>
    %376 = arith.sitofp %375 : vector<8x128xi32> to vector<8x128xf32>
    %cst_119 = arith.constant 0.000000e+00 : f32
    %377 = vector.broadcast %cst_119 : f32 to vector<8x128xf32>
    %378 = arith.cmpf oge, %331, %377 : vector<8x128xf32>
    %cst_120 = arith.constant 4.000000e-01 : f32
    %379 = vector.broadcast %cst_120 : f32 to vector<8x128xf32>
    %380 = arith.cmpf olt, %331, %379 : vector<8x128xf32>
    %381 = arith.andi %378, %380 : vector<8x128xi1>
    %382 = arith.extui %381 : vector<8x128xi1> to vector<8x128xi32>
    %383 = arith.sitofp %382 : vector<8x128xi32> to vector<8x128xf32>
    %cst_121 = arith.constant 0.000000e+00 : f32
    %384 = vector.broadcast %cst_121 : f32 to vector<8x128xf32>
    %385 = arith.cmpf oge, %333, %384 : vector<8x128xf32>
    %cst_122 = arith.constant 4.000000e-01 : f32
    %386 = vector.broadcast %cst_122 : f32 to vector<8x128xf32>
    %387 = arith.cmpf olt, %333, %386 : vector<8x128xf32>
    %388 = arith.andi %385, %387 : vector<8x128xi1>
    %389 = arith.extui %388 : vector<8x128xi1> to vector<8x128xi32>
    %390 = arith.sitofp %389 : vector<8x128xi32> to vector<8x128xf32>
    %cst_123 = arith.constant 0.000000e+00 : f32
    %391 = vector.broadcast %cst_123 : f32 to vector<8x128xf32>
    %392 = arith.cmpf oge, %335, %391 : vector<8x128xf32>
    %cst_124 = arith.constant 4.000000e-01 : f32
    %393 = vector.broadcast %cst_124 : f32 to vector<8x128xf32>
    %394 = arith.cmpf olt, %335, %393 : vector<8x128xf32>
    %395 = arith.andi %392, %394 : vector<8x128xi1>
    %396 = arith.extui %395 : vector<8x128xi1> to vector<8x128xi32>
    %397 = arith.sitofp %396 : vector<8x128xi32> to vector<8x128xf32>
    %cst_125 = arith.constant 0.000000e+00 : f32
    %398 = vector.broadcast %cst_125 : f32 to vector<8x128xf32>
    %399 = arith.cmpf oge, %337, %398 : vector<8x128xf32>
    %cst_126 = arith.constant 4.000000e-01 : f32
    %400 = vector.broadcast %cst_126 : f32 to vector<8x128xf32>
    %401 = arith.cmpf olt, %337, %400 : vector<8x128xf32>
    %402 = arith.andi %399, %401 : vector<8x128xi1>
    %403 = arith.extui %402 : vector<8x128xi1> to vector<8x128xi32>
    %404 = arith.sitofp %403 : vector<8x128xi32> to vector<8x128xf32>
    %cst_127 = arith.constant 0.000000e+00 : f32
    %405 = vector.broadcast %cst_127 : f32 to vector<8x128xf32>
    %406 = arith.cmpf oge, %339, %405 : vector<8x128xf32>
    %cst_128 = arith.constant 4.000000e-01 : f32
    %407 = vector.broadcast %cst_128 : f32 to vector<8x128xf32>
    %408 = arith.cmpf olt, %339, %407 : vector<8x128xf32>
    %409 = arith.andi %406, %408 : vector<8x128xi1>
    %410 = arith.extui %409 : vector<8x128xi1> to vector<8x128xi32>
    %411 = arith.sitofp %410 : vector<8x128xi32> to vector<8x128xf32>
    %cst_129 = arith.constant 0.000000e+00 : f32
    %412 = vector.broadcast %cst_129 : f32 to vector<8x128xf32>
    %413 = arith.cmpf oge, %341, %412 : vector<8x128xf32>
    %cst_130 = arith.constant 4.000000e-01 : f32
    %414 = vector.broadcast %cst_130 : f32 to vector<8x128xf32>
    %415 = arith.cmpf olt, %341, %414 : vector<8x128xf32>
    %416 = arith.andi %413, %415 : vector<8x128xi1>
    %417 = arith.extui %416 : vector<8x128xi1> to vector<8x128xi32>
    %418 = arith.sitofp %417 : vector<8x128xi32> to vector<8x128xf32>
    %cst_131 = arith.constant 2.500000e+00 : f32
    %419 = vector.broadcast %cst_131 : f32 to vector<8x128xf32>
    %420 = arith.mulf %321, %419 : vector<8x128xf32>
    %421 = arith.mulf %420, %348 : vector<8x128xf32>
    %cst_132 = arith.constant 2.000000e+00 : f32
    %422 = vector.broadcast %cst_132 : f32 to vector<8x128xf32>
    %423 = arith.subf %422, %420 : vector<8x128xf32>
    %424 = arith.mulf %423, %355 : vector<8x128xf32>
    %425 = arith.addf %421, %424 : vector<8x128xf32>
    %cst_133 = arith.constant 2.500000e+00 : f32
    %426 = vector.broadcast %cst_133 : f32 to vector<8x128xf32>
    %427 = arith.mulf %323, %426 : vector<8x128xf32>
    %428 = arith.mulf %427, %355 : vector<8x128xf32>
    %cst_134 = arith.constant 2.000000e+00 : f32
    %429 = vector.broadcast %cst_134 : f32 to vector<8x128xf32>
    %430 = arith.subf %429, %427 : vector<8x128xf32>
    %431 = arith.mulf %430, %362 : vector<8x128xf32>
    %432 = arith.addf %428, %431 : vector<8x128xf32>
    %cst_135 = arith.constant 2.500000e+00 : f32
    %433 = vector.broadcast %cst_135 : f32 to vector<8x128xf32>
    %434 = arith.mulf %325, %433 : vector<8x128xf32>
    %435 = arith.mulf %434, %362 : vector<8x128xf32>
    %cst_136 = arith.constant 2.000000e+00 : f32
    %436 = vector.broadcast %cst_136 : f32 to vector<8x128xf32>
    %437 = arith.subf %436, %434 : vector<8x128xf32>
    %438 = arith.mulf %437, %369 : vector<8x128xf32>
    %439 = arith.addf %435, %438 : vector<8x128xf32>
    %cst_137 = arith.constant 2.500000e+00 : f32
    %440 = vector.broadcast %cst_137 : f32 to vector<8x128xf32>
    %441 = arith.mulf %327, %440 : vector<8x128xf32>
    %442 = arith.mulf %441, %369 : vector<8x128xf32>
    %cst_138 = arith.constant 2.000000e+00 : f32
    %443 = vector.broadcast %cst_138 : f32 to vector<8x128xf32>
    %444 = arith.subf %443, %441 : vector<8x128xf32>
    %445 = arith.mulf %444, %376 : vector<8x128xf32>
    %446 = arith.addf %442, %445 : vector<8x128xf32>
    %cst_139 = arith.constant 2.500000e+00 : f32
    %447 = vector.broadcast %cst_139 : f32 to vector<8x128xf32>
    %448 = arith.mulf %329, %447 : vector<8x128xf32>
    %449 = arith.mulf %448, %376 : vector<8x128xf32>
    %cst_140 = arith.constant 2.000000e+00 : f32
    %450 = vector.broadcast %cst_140 : f32 to vector<8x128xf32>
    %451 = arith.subf %450, %448 : vector<8x128xf32>
    %452 = arith.mulf %451, %383 : vector<8x128xf32>
    %453 = arith.addf %449, %452 : vector<8x128xf32>
    %cst_141 = arith.constant 2.500000e+00 : f32
    %454 = vector.broadcast %cst_141 : f32 to vector<8x128xf32>
    %455 = arith.mulf %331, %454 : vector<8x128xf32>
    %456 = arith.mulf %455, %383 : vector<8x128xf32>
    %cst_142 = arith.constant 2.000000e+00 : f32
    %457 = vector.broadcast %cst_142 : f32 to vector<8x128xf32>
    %458 = arith.subf %457, %455 : vector<8x128xf32>
    %459 = arith.mulf %458, %390 : vector<8x128xf32>
    %460 = arith.addf %456, %459 : vector<8x128xf32>
    %cst_143 = arith.constant 2.500000e+00 : f32
    %461 = vector.broadcast %cst_143 : f32 to vector<8x128xf32>
    %462 = arith.mulf %333, %461 : vector<8x128xf32>
    %463 = arith.mulf %462, %390 : vector<8x128xf32>
    %cst_144 = arith.constant 2.000000e+00 : f32
    %464 = vector.broadcast %cst_144 : f32 to vector<8x128xf32>
    %465 = arith.subf %464, %462 : vector<8x128xf32>
    %466 = arith.mulf %465, %397 : vector<8x128xf32>
    %467 = arith.addf %463, %466 : vector<8x128xf32>
    %cst_145 = arith.constant 2.500000e+00 : f32
    %468 = vector.broadcast %cst_145 : f32 to vector<8x128xf32>
    %469 = arith.mulf %335, %468 : vector<8x128xf32>
    %470 = arith.mulf %469, %397 : vector<8x128xf32>
    %cst_146 = arith.constant 2.000000e+00 : f32
    %471 = vector.broadcast %cst_146 : f32 to vector<8x128xf32>
    %472 = arith.subf %471, %469 : vector<8x128xf32>
    %473 = arith.mulf %472, %404 : vector<8x128xf32>
    %474 = arith.addf %470, %473 : vector<8x128xf32>
    %cst_147 = arith.constant 2.500000e+00 : f32
    %475 = vector.broadcast %cst_147 : f32 to vector<8x128xf32>
    %476 = arith.mulf %337, %475 : vector<8x128xf32>
    %477 = arith.mulf %476, %404 : vector<8x128xf32>
    %cst_148 = arith.constant 2.000000e+00 : f32
    %478 = vector.broadcast %cst_148 : f32 to vector<8x128xf32>
    %479 = arith.subf %478, %476 : vector<8x128xf32>
    %480 = arith.mulf %479, %411 : vector<8x128xf32>
    %481 = arith.addf %477, %480 : vector<8x128xf32>
    %cst_149 = arith.constant 2.500000e+00 : f32
    %482 = vector.broadcast %cst_149 : f32 to vector<8x128xf32>
    %483 = arith.mulf %339, %482 : vector<8x128xf32>
    %484 = arith.mulf %483, %411 : vector<8x128xf32>
    %cst_150 = arith.constant 2.000000e+00 : f32
    %485 = vector.broadcast %cst_150 : f32 to vector<8x128xf32>
    %486 = arith.subf %485, %483 : vector<8x128xf32>
    %487 = arith.mulf %486, %418 : vector<8x128xf32>
    %488 = arith.addf %484, %487 : vector<8x128xf32>
    %cst_151 = arith.constant 1.250000e+00 : f32
    %489 = vector.broadcast %cst_151 : f32 to vector<8x128xf32>
    %490 = arith.mulf %321, %489 : vector<8x128xf32>
    %491 = arith.mulf %490, %425 : vector<8x128xf32>
    %cst_152 = arith.constant 1.500000e+00 : f32
    %492 = vector.broadcast %cst_152 : f32 to vector<8x128xf32>
    %493 = arith.subf %492, %490 : vector<8x128xf32>
    %494 = arith.mulf %493, %432 : vector<8x128xf32>
    %495 = arith.addf %491, %494 : vector<8x128xf32>
    %cst_153 = arith.constant 1.250000e+00 : f32
    %496 = vector.broadcast %cst_153 : f32 to vector<8x128xf32>
    %497 = arith.mulf %323, %496 : vector<8x128xf32>
    %498 = arith.mulf %497, %432 : vector<8x128xf32>
    %cst_154 = arith.constant 1.500000e+00 : f32
    %499 = vector.broadcast %cst_154 : f32 to vector<8x128xf32>
    %500 = arith.subf %499, %497 : vector<8x128xf32>
    %501 = arith.mulf %500, %439 : vector<8x128xf32>
    %502 = arith.addf %498, %501 : vector<8x128xf32>
    %cst_155 = arith.constant 1.250000e+00 : f32
    %503 = vector.broadcast %cst_155 : f32 to vector<8x128xf32>
    %504 = arith.mulf %325, %503 : vector<8x128xf32>
    %505 = arith.mulf %504, %439 : vector<8x128xf32>
    %cst_156 = arith.constant 1.500000e+00 : f32
    %506 = vector.broadcast %cst_156 : f32 to vector<8x128xf32>
    %507 = arith.subf %506, %504 : vector<8x128xf32>
    %508 = arith.mulf %507, %446 : vector<8x128xf32>
    %509 = arith.addf %505, %508 : vector<8x128xf32>
    %cst_157 = arith.constant 1.250000e+00 : f32
    %510 = vector.broadcast %cst_157 : f32 to vector<8x128xf32>
    %511 = arith.mulf %327, %510 : vector<8x128xf32>
    %512 = arith.mulf %511, %446 : vector<8x128xf32>
    %cst_158 = arith.constant 1.500000e+00 : f32
    %513 = vector.broadcast %cst_158 : f32 to vector<8x128xf32>
    %514 = arith.subf %513, %511 : vector<8x128xf32>
    %515 = arith.mulf %514, %453 : vector<8x128xf32>
    %516 = arith.addf %512, %515 : vector<8x128xf32>
    %cst_159 = arith.constant 1.250000e+00 : f32
    %517 = vector.broadcast %cst_159 : f32 to vector<8x128xf32>
    %518 = arith.mulf %329, %517 : vector<8x128xf32>
    %519 = arith.mulf %518, %453 : vector<8x128xf32>
    %cst_160 = arith.constant 1.500000e+00 : f32
    %520 = vector.broadcast %cst_160 : f32 to vector<8x128xf32>
    %521 = arith.subf %520, %518 : vector<8x128xf32>
    %522 = arith.mulf %521, %460 : vector<8x128xf32>
    %523 = arith.addf %519, %522 : vector<8x128xf32>
    %cst_161 = arith.constant 1.250000e+00 : f32
    %524 = vector.broadcast %cst_161 : f32 to vector<8x128xf32>
    %525 = arith.mulf %331, %524 : vector<8x128xf32>
    %526 = arith.mulf %525, %460 : vector<8x128xf32>
    %cst_162 = arith.constant 1.500000e+00 : f32
    %527 = vector.broadcast %cst_162 : f32 to vector<8x128xf32>
    %528 = arith.subf %527, %525 : vector<8x128xf32>
    %529 = arith.mulf %528, %467 : vector<8x128xf32>
    %530 = arith.addf %526, %529 : vector<8x128xf32>
    %cst_163 = arith.constant 1.250000e+00 : f32
    %531 = vector.broadcast %cst_163 : f32 to vector<8x128xf32>
    %532 = arith.mulf %333, %531 : vector<8x128xf32>
    %533 = arith.mulf %532, %467 : vector<8x128xf32>
    %cst_164 = arith.constant 1.500000e+00 : f32
    %534 = vector.broadcast %cst_164 : f32 to vector<8x128xf32>
    %535 = arith.subf %534, %532 : vector<8x128xf32>
    %536 = arith.mulf %535, %474 : vector<8x128xf32>
    %537 = arith.addf %533, %536 : vector<8x128xf32>
    %cst_165 = arith.constant 1.250000e+00 : f32
    %538 = vector.broadcast %cst_165 : f32 to vector<8x128xf32>
    %539 = arith.mulf %335, %538 : vector<8x128xf32>
    %540 = arith.mulf %539, %474 : vector<8x128xf32>
    %cst_166 = arith.constant 1.500000e+00 : f32
    %541 = vector.broadcast %cst_166 : f32 to vector<8x128xf32>
    %542 = arith.subf %541, %539 : vector<8x128xf32>
    %543 = arith.mulf %542, %481 : vector<8x128xf32>
    %544 = arith.addf %540, %543 : vector<8x128xf32>
    %cst_167 = arith.constant 1.250000e+00 : f32
    %545 = vector.broadcast %cst_167 : f32 to vector<8x128xf32>
    %546 = arith.mulf %337, %545 : vector<8x128xf32>
    %547 = arith.mulf %546, %481 : vector<8x128xf32>
    %cst_168 = arith.constant 1.500000e+00 : f32
    %548 = vector.broadcast %cst_168 : f32 to vector<8x128xf32>
    %549 = arith.subf %548, %546 : vector<8x128xf32>
    %550 = arith.mulf %549, %488 : vector<8x128xf32>
    %551 = arith.addf %547, %550 : vector<8x128xf32>
    %cst_169 = arith.constant 0.833333313 : f32
    %552 = vector.broadcast %cst_169 : f32 to vector<8x128xf32>
    %553 = arith.mulf %321, %552 : vector<8x128xf32>
    %554 = arith.mulf %553, %495 : vector<8x128xf32>
    %cst_170 = arith.constant 1.33333337 : f32
    %555 = vector.broadcast %cst_170 : f32 to vector<8x128xf32>
    %556 = arith.subf %555, %553 : vector<8x128xf32>
    %557 = arith.mulf %556, %502 : vector<8x128xf32>
    %558 = arith.addf %554, %557 : vector<8x128xf32>
    %cst_171 = arith.constant 0.833333313 : f32
    %559 = vector.broadcast %cst_171 : f32 to vector<8x128xf32>
    %560 = arith.mulf %323, %559 : vector<8x128xf32>
    %561 = arith.mulf %560, %502 : vector<8x128xf32>
    %cst_172 = arith.constant 1.33333337 : f32
    %562 = vector.broadcast %cst_172 : f32 to vector<8x128xf32>
    %563 = arith.subf %562, %560 : vector<8x128xf32>
    %564 = arith.mulf %563, %509 : vector<8x128xf32>
    %565 = arith.addf %561, %564 : vector<8x128xf32>
    %cst_173 = arith.constant 0.833333313 : f32
    %566 = vector.broadcast %cst_173 : f32 to vector<8x128xf32>
    %567 = arith.mulf %325, %566 : vector<8x128xf32>
    %568 = arith.mulf %567, %509 : vector<8x128xf32>
    %cst_174 = arith.constant 1.33333337 : f32
    %569 = vector.broadcast %cst_174 : f32 to vector<8x128xf32>
    %570 = arith.subf %569, %567 : vector<8x128xf32>
    %571 = arith.mulf %570, %516 : vector<8x128xf32>
    %572 = arith.addf %568, %571 : vector<8x128xf32>
    %cst_175 = arith.constant 0.833333313 : f32
    %573 = vector.broadcast %cst_175 : f32 to vector<8x128xf32>
    %574 = arith.mulf %327, %573 : vector<8x128xf32>
    %575 = arith.mulf %574, %516 : vector<8x128xf32>
    %cst_176 = arith.constant 1.33333337 : f32
    %576 = vector.broadcast %cst_176 : f32 to vector<8x128xf32>
    %577 = arith.subf %576, %574 : vector<8x128xf32>
    %578 = arith.mulf %577, %523 : vector<8x128xf32>
    %579 = arith.addf %575, %578 : vector<8x128xf32>
    %cst_177 = arith.constant 0.833333313 : f32
    %580 = vector.broadcast %cst_177 : f32 to vector<8x128xf32>
    %581 = arith.mulf %329, %580 : vector<8x128xf32>
    %582 = arith.mulf %581, %523 : vector<8x128xf32>
    %cst_178 = arith.constant 1.33333337 : f32
    %583 = vector.broadcast %cst_178 : f32 to vector<8x128xf32>
    %584 = arith.subf %583, %581 : vector<8x128xf32>
    %585 = arith.mulf %584, %530 : vector<8x128xf32>
    %586 = arith.addf %582, %585 : vector<8x128xf32>
    %cst_179 = arith.constant 0.833333313 : f32
    %587 = vector.broadcast %cst_179 : f32 to vector<8x128xf32>
    %588 = arith.mulf %331, %587 : vector<8x128xf32>
    %589 = arith.mulf %588, %530 : vector<8x128xf32>
    %cst_180 = arith.constant 1.33333337 : f32
    %590 = vector.broadcast %cst_180 : f32 to vector<8x128xf32>
    %591 = arith.subf %590, %588 : vector<8x128xf32>
    %592 = arith.mulf %591, %537 : vector<8x128xf32>
    %593 = arith.addf %589, %592 : vector<8x128xf32>
    %cst_181 = arith.constant 0.833333313 : f32
    %594 = vector.broadcast %cst_181 : f32 to vector<8x128xf32>
    %595 = arith.mulf %333, %594 : vector<8x128xf32>
    %596 = arith.mulf %595, %537 : vector<8x128xf32>
    %cst_182 = arith.constant 1.33333337 : f32
    %597 = vector.broadcast %cst_182 : f32 to vector<8x128xf32>
    %598 = arith.subf %597, %595 : vector<8x128xf32>
    %599 = arith.mulf %598, %544 : vector<8x128xf32>
    %600 = arith.addf %596, %599 : vector<8x128xf32>
    %cst_183 = arith.constant 0.833333313 : f32
    %601 = vector.broadcast %cst_183 : f32 to vector<8x128xf32>
    %602 = arith.mulf %335, %601 : vector<8x128xf32>
    %603 = arith.mulf %602, %544 : vector<8x128xf32>
    %cst_184 = arith.constant 1.33333337 : f32
    %604 = vector.broadcast %cst_184 : f32 to vector<8x128xf32>
    %605 = arith.subf %604, %602 : vector<8x128xf32>
    %606 = arith.mulf %605, %551 : vector<8x128xf32>
    %607 = arith.addf %603, %606 : vector<8x128xf32>
    %608 = arith.truncf %558 : vector<8x128xf32> to vector<8x128xbf16>
    %609 = arith.truncf %565 : vector<8x128xf32> to vector<8x128xbf16>
    %610 = arith.truncf %572 : vector<8x128xf32> to vector<8x128xbf16>
    %611 = arith.truncf %579 : vector<8x128xf32> to vector<8x128xbf16>
    %612 = arith.truncf %586 : vector<8x128xf32> to vector<8x128xbf16>
    %613 = arith.truncf %593 : vector<8x128xf32> to vector<8x128xbf16>
    %614 = arith.truncf %600 : vector<8x128xf32> to vector<8x128xbf16>
    %615 = arith.truncf %607 : vector<8x128xf32> to vector<8x128xbf16>
    %616 = tpu.concatenate %608, %609, %610, %611, %612, %613, %614, %615 in 1 : vector<8x128xbf16>, vector<8x128xbf16>, vector<8x128xbf16>, vector<8x128xbf16>, vector<8x128xbf16>, vector<8x128xbf16>, vector<8x128xbf16>, vector<8x128xbf16> -> vector<8x1024xbf16>
    %c0_185 = arith.constant 0 : index
    %c0_186 = arith.constant 0 : index
    %617 = vector.load %arg5[%c0_185, %c0_186] : memref<1024x128xbf16, #tpu.memory_space<vmem>>, vector<1024x128xbf16>
    %cst_187 = arith.constant dense<0.000000e+00> : vector<8x128xf32>
    %618 = tpu.matmul %616, %617, %cst_187 {dimension_numbers = #tpu.dot_dimension_numbers<[1], [0], [0], [1], [0, 0, 1, 1], [], []>} : vector<8x1024xbf16>, vector<1024x128xbf16>, vector<8x128xf32> -> vector<8x128xf32>
    %619 = arith.addf %319, %618 : vector<8x128xf32>
    %620 = math.tanh %619 : vector<8x128xf32>
    %621 = arith.negf %620 : vector<8x128xf32>
    %622 = math.exp %621 : vector<8x128xf32>
    %cst_188 = arith.constant 1.000000e+00 : f32
    %623 = vector.broadcast %cst_188 : f32 to vector<8x128xf32>
    %624 = arith.addf %623, %622 : vector<8x128xf32>
    %625 = arith.divf %623, %624 : vector<8x128xf32>
    %626 = arith.mulf %620, %625 : vector<8x128xf32>
    %627 = arith.truncf %626 : vector<8x128xf32> to vector<8x128xbf16>
    %c0_189 = arith.constant 0 : index
    %c0_190 = arith.constant 0 : index
    %628 = vector.load %arg4[%c0_189, %c0_190] : memref<128x128xbf16, #tpu.memory_space<vmem>>, vector<128x128xbf16>
    %cst_191 = arith.constant dense<0.000000e+00> : vector<8x128xf32>
    %629 = tpu.matmul %627, %628, %cst_191 {dimension_numbers = #tpu.dot_dimension_numbers<[1], [0], [0], [1], [0, 0, 1, 1], [], []>} : vector<8x128xbf16>, vector<128x128xbf16>, vector<8x128xf32> -> vector<8x128xf32>
    %cst_192 = arith.constant -2.200000e+00 : f32
    %630 = vector.broadcast %cst_192 : f32 to vector<8x128xf32>
    %631 = arith.subf %620, %630 : vector<8x128xf32>
    %cst_193 = arith.constant -1.800000e+00 : f32
    %632 = vector.broadcast %cst_193 : f32 to vector<8x128xf32>
    %633 = arith.subf %620, %632 : vector<8x128xf32>
    %cst_194 = arith.constant -1.400000e+00 : f32
    %634 = vector.broadcast %cst_194 : f32 to vector<8x128xf32>
    %635 = arith.subf %620, %634 : vector<8x128xf32>
    %cst_195 = arith.constant -1.000000e+00 : f32
    %636 = vector.broadcast %cst_195 : f32 to vector<8x128xf32>
    %637 = arith.subf %620, %636 : vector<8x128xf32>
    %cst_196 = arith.constant -6.000000e-01 : f32
    %638 = vector.broadcast %cst_196 : f32 to vector<8x128xf32>
    %639 = arith.subf %620, %638 : vector<8x128xf32>
    %cst_197 = arith.constant -0.199999988 : f32
    %640 = vector.broadcast %cst_197 : f32 to vector<8x128xf32>
    %641 = arith.subf %620, %640 : vector<8x128xf32>
    %cst_198 = arith.constant 0.200000048 : f32
    %642 = vector.broadcast %cst_198 : f32 to vector<8x128xf32>
    %643 = arith.subf %620, %642 : vector<8x128xf32>
    %cst_199 = arith.constant 6.000000e-01 : f32
    %644 = vector.broadcast %cst_199 : f32 to vector<8x128xf32>
    %645 = arith.subf %620, %644 : vector<8x128xf32>
    %cst_200 = arith.constant 1.000000e+00 : f32
    %646 = vector.broadcast %cst_200 : f32 to vector<8x128xf32>
    %647 = arith.subf %620, %646 : vector<8x128xf32>
    %cst_201 = arith.constant 1.4000001 : f32
    %648 = vector.broadcast %cst_201 : f32 to vector<8x128xf32>
    %649 = arith.subf %620, %648 : vector<8x128xf32>
    %cst_202 = arith.constant 1.800000e+00 : f32
    %650 = vector.broadcast %cst_202 : f32 to vector<8x128xf32>
    %651 = arith.subf %620, %650 : vector<8x128xf32>
    %cst_203 = arith.constant 0.000000e+00 : f32
    %652 = vector.broadcast %cst_203 : f32 to vector<8x128xf32>
    %653 = arith.cmpf oge, %631, %652 : vector<8x128xf32>
    %cst_204 = arith.constant 4.000000e-01 : f32
    %654 = vector.broadcast %cst_204 : f32 to vector<8x128xf32>
    %655 = arith.cmpf olt, %631, %654 : vector<8x128xf32>
    %656 = arith.andi %653, %655 : vector<8x128xi1>
    %657 = arith.extui %656 : vector<8x128xi1> to vector<8x128xi32>
    %658 = arith.sitofp %657 : vector<8x128xi32> to vector<8x128xf32>
    %cst_205 = arith.constant 0.000000e+00 : f32
    %659 = vector.broadcast %cst_205 : f32 to vector<8x128xf32>
    %660 = arith.cmpf oge, %633, %659 : vector<8x128xf32>
    %cst_206 = arith.constant 4.000000e-01 : f32
    %661 = vector.broadcast %cst_206 : f32 to vector<8x128xf32>
    %662 = arith.cmpf olt, %633, %661 : vector<8x128xf32>
    %663 = arith.andi %660, %662 : vector<8x128xi1>
    %664 = arith.extui %663 : vector<8x128xi1> to vector<8x128xi32>
    %665 = arith.sitofp %664 : vector<8x128xi32> to vector<8x128xf32>
    %cst_207 = arith.constant 0.000000e+00 : f32
    %666 = vector.broadcast %cst_207 : f32 to vector<8x128xf32>
    %667 = arith.cmpf oge, %635, %666 : vector<8x128xf32>
    %cst_208 = arith.constant 4.000000e-01 : f32
    %668 = vector.broadcast %cst_208 : f32 to vector<8x128xf32>
    %669 = arith.cmpf olt, %635, %668 : vector<8x128xf32>
    %670 = arith.andi %667, %669 : vector<8x128xi1>
    %671 = arith.extui %670 : vector<8x128xi1> to vector<8x128xi32>
    %672 = arith.sitofp %671 : vector<8x128xi32> to vector<8x128xf32>
    %cst_209 = arith.constant 0.000000e+00 : f32
    %673 = vector.broadcast %cst_209 : f32 to vector<8x128xf32>
    %674 = arith.cmpf oge, %637, %673 : vector<8x128xf32>
    %cst_210 = arith.constant 4.000000e-01 : f32
    %675 = vector.broadcast %cst_210 : f32 to vector<8x128xf32>
    %676 = arith.cmpf olt, %637, %675 : vector<8x128xf32>
    %677 = arith.andi %674, %676 : vector<8x128xi1>
    %678 = arith.extui %677 : vector<8x128xi1> to vector<8x128xi32>
    %679 = arith.sitofp %678 : vector<8x128xi32> to vector<8x128xf32>
    %cst_211 = arith.constant 0.000000e+00 : f32
    %680 = vector.broadcast %cst_211 : f32 to vector<8x128xf32>
    %681 = arith.cmpf oge, %639, %680 : vector<8x128xf32>
    %cst_212 = arith.constant 4.000000e-01 : f32
    %682 = vector.broadcast %cst_212 : f32 to vector<8x128xf32>
    %683 = arith.cmpf olt, %639, %682 : vector<8x128xf32>
    %684 = arith.andi %681, %683 : vector<8x128xi1>
    %685 = arith.extui %684 : vector<8x128xi1> to vector<8x128xi32>
    %686 = arith.sitofp %685 : vector<8x128xi32> to vector<8x128xf32>
    %cst_213 = arith.constant 0.000000e+00 : f32
    %687 = vector.broadcast %cst_213 : f32 to vector<8x128xf32>
    %688 = arith.cmpf oge, %641, %687 : vector<8x128xf32>
    %cst_214 = arith.constant 4.000000e-01 : f32
    %689 = vector.broadcast %cst_214 : f32 to vector<8x128xf32>
    %690 = arith.cmpf olt, %641, %689 : vector<8x128xf32>
    %691 = arith.andi %688, %690 : vector<8x128xi1>
    %692 = arith.extui %691 : vector<8x128xi1> to vector<8x128xi32>
    %693 = arith.sitofp %692 : vector<8x128xi32> to vector<8x128xf32>
    %cst_215 = arith.constant 0.000000e+00 : f32
    %694 = vector.broadcast %cst_215 : f32 to vector<8x128xf32>
    %695 = arith.cmpf oge, %643, %694 : vector<8x128xf32>
    %cst_216 = arith.constant 4.000000e-01 : f32
    %696 = vector.broadcast %cst_216 : f32 to vector<8x128xf32>
    %697 = arith.cmpf olt, %643, %696 : vector<8x128xf32>
    %698 = arith.andi %695, %697 : vector<8x128xi1>
    %699 = arith.extui %698 : vector<8x128xi1> to vector<8x128xi32>
    %700 = arith.sitofp %699 : vector<8x128xi32> to vector<8x128xf32>
    %cst_217 = arith.constant 0.000000e+00 : f32
    %701 = vector.broadcast %cst_217 : f32 to vector<8x128xf32>
    %702 = arith.cmpf oge, %645, %701 : vector<8x128xf32>
    %cst_218 = arith.constant 4.000000e-01 : f32
    %703 = vector.broadcast %cst_218 : f32 to vector<8x128xf32>
    %704 = arith.cmpf olt, %645, %703 : vector<8x128xf32>
    %705 = arith.andi %702, %704 : vector<8x128xi1>
    %706 = arith.extui %705 : vector<8x128xi1> to vector<8x128xi32>
    %707 = arith.sitofp %706 : vector<8x128xi32> to vector<8x128xf32>
    %cst_219 = arith.constant 0.000000e+00 : f32
    %708 = vector.broadcast %cst_219 : f32 to vector<8x128xf32>
    %709 = arith.cmpf oge, %647, %708 : vector<8x128xf32>
    %cst_220 = arith.constant 4.000000e-01 : f32
    %710 = vector.broadcast %cst_220 : f32 to vector<8x128xf32>
    %711 = arith.cmpf olt, %647, %710 : vector<8x128xf32>
    %712 = arith.andi %709, %711 : vector<8x128xi1>
    %713 = arith.extui %712 : vector<8x128xi1> to vector<8x128xi32>
    %714 = arith.sitofp %713 : vector<8x128xi32> to vector<8x128xf32>
    %cst_221 = arith.constant 0.000000e+00 : f32
    %715 = vector.broadcast %cst_221 : f32 to vector<8x128xf32>
    %716 = arith.cmpf oge, %649, %715 : vector<8x128xf32>
    %cst_222 = arith.constant 4.000000e-01 : f32
    %717 = vector.broadcast %cst_222 : f32 to vector<8x128xf32>
    %718 = arith.cmpf olt, %649, %717 : vector<8x128xf32>
    %719 = arith.andi %716, %718 : vector<8x128xi1>
    %720 = arith.extui %719 : vector<8x128xi1> to vector<8x128xi32>
    %721 = arith.sitofp %720 : vector<8x128xi32> to vector<8x128xf32>
    %cst_223 = arith.constant 0.000000e+00 : f32
    %722 = vector.broadcast %cst_223 : f32 to vector<8x128xf32>
    %723 = arith.cmpf oge, %651, %722 : vector<8x128xf32>
    %cst_224 = arith.constant 4.000000e-01 : f32
    %724 = vector.broadcast %cst_224 : f32 to vector<8x128xf32>
    %725 = arith.cmpf olt, %651, %724 : vector<8x128xf32>
    %726 = arith.andi %723, %725 : vector<8x128xi1>
    %727 = arith.extui %726 : vector<8x128xi1> to vector<8x128xi32>
    %728 = arith.sitofp %727 : vector<8x128xi32> to vector<8x128xf32>
    %cst_225 = arith.constant 2.500000e+00 : f32
    %729 = vector.broadcast %cst_225 : f32 to vector<8x128xf32>
    %730 = arith.mulf %631, %729 : vector<8x128xf32>
    %731 = arith.mulf %730, %658 : vector<8x128xf32>
    %cst_226 = arith.constant 2.000000e+00 : f32
    %732 = vector.broadcast %cst_226 : f32 to vector<8x128xf32>
    %733 = arith.subf %732, %730 : vector<8x128xf32>
    %734 = arith.mulf %733, %665 : vector<8x128xf32>
    %735 = arith.addf %731, %734 : vector<8x128xf32>
    %cst_227 = arith.constant 2.500000e+00 : f32
    %736 = vector.broadcast %cst_227 : f32 to vector<8x128xf32>
    %737 = arith.mulf %633, %736 : vector<8x128xf32>
    %738 = arith.mulf %737, %665 : vector<8x128xf32>
    %cst_228 = arith.constant 2.000000e+00 : f32
    %739 = vector.broadcast %cst_228 : f32 to vector<8x128xf32>
    %740 = arith.subf %739, %737 : vector<8x128xf32>
    %741 = arith.mulf %740, %672 : vector<8x128xf32>
    %742 = arith.addf %738, %741 : vector<8x128xf32>
    %cst_229 = arith.constant 2.500000e+00 : f32
    %743 = vector.broadcast %cst_229 : f32 to vector<8x128xf32>
    %744 = arith.mulf %635, %743 : vector<8x128xf32>
    %745 = arith.mulf %744, %672 : vector<8x128xf32>
    %cst_230 = arith.constant 2.000000e+00 : f32
    %746 = vector.broadcast %cst_230 : f32 to vector<8x128xf32>
    %747 = arith.subf %746, %744 : vector<8x128xf32>
    %748 = arith.mulf %747, %679 : vector<8x128xf32>
    %749 = arith.addf %745, %748 : vector<8x128xf32>
    %cst_231 = arith.constant 2.500000e+00 : f32
    %750 = vector.broadcast %cst_231 : f32 to vector<8x128xf32>
    %751 = arith.mulf %637, %750 : vector<8x128xf32>
    %752 = arith.mulf %751, %679 : vector<8x128xf32>
    %cst_232 = arith.constant 2.000000e+00 : f32
    %753 = vector.broadcast %cst_232 : f32 to vector<8x128xf32>
    %754 = arith.subf %753, %751 : vector<8x128xf32>
    %755 = arith.mulf %754, %686 : vector<8x128xf32>
    %756 = arith.addf %752, %755 : vector<8x128xf32>
    %cst_233 = arith.constant 2.500000e+00 : f32
    %757 = vector.broadcast %cst_233 : f32 to vector<8x128xf32>
    %758 = arith.mulf %639, %757 : vector<8x128xf32>
    %759 = arith.mulf %758, %686 : vector<8x128xf32>
    %cst_234 = arith.constant 2.000000e+00 : f32
    %760 = vector.broadcast %cst_234 : f32 to vector<8x128xf32>
    %761 = arith.subf %760, %758 : vector<8x128xf32>
    %762 = arith.mulf %761, %693 : vector<8x128xf32>
    %763 = arith.addf %759, %762 : vector<8x128xf32>
    %cst_235 = arith.constant 2.500000e+00 : f32
    %764 = vector.broadcast %cst_235 : f32 to vector<8x128xf32>
    %765 = arith.mulf %641, %764 : vector<8x128xf32>
    %766 = arith.mulf %765, %693 : vector<8x128xf32>
    %cst_236 = arith.constant 2.000000e+00 : f32
    %767 = vector.broadcast %cst_236 : f32 to vector<8x128xf32>
    %768 = arith.subf %767, %765 : vector<8x128xf32>
    %769 = arith.mulf %768, %700 : vector<8x128xf32>
    %770 = arith.addf %766, %769 : vector<8x128xf32>
    %cst_237 = arith.constant 2.500000e+00 : f32
    %771 = vector.broadcast %cst_237 : f32 to vector<8x128xf32>
    %772 = arith.mulf %643, %771 : vector<8x128xf32>
    %773 = arith.mulf %772, %700 : vector<8x128xf32>
    %cst_238 = arith.constant 2.000000e+00 : f32
    %774 = vector.broadcast %cst_238 : f32 to vector<8x128xf32>
    %775 = arith.subf %774, %772 : vector<8x128xf32>
    %776 = arith.mulf %775, %707 : vector<8x128xf32>
    %777 = arith.addf %773, %776 : vector<8x128xf32>
    %cst_239 = arith.constant 2.500000e+00 : f32
    %778 = vector.broadcast %cst_239 : f32 to vector<8x128xf32>
    %779 = arith.mulf %645, %778 : vector<8x128xf32>
    %780 = arith.mulf %779, %707 : vector<8x128xf32>
    %cst_240 = arith.constant 2.000000e+00 : f32
    %781 = vector.broadcast %cst_240 : f32 to vector<8x128xf32>
    %782 = arith.subf %781, %779 : vector<8x128xf32>
    %783 = arith.mulf %782, %714 : vector<8x128xf32>
    %784 = arith.addf %780, %783 : vector<8x128xf32>
    %cst_241 = arith.constant 2.500000e+00 : f32
    %785 = vector.broadcast %cst_241 : f32 to vector<8x128xf32>
    %786 = arith.mulf %647, %785 : vector<8x128xf32>
    %787 = arith.mulf %786, %714 : vector<8x128xf32>
    %cst_242 = arith.constant 2.000000e+00 : f32
    %788 = vector.broadcast %cst_242 : f32 to vector<8x128xf32>
    %789 = arith.subf %788, %786 : vector<8x128xf32>
    %790 = arith.mulf %789, %721 : vector<8x128xf32>
    %791 = arith.addf %787, %790 : vector<8x128xf32>
    %cst_243 = arith.constant 2.500000e+00 : f32
    %792 = vector.broadcast %cst_243 : f32 to vector<8x128xf32>
    %793 = arith.mulf %649, %792 : vector<8x128xf32>
    %794 = arith.mulf %793, %721 : vector<8x128xf32>
    %cst_244 = arith.constant 2.000000e+00 : f32
    %795 = vector.broadcast %cst_244 : f32 to vector<8x128xf32>
    %796 = arith.subf %795, %793 : vector<8x128xf32>
    %797 = arith.mulf %796, %728 : vector<8x128xf32>
    %798 = arith.addf %794, %797 : vector<8x128xf32>
    %cst_245 = arith.constant 1.250000e+00 : f32
    %799 = vector.broadcast %cst_245 : f32 to vector<8x128xf32>
    %800 = arith.mulf %631, %799 : vector<8x128xf32>
    %801 = arith.mulf %800, %735 : vector<8x128xf32>
    %cst_246 = arith.constant 1.500000e+00 : f32
    %802 = vector.broadcast %cst_246 : f32 to vector<8x128xf32>
    %803 = arith.subf %802, %800 : vector<8x128xf32>
    %804 = arith.mulf %803, %742 : vector<8x128xf32>
    %805 = arith.addf %801, %804 : vector<8x128xf32>
    %cst_247 = arith.constant 1.250000e+00 : f32
    %806 = vector.broadcast %cst_247 : f32 to vector<8x128xf32>
    %807 = arith.mulf %633, %806 : vector<8x128xf32>
    %808 = arith.mulf %807, %742 : vector<8x128xf32>
    %cst_248 = arith.constant 1.500000e+00 : f32
    %809 = vector.broadcast %cst_248 : f32 to vector<8x128xf32>
    %810 = arith.subf %809, %807 : vector<8x128xf32>
    %811 = arith.mulf %810, %749 : vector<8x128xf32>
    %812 = arith.addf %808, %811 : vector<8x128xf32>
    %cst_249 = arith.constant 1.250000e+00 : f32
    %813 = vector.broadcast %cst_249 : f32 to vector<8x128xf32>
    %814 = arith.mulf %635, %813 : vector<8x128xf32>
    %815 = arith.mulf %814, %749 : vector<8x128xf32>
    %cst_250 = arith.constant 1.500000e+00 : f32
    %816 = vector.broadcast %cst_250 : f32 to vector<8x128xf32>
    %817 = arith.subf %816, %814 : vector<8x128xf32>
    %818 = arith.mulf %817, %756 : vector<8x128xf32>
    %819 = arith.addf %815, %818 : vector<8x128xf32>
    %cst_251 = arith.constant 1.250000e+00 : f32
    %820 = vector.broadcast %cst_251 : f32 to vector<8x128xf32>
    %821 = arith.mulf %637, %820 : vector<8x128xf32>
    %822 = arith.mulf %821, %756 : vector<8x128xf32>
    %cst_252 = arith.constant 1.500000e+00 : f32
    %823 = vector.broadcast %cst_252 : f32 to vector<8x128xf32>
    %824 = arith.subf %823, %821 : vector<8x128xf32>
    %825 = arith.mulf %824, %763 : vector<8x128xf32>
    %826 = arith.addf %822, %825 : vector<8x128xf32>
    %cst_253 = arith.constant 1.250000e+00 : f32
    %827 = vector.broadcast %cst_253 : f32 to vector<8x128xf32>
    %828 = arith.mulf %639, %827 : vector<8x128xf32>
    %829 = arith.mulf %828, %763 : vector<8x128xf32>
    %cst_254 = arith.constant 1.500000e+00 : f32
    %830 = vector.broadcast %cst_254 : f32 to vector<8x128xf32>
    %831 = arith.subf %830, %828 : vector<8x128xf32>
    %832 = arith.mulf %831, %770 : vector<8x128xf32>
    %833 = arith.addf %829, %832 : vector<8x128xf32>
    %cst_255 = arith.constant 1.250000e+00 : f32
    %834 = vector.broadcast %cst_255 : f32 to vector<8x128xf32>
    %835 = arith.mulf %641, %834 : vector<8x128xf32>
    %836 = arith.mulf %835, %770 : vector<8x128xf32>
    %cst_256 = arith.constant 1.500000e+00 : f32
    %837 = vector.broadcast %cst_256 : f32 to vector<8x128xf32>
    %838 = arith.subf %837, %835 : vector<8x128xf32>
    %839 = arith.mulf %838, %777 : vector<8x128xf32>
    %840 = arith.addf %836, %839 : vector<8x128xf32>
    %cst_257 = arith.constant 1.250000e+00 : f32
    %841 = vector.broadcast %cst_257 : f32 to vector<8x128xf32>
    %842 = arith.mulf %643, %841 : vector<8x128xf32>
    %843 = arith.mulf %842, %777 : vector<8x128xf32>
    %cst_258 = arith.constant 1.500000e+00 : f32
    %844 = vector.broadcast %cst_258 : f32 to vector<8x128xf32>
    %845 = arith.subf %844, %842 : vector<8x128xf32>
    %846 = arith.mulf %845, %784 : vector<8x128xf32>
    %847 = arith.addf %843, %846 : vector<8x128xf32>
    %cst_259 = arith.constant 1.250000e+00 : f32
    %848 = vector.broadcast %cst_259 : f32 to vector<8x128xf32>
    %849 = arith.mulf %645, %848 : vector<8x128xf32>
    %850 = arith.mulf %849, %784 : vector<8x128xf32>
    %cst_260 = arith.constant 1.500000e+00 : f32
    %851 = vector.broadcast %cst_260 : f32 to vector<8x128xf32>
    %852 = arith.subf %851, %849 : vector<8x128xf32>
    %853 = arith.mulf %852, %791 : vector<8x128xf32>
    %854 = arith.addf %850, %853 : vector<8x128xf32>
    %cst_261 = arith.constant 1.250000e+00 : f32
    %855 = vector.broadcast %cst_261 : f32 to vector<8x128xf32>
    %856 = arith.mulf %647, %855 : vector<8x128xf32>
    %857 = arith.mulf %856, %791 : vector<8x128xf32>
    %cst_262 = arith.constant 1.500000e+00 : f32
    %858 = vector.broadcast %cst_262 : f32 to vector<8x128xf32>
    %859 = arith.subf %858, %856 : vector<8x128xf32>
    %860 = arith.mulf %859, %798 : vector<8x128xf32>
    %861 = arith.addf %857, %860 : vector<8x128xf32>
    %cst_263 = arith.constant 0.833333313 : f32
    %862 = vector.broadcast %cst_263 : f32 to vector<8x128xf32>
    %863 = arith.mulf %631, %862 : vector<8x128xf32>
    %864 = arith.mulf %863, %805 : vector<8x128xf32>
    %cst_264 = arith.constant 1.33333337 : f32
    %865 = vector.broadcast %cst_264 : f32 to vector<8x128xf32>
    %866 = arith.subf %865, %863 : vector<8x128xf32>
    %867 = arith.mulf %866, %812 : vector<8x128xf32>
    %868 = arith.addf %864, %867 : vector<8x128xf32>
    %cst_265 = arith.constant 0.833333313 : f32
    %869 = vector.broadcast %cst_265 : f32 to vector<8x128xf32>
    %870 = arith.mulf %633, %869 : vector<8x128xf32>
    %871 = arith.mulf %870, %812 : vector<8x128xf32>
    %cst_266 = arith.constant 1.33333337 : f32
    %872 = vector.broadcast %cst_266 : f32 to vector<8x128xf32>
    %873 = arith.subf %872, %870 : vector<8x128xf32>
    %874 = arith.mulf %873, %819 : vector<8x128xf32>
    %875 = arith.addf %871, %874 : vector<8x128xf32>
    %cst_267 = arith.constant 0.833333313 : f32
    %876 = vector.broadcast %cst_267 : f32 to vector<8x128xf32>
    %877 = arith.mulf %635, %876 : vector<8x128xf32>
    %878 = arith.mulf %877, %819 : vector<8x128xf32>
    %cst_268 = arith.constant 1.33333337 : f32
    %879 = vector.broadcast %cst_268 : f32 to vector<8x128xf32>
    %880 = arith.subf %879, %877 : vector<8x128xf32>
    %881 = arith.mulf %880, %826 : vector<8x128xf32>
    %882 = arith.addf %878, %881 : vector<8x128xf32>
    %cst_269 = arith.constant 0.833333313 : f32
    %883 = vector.broadcast %cst_269 : f32 to vector<8x128xf32>
    %884 = arith.mulf %637, %883 : vector<8x128xf32>
    %885 = arith.mulf %884, %826 : vector<8x128xf32>
    %cst_270 = arith.constant 1.33333337 : f32
    %886 = vector.broadcast %cst_270 : f32 to vector<8x128xf32>
    %887 = arith.subf %886, %884 : vector<8x128xf32>
    %888 = arith.mulf %887, %833 : vector<8x128xf32>
    %889 = arith.addf %885, %888 : vector<8x128xf32>
    %cst_271 = arith.constant 0.833333313 : f32
    %890 = vector.broadcast %cst_271 : f32 to vector<8x128xf32>
    %891 = arith.mulf %639, %890 : vector<8x128xf32>
    %892 = arith.mulf %891, %833 : vector<8x128xf32>
    %cst_272 = arith.constant 1.33333337 : f32
    %893 = vector.broadcast %cst_272 : f32 to vector<8x128xf32>
    %894 = arith.subf %893, %891 : vector<8x128xf32>
    %895 = arith.mulf %894, %840 : vector<8x128xf32>
    %896 = arith.addf %892, %895 : vector<8x128xf32>
    %cst_273 = arith.constant 0.833333313 : f32
    %897 = vector.broadcast %cst_273 : f32 to vector<8x128xf32>
    %898 = arith.mulf %641, %897 : vector<8x128xf32>
    %899 = arith.mulf %898, %840 : vector<8x128xf32>
    %cst_274 = arith.constant 1.33333337 : f32
    %900 = vector.broadcast %cst_274 : f32 to vector<8x128xf32>
    %901 = arith.subf %900, %898 : vector<8x128xf32>
    %902 = arith.mulf %901, %847 : vector<8x128xf32>
    %903 = arith.addf %899, %902 : vector<8x128xf32>
    %cst_275 = arith.constant 0.833333313 : f32
    %904 = vector.broadcast %cst_275 : f32 to vector<8x128xf32>
    %905 = arith.mulf %643, %904 : vector<8x128xf32>
    %906 = arith.mulf %905, %847 : vector<8x128xf32>
    %cst_276 = arith.constant 1.33333337 : f32
    %907 = vector.broadcast %cst_276 : f32 to vector<8x128xf32>
    %908 = arith.subf %907, %905 : vector<8x128xf32>
    %909 = arith.mulf %908, %854 : vector<8x128xf32>
    %910 = arith.addf %906, %909 : vector<8x128xf32>
    %cst_277 = arith.constant 0.833333313 : f32
    %911 = vector.broadcast %cst_277 : f32 to vector<8x128xf32>
    %912 = arith.mulf %645, %911 : vector<8x128xf32>
    %913 = arith.mulf %912, %854 : vector<8x128xf32>
    %cst_278 = arith.constant 1.33333337 : f32
    %914 = vector.broadcast %cst_278 : f32 to vector<8x128xf32>
    %915 = arith.subf %914, %912 : vector<8x128xf32>
    %916 = arith.mulf %915, %861 : vector<8x128xf32>
    %917 = arith.addf %913, %916 : vector<8x128xf32>
    %918 = arith.truncf %868 : vector<8x128xf32> to vector<8x128xbf16>
    %919 = arith.truncf %875 : vector<8x128xf32> to vector<8x128xbf16>
    %920 = arith.truncf %882 : vector<8x128xf32> to vector<8x128xbf16>
    %921 = arith.truncf %889 : vector<8x128xf32> to vector<8x128xbf16>
    %922 = arith.truncf %896 : vector<8x128xf32> to vector<8x128xbf16>
    %923 = arith.truncf %903 : vector<8x128xf32> to vector<8x128xbf16>
    %924 = arith.truncf %910 : vector<8x128xf32> to vector<8x128xbf16>
    %925 = arith.truncf %917 : vector<8x128xf32> to vector<8x128xbf16>
    %926 = tpu.concatenate %918, %919, %920, %921, %922, %923, %924, %925 in 1 : vector<8x128xbf16>, vector<8x128xbf16>, vector<8x128xbf16>, vector<8x128xbf16>, vector<8x128xbf16>, vector<8x128xbf16>, vector<8x128xbf16>, vector<8x128xbf16> -> vector<8x1024xbf16>
    %c0_279 = arith.constant 0 : index
    %c0_280 = arith.constant 0 : index
    %927 = vector.load %arg5[%c0_279, %c0_280] : memref<1024x128xbf16, #tpu.memory_space<vmem>>, vector<1024x128xbf16>
    %cst_281 = arith.constant dense<0.000000e+00> : vector<8x128xf32>
    %928 = tpu.matmul %926, %927, %cst_281 {dimension_numbers = #tpu.dot_dimension_numbers<[1], [0], [0], [1], [0, 0, 1, 1], [], []>} : vector<8x1024xbf16>, vector<1024x128xbf16>, vector<8x128xf32> -> vector<8x128xf32>
    %929 = arith.addf %629, %928 : vector<8x128xf32>
    %930 = arith.negf %929 : vector<8x128xf32>
    %931 = math.exp %930 : vector<8x128xf32>
    %cst_282 = arith.constant 1.000000e+00 : f32
    %932 = vector.broadcast %cst_282 : f32 to vector<8x128xf32>
    %933 = arith.addf %932, %931 : vector<8x128xf32>
    %934 = arith.divf %932, %933 : vector<8x128xf32>
    %935 = arith.mulf %929, %934 : vector<8x128xf32>
    %936 = arith.truncf %935 : vector<8x128xf32> to vector<8x128xbf16>
    %c0_283 = arith.constant 0 : index
    %c0_284 = arith.constant 0 : index
    %937 = vector.load %arg6[%c0_283, %c0_284] : memref<128x128xbf16, #tpu.memory_space<vmem>>, vector<128x128xbf16>
    %cst_285 = arith.constant dense<0.000000e+00> : vector<8x128xf32>
    %938 = tpu.matmul %936, %937, %cst_285 {dimension_numbers = #tpu.dot_dimension_numbers<[1], [0], [0], [1], [0, 0, 1, 1], [], []>} : vector<8x128xbf16>, vector<128x128xbf16>, vector<8x128xf32> -> vector<8x128xf32>
    %cst_286 = arith.constant -2.200000e+00 : f32
    %939 = vector.broadcast %cst_286 : f32 to vector<8x128xf32>
    %940 = arith.subf %929, %939 : vector<8x128xf32>
    %cst_287 = arith.constant -1.800000e+00 : f32
    %941 = vector.broadcast %cst_287 : f32 to vector<8x128xf32>
    %942 = arith.subf %929, %941 : vector<8x128xf32>
    %cst_288 = arith.constant -1.400000e+00 : f32
    %943 = vector.broadcast %cst_288 : f32 to vector<8x128xf32>
    %944 = arith.subf %929, %943 : vector<8x128xf32>
    %cst_289 = arith.constant -1.000000e+00 : f32
    %945 = vector.broadcast %cst_289 : f32 to vector<8x128xf32>
    %946 = arith.subf %929, %945 : vector<8x128xf32>
    %cst_290 = arith.constant -6.000000e-01 : f32
    %947 = vector.broadcast %cst_290 : f32 to vector<8x128xf32>
    %948 = arith.subf %929, %947 : vector<8x128xf32>
    %cst_291 = arith.constant -0.199999988 : f32
    %949 = vector.broadcast %cst_291 : f32 to vector<8x128xf32>
    %950 = arith.subf %929, %949 : vector<8x128xf32>
    %cst_292 = arith.constant 0.200000048 : f32
    %951 = vector.broadcast %cst_292 : f32 to vector<8x128xf32>
    %952 = arith.subf %929, %951 : vector<8x128xf32>
    %cst_293 = arith.constant 6.000000e-01 : f32
    %953 = vector.broadcast %cst_293 : f32 to vector<8x128xf32>
    %954 = arith.subf %929, %953 : vector<8x128xf32>
    %cst_294 = arith.constant 1.000000e+00 : f32
    %955 = vector.broadcast %cst_294 : f32 to vector<8x128xf32>
    %956 = arith.subf %929, %955 : vector<8x128xf32>
    %cst_295 = arith.constant 1.4000001 : f32
    %957 = vector.broadcast %cst_295 : f32 to vector<8x128xf32>
    %958 = arith.subf %929, %957 : vector<8x128xf32>
    %cst_296 = arith.constant 1.800000e+00 : f32
    %959 = vector.broadcast %cst_296 : f32 to vector<8x128xf32>
    %960 = arith.subf %929, %959 : vector<8x128xf32>
    %cst_297 = arith.constant 0.000000e+00 : f32
    %961 = vector.broadcast %cst_297 : f32 to vector<8x128xf32>
    %962 = arith.cmpf oge, %940, %961 : vector<8x128xf32>
    %cst_298 = arith.constant 4.000000e-01 : f32
    %963 = vector.broadcast %cst_298 : f32 to vector<8x128xf32>
    %964 = arith.cmpf olt, %940, %963 : vector<8x128xf32>
    %965 = arith.andi %962, %964 : vector<8x128xi1>
    %966 = arith.extui %965 : vector<8x128xi1> to vector<8x128xi32>
    %967 = arith.sitofp %966 : vector<8x128xi32> to vector<8x128xf32>
    %cst_299 = arith.constant 0.000000e+00 : f32
    %968 = vector.broadcast %cst_299 : f32 to vector<8x128xf32>
    %969 = arith.cmpf oge, %942, %968 : vector<8x128xf32>
    %cst_300 = arith.constant 4.000000e-01 : f32
    %970 = vector.broadcast %cst_300 : f32 to vector<8x128xf32>
    %971 = arith.cmpf olt, %942, %970 : vector<8x128xf32>
    %972 = arith.andi %969, %971 : vector<8x128xi1>
    %973 = arith.extui %972 : vector<8x128xi1> to vector<8x128xi32>
    %974 = arith.sitofp %973 : vector<8x128xi32> to vector<8x128xf32>
    %cst_301 = arith.constant 0.000000e+00 : f32
    %975 = vector.broadcast %cst_301 : f32 to vector<8x128xf32>
    %976 = arith.cmpf oge, %944, %975 : vector<8x128xf32>
    %cst_302 = arith.constant 4.000000e-01 : f32
    %977 = vector.broadcast %cst_302 : f32 to vector<8x128xf32>
    %978 = arith.cmpf olt, %944, %977 : vector<8x128xf32>
    %979 = arith.andi %976, %978 : vector<8x128xi1>
    %980 = arith.extui %979 : vector<8x128xi1> to vector<8x128xi32>
    %981 = arith.sitofp %980 : vector<8x128xi32> to vector<8x128xf32>
    %cst_303 = arith.constant 0.000000e+00 : f32
    %982 = vector.broadcast %cst_303 : f32 to vector<8x128xf32>
    %983 = arith.cmpf oge, %946, %982 : vector<8x128xf32>
    %cst_304 = arith.constant 4.000000e-01 : f32
    %984 = vector.broadcast %cst_304 : f32 to vector<8x128xf32>
    %985 = arith.cmpf olt, %946, %984 : vector<8x128xf32>
    %986 = arith.andi %983, %985 : vector<8x128xi1>
    %987 = arith.extui %986 : vector<8x128xi1> to vector<8x128xi32>
    %988 = arith.sitofp %987 : vector<8x128xi32> to vector<8x128xf32>
    %cst_305 = arith.constant 0.000000e+00 : f32
    %989 = vector.broadcast %cst_305 : f32 to vector<8x128xf32>
    %990 = arith.cmpf oge, %948, %989 : vector<8x128xf32>
    %cst_306 = arith.constant 4.000000e-01 : f32
    %991 = vector.broadcast %cst_306 : f32 to vector<8x128xf32>
    %992 = arith.cmpf olt, %948, %991 : vector<8x128xf32>
    %993 = arith.andi %990, %992 : vector<8x128xi1>
    %994 = arith.extui %993 : vector<8x128xi1> to vector<8x128xi32>
    %995 = arith.sitofp %994 : vector<8x128xi32> to vector<8x128xf32>
    %cst_307 = arith.constant 0.000000e+00 : f32
    %996 = vector.broadcast %cst_307 : f32 to vector<8x128xf32>
    %997 = arith.cmpf oge, %950, %996 : vector<8x128xf32>
    %cst_308 = arith.constant 4.000000e-01 : f32
    %998 = vector.broadcast %cst_308 : f32 to vector<8x128xf32>
    %999 = arith.cmpf olt, %950, %998 : vector<8x128xf32>
    %1000 = arith.andi %997, %999 : vector<8x128xi1>
    %1001 = arith.extui %1000 : vector<8x128xi1> to vector<8x128xi32>
    %1002 = arith.sitofp %1001 : vector<8x128xi32> to vector<8x128xf32>
    %cst_309 = arith.constant 0.000000e+00 : f32
    %1003 = vector.broadcast %cst_309 : f32 to vector<8x128xf32>
    %1004 = arith.cmpf oge, %952, %1003 : vector<8x128xf32>
    %cst_310 = arith.constant 4.000000e-01 : f32
    %1005 = vector.broadcast %cst_310 : f32 to vector<8x128xf32>
    %1006 = arith.cmpf olt, %952, %1005 : vector<8x128xf32>
    %1007 = arith.andi %1004, %1006 : vector<8x128xi1>
    %1008 = arith.extui %1007 : vector<8x128xi1> to vector<8x128xi32>
    %1009 = arith.sitofp %1008 : vector<8x128xi32> to vector<8x128xf32>
    %cst_311 = arith.constant 0.000000e+00 : f32
    %1010 = vector.broadcast %cst_311 : f32 to vector<8x128xf32>
    %1011 = arith.cmpf oge, %954, %1010 : vector<8x128xf32>
    %cst_312 = arith.constant 4.000000e-01 : f32
    %1012 = vector.broadcast %cst_312 : f32 to vector<8x128xf32>
    %1013 = arith.cmpf olt, %954, %1012 : vector<8x128xf32>
    %1014 = arith.andi %1011, %1013 : vector<8x128xi1>
    %1015 = arith.extui %1014 : vector<8x128xi1> to vector<8x128xi32>
    %1016 = arith.sitofp %1015 : vector<8x128xi32> to vector<8x128xf32>
    %cst_313 = arith.constant 0.000000e+00 : f32
    %1017 = vector.broadcast %cst_313 : f32 to vector<8x128xf32>
    %1018 = arith.cmpf oge, %956, %1017 : vector<8x128xf32>
    %cst_314 = arith.constant 4.000000e-01 : f32
    %1019 = vector.broadcast %cst_314 : f32 to vector<8x128xf32>
    %1020 = arith.cmpf olt, %956, %1019 : vector<8x128xf32>
    %1021 = arith.andi %1018, %1020 : vector<8x128xi1>
    %1022 = arith.extui %1021 : vector<8x128xi1> to vector<8x128xi32>
    %1023 = arith.sitofp %1022 : vector<8x128xi32> to vector<8x128xf32>
    %cst_315 = arith.constant 0.000000e+00 : f32
    %1024 = vector.broadcast %cst_315 : f32 to vector<8x128xf32>
    %1025 = arith.cmpf oge, %958, %1024 : vector<8x128xf32>
    %cst_316 = arith.constant 4.000000e-01 : f32
    %1026 = vector.broadcast %cst_316 : f32 to vector<8x128xf32>
    %1027 = arith.cmpf olt, %958, %1026 : vector<8x128xf32>
    %1028 = arith.andi %1025, %1027 : vector<8x128xi1>
    %1029 = arith.extui %1028 : vector<8x128xi1> to vector<8x128xi32>
    %1030 = arith.sitofp %1029 : vector<8x128xi32> to vector<8x128xf32>
    %cst_317 = arith.constant 0.000000e+00 : f32
    %1031 = vector.broadcast %cst_317 : f32 to vector<8x128xf32>
    %1032 = arith.cmpf oge, %960, %1031 : vector<8x128xf32>
    %cst_318 = arith.constant 4.000000e-01 : f32
    %1033 = vector.broadcast %cst_318 : f32 to vector<8x128xf32>
    %1034 = arith.cmpf olt, %960, %1033 : vector<8x128xf32>
    %1035 = arith.andi %1032, %1034 : vector<8x128xi1>
    %1036 = arith.extui %1035 : vector<8x128xi1> to vector<8x128xi32>
    %1037 = arith.sitofp %1036 : vector<8x128xi32> to vector<8x128xf32>
    %cst_319 = arith.constant 2.500000e+00 : f32
    %1038 = vector.broadcast %cst_319 : f32 to vector<8x128xf32>
    %1039 = arith.mulf %940, %1038 : vector<8x128xf32>
    %1040 = arith.mulf %1039, %967 : vector<8x128xf32>
    %cst_320 = arith.constant 2.000000e+00 : f32
    %1041 = vector.broadcast %cst_320 : f32 to vector<8x128xf32>
    %1042 = arith.subf %1041, %1039 : vector<8x128xf32>
    %1043 = arith.mulf %1042, %974 : vector<8x128xf32>
    %1044 = arith.addf %1040, %1043 : vector<8x128xf32>
    %cst_321 = arith.constant 2.500000e+00 : f32
    %1045 = vector.broadcast %cst_321 : f32 to vector<8x128xf32>
    %1046 = arith.mulf %942, %1045 : vector<8x128xf32>
    %1047 = arith.mulf %1046, %974 : vector<8x128xf32>
    %cst_322 = arith.constant 2.000000e+00 : f32
    %1048 = vector.broadcast %cst_322 : f32 to vector<8x128xf32>
    %1049 = arith.subf %1048, %1046 : vector<8x128xf32>
    %1050 = arith.mulf %1049, %981 : vector<8x128xf32>
    %1051 = arith.addf %1047, %1050 : vector<8x128xf32>
    %cst_323 = arith.constant 2.500000e+00 : f32
    %1052 = vector.broadcast %cst_323 : f32 to vector<8x128xf32>
    %1053 = arith.mulf %944, %1052 : vector<8x128xf32>
    %1054 = arith.mulf %1053, %981 : vector<8x128xf32>
    %cst_324 = arith.constant 2.000000e+00 : f32
    %1055 = vector.broadcast %cst_324 : f32 to vector<8x128xf32>
    %1056 = arith.subf %1055, %1053 : vector<8x128xf32>
    %1057 = arith.mulf %1056, %988 : vector<8x128xf32>
    %1058 = arith.addf %1054, %1057 : vector<8x128xf32>
    %cst_325 = arith.constant 2.500000e+00 : f32
    %1059 = vector.broadcast %cst_325 : f32 to vector<8x128xf32>
    %1060 = arith.mulf %946, %1059 : vector<8x128xf32>
    %1061 = arith.mulf %1060, %988 : vector<8x128xf32>
    %cst_326 = arith.constant 2.000000e+00 : f32
    %1062 = vector.broadcast %cst_326 : f32 to vector<8x128xf32>
    %1063 = arith.subf %1062, %1060 : vector<8x128xf32>
    %1064 = arith.mulf %1063, %995 : vector<8x128xf32>
    %1065 = arith.addf %1061, %1064 : vector<8x128xf32>
    %cst_327 = arith.constant 2.500000e+00 : f32
    %1066 = vector.broadcast %cst_327 : f32 to vector<8x128xf32>
    %1067 = arith.mulf %948, %1066 : vector<8x128xf32>
    %1068 = arith.mulf %1067, %995 : vector<8x128xf32>
    %cst_328 = arith.constant 2.000000e+00 : f32
    %1069 = vector.broadcast %cst_328 : f32 to vector<8x128xf32>
    %1070 = arith.subf %1069, %1067 : vector<8x128xf32>
    %1071 = arith.mulf %1070, %1002 : vector<8x128xf32>
    %1072 = arith.addf %1068, %1071 : vector<8x128xf32>
    %cst_329 = arith.constant 2.500000e+00 : f32
    %1073 = vector.broadcast %cst_329 : f32 to vector<8x128xf32>
    %1074 = arith.mulf %950, %1073 : vector<8x128xf32>
    %1075 = arith.mulf %1074, %1002 : vector<8x128xf32>
    %cst_330 = arith.constant 2.000000e+00 : f32
    %1076 = vector.broadcast %cst_330 : f32 to vector<8x128xf32>
    %1077 = arith.subf %1076, %1074 : vector<8x128xf32>
    %1078 = arith.mulf %1077, %1009 : vector<8x128xf32>
    %1079 = arith.addf %1075, %1078 : vector<8x128xf32>
    %cst_331 = arith.constant 2.500000e+00 : f32
    %1080 = vector.broadcast %cst_331 : f32 to vector<8x128xf32>
    %1081 = arith.mulf %952, %1080 : vector<8x128xf32>
    %1082 = arith.mulf %1081, %1009 : vector<8x128xf32>
    %cst_332 = arith.constant 2.000000e+00 : f32
    %1083 = vector.broadcast %cst_332 : f32 to vector<8x128xf32>
    %1084 = arith.subf %1083, %1081 : vector<8x128xf32>
    %1085 = arith.mulf %1084, %1016 : vector<8x128xf32>
    %1086 = arith.addf %1082, %1085 : vector<8x128xf32>
    %cst_333 = arith.constant 2.500000e+00 : f32
    %1087 = vector.broadcast %cst_333 : f32 to vector<8x128xf32>
    %1088 = arith.mulf %954, %1087 : vector<8x128xf32>
    %1089 = arith.mulf %1088, %1016 : vector<8x128xf32>
    %cst_334 = arith.constant 2.000000e+00 : f32
    %1090 = vector.broadcast %cst_334 : f32 to vector<8x128xf32>
    %1091 = arith.subf %1090, %1088 : vector<8x128xf32>
    %1092 = arith.mulf %1091, %1023 : vector<8x128xf32>
    %1093 = arith.addf %1089, %1092 : vector<8x128xf32>
    %cst_335 = arith.constant 2.500000e+00 : f32
    %1094 = vector.broadcast %cst_335 : f32 to vector<8x128xf32>
    %1095 = arith.mulf %956, %1094 : vector<8x128xf32>
    %1096 = arith.mulf %1095, %1023 : vector<8x128xf32>
    %cst_336 = arith.constant 2.000000e+00 : f32
    %1097 = vector.broadcast %cst_336 : f32 to vector<8x128xf32>
    %1098 = arith.subf %1097, %1095 : vector<8x128xf32>
    %1099 = arith.mulf %1098, %1030 : vector<8x128xf32>
    %1100 = arith.addf %1096, %1099 : vector<8x128xf32>
    %cst_337 = arith.constant 2.500000e+00 : f32
    %1101 = vector.broadcast %cst_337 : f32 to vector<8x128xf32>
    %1102 = arith.mulf %958, %1101 : vector<8x128xf32>
    %1103 = arith.mulf %1102, %1030 : vector<8x128xf32>
    %cst_338 = arith.constant 2.000000e+00 : f32
    %1104 = vector.broadcast %cst_338 : f32 to vector<8x128xf32>
    %1105 = arith.subf %1104, %1102 : vector<8x128xf32>
    %1106 = arith.mulf %1105, %1037 : vector<8x128xf32>
    %1107 = arith.addf %1103, %1106 : vector<8x128xf32>
    %cst_339 = arith.constant 1.250000e+00 : f32
    %1108 = vector.broadcast %cst_339 : f32 to vector<8x128xf32>
    %1109 = arith.mulf %940, %1108 : vector<8x128xf32>
    %1110 = arith.mulf %1109, %1044 : vector<8x128xf32>
    %cst_340 = arith.constant 1.500000e+00 : f32
    %1111 = vector.broadcast %cst_340 : f32 to vector<8x128xf32>
    %1112 = arith.subf %1111, %1109 : vector<8x128xf32>
    %1113 = arith.mulf %1112, %1051 : vector<8x128xf32>
    %1114 = arith.addf %1110, %1113 : vector<8x128xf32>
    %cst_341 = arith.constant 1.250000e+00 : f32
    %1115 = vector.broadcast %cst_341 : f32 to vector<8x128xf32>
    %1116 = arith.mulf %942, %1115 : vector<8x128xf32>
    %1117 = arith.mulf %1116, %1051 : vector<8x128xf32>
    %cst_342 = arith.constant 1.500000e+00 : f32
    %1118 = vector.broadcast %cst_342 : f32 to vector<8x128xf32>
    %1119 = arith.subf %1118, %1116 : vector<8x128xf32>
    %1120 = arith.mulf %1119, %1058 : vector<8x128xf32>
    %1121 = arith.addf %1117, %1120 : vector<8x128xf32>
    %cst_343 = arith.constant 1.250000e+00 : f32
    %1122 = vector.broadcast %cst_343 : f32 to vector<8x128xf32>
    %1123 = arith.mulf %944, %1122 : vector<8x128xf32>
    %1124 = arith.mulf %1123, %1058 : vector<8x128xf32>
    %cst_344 = arith.constant 1.500000e+00 : f32
    %1125 = vector.broadcast %cst_344 : f32 to vector<8x128xf32>
    %1126 = arith.subf %1125, %1123 : vector<8x128xf32>
    %1127 = arith.mulf %1126, %1065 : vector<8x128xf32>
    %1128 = arith.addf %1124, %1127 : vector<8x128xf32>
    %cst_345 = arith.constant 1.250000e+00 : f32
    %1129 = vector.broadcast %cst_345 : f32 to vector<8x128xf32>
    %1130 = arith.mulf %946, %1129 : vector<8x128xf32>
    %1131 = arith.mulf %1130, %1065 : vector<8x128xf32>
    %cst_346 = arith.constant 1.500000e+00 : f32
    %1132 = vector.broadcast %cst_346 : f32 to vector<8x128xf32>
    %1133 = arith.subf %1132, %1130 : vector<8x128xf32>
    %1134 = arith.mulf %1133, %1072 : vector<8x128xf32>
    %1135 = arith.addf %1131, %1134 : vector<8x128xf32>
    %cst_347 = arith.constant 1.250000e+00 : f32
    %1136 = vector.broadcast %cst_347 : f32 to vector<8x128xf32>
    %1137 = arith.mulf %948, %1136 : vector<8x128xf32>
    %1138 = arith.mulf %1137, %1072 : vector<8x128xf32>
    %cst_348 = arith.constant 1.500000e+00 : f32
    %1139 = vector.broadcast %cst_348 : f32 to vector<8x128xf32>
    %1140 = arith.subf %1139, %1137 : vector<8x128xf32>
    %1141 = arith.mulf %1140, %1079 : vector<8x128xf32>
    %1142 = arith.addf %1138, %1141 : vector<8x128xf32>
    %cst_349 = arith.constant 1.250000e+00 : f32
    %1143 = vector.broadcast %cst_349 : f32 to vector<8x128xf32>
    %1144 = arith.mulf %950, %1143 : vector<8x128xf32>
    %1145 = arith.mulf %1144, %1079 : vector<8x128xf32>
    %cst_350 = arith.constant 1.500000e+00 : f32
    %1146 = vector.broadcast %cst_350 : f32 to vector<8x128xf32>
    %1147 = arith.subf %1146, %1144 : vector<8x128xf32>
    %1148 = arith.mulf %1147, %1086 : vector<8x128xf32>
    %1149 = arith.addf %1145, %1148 : vector<8x128xf32>
    %cst_351 = arith.constant 1.250000e+00 : f32
    %1150 = vector.broadcast %cst_351 : f32 to vector<8x128xf32>
    %1151 = arith.mulf %952, %1150 : vector<8x128xf32>
    %1152 = arith.mulf %1151, %1086 : vector<8x128xf32>
    %cst_352 = arith.constant 1.500000e+00 : f32
    %1153 = vector.broadcast %cst_352 : f32 to vector<8x128xf32>
    %1154 = arith.subf %1153, %1151 : vector<8x128xf32>
    %1155 = arith.mulf %1154, %1093 : vector<8x128xf32>
    %1156 = arith.addf %1152, %1155 : vector<8x128xf32>
    %cst_353 = arith.constant 1.250000e+00 : f32
    %1157 = vector.broadcast %cst_353 : f32 to vector<8x128xf32>
    %1158 = arith.mulf %954, %1157 : vector<8x128xf32>
    %1159 = arith.mulf %1158, %1093 : vector<8x128xf32>
    %cst_354 = arith.constant 1.500000e+00 : f32
    %1160 = vector.broadcast %cst_354 : f32 to vector<8x128xf32>
    %1161 = arith.subf %1160, %1158 : vector<8x128xf32>
    %1162 = arith.mulf %1161, %1100 : vector<8x128xf32>
    %1163 = arith.addf %1159, %1162 : vector<8x128xf32>
    %cst_355 = arith.constant 1.250000e+00 : f32
    %1164 = vector.broadcast %cst_355 : f32 to vector<8x128xf32>
    %1165 = arith.mulf %956, %1164 : vector<8x128xf32>
    %1166 = arith.mulf %1165, %1100 : vector<8x128xf32>
    %cst_356 = arith.constant 1.500000e+00 : f32
    %1167 = vector.broadcast %cst_356 : f32 to vector<8x128xf32>
    %1168 = arith.subf %1167, %1165 : vector<8x128xf32>
    %1169 = arith.mulf %1168, %1107 : vector<8x128xf32>
    %1170 = arith.addf %1166, %1169 : vector<8x128xf32>
    %cst_357 = arith.constant 0.833333313 : f32
    %1171 = vector.broadcast %cst_357 : f32 to vector<8x128xf32>
    %1172 = arith.mulf %940, %1171 : vector<8x128xf32>
    %1173 = arith.mulf %1172, %1114 : vector<8x128xf32>
    %cst_358 = arith.constant 1.33333337 : f32
    %1174 = vector.broadcast %cst_358 : f32 to vector<8x128xf32>
    %1175 = arith.subf %1174, %1172 : vector<8x128xf32>
    %1176 = arith.mulf %1175, %1121 : vector<8x128xf32>
    %1177 = arith.addf %1173, %1176 : vector<8x128xf32>
    %cst_359 = arith.constant 0.833333313 : f32
    %1178 = vector.broadcast %cst_359 : f32 to vector<8x128xf32>
    %1179 = arith.mulf %942, %1178 : vector<8x128xf32>
    %1180 = arith.mulf %1179, %1121 : vector<8x128xf32>
    %cst_360 = arith.constant 1.33333337 : f32
    %1181 = vector.broadcast %cst_360 : f32 to vector<8x128xf32>
    %1182 = arith.subf %1181, %1179 : vector<8x128xf32>
    %1183 = arith.mulf %1182, %1128 : vector<8x128xf32>
    %1184 = arith.addf %1180, %1183 : vector<8x128xf32>
    %cst_361 = arith.constant 0.833333313 : f32
    %1185 = vector.broadcast %cst_361 : f32 to vector<8x128xf32>
    %1186 = arith.mulf %944, %1185 : vector<8x128xf32>
    %1187 = arith.mulf %1186, %1128 : vector<8x128xf32>
    %cst_362 = arith.constant 1.33333337 : f32
    %1188 = vector.broadcast %cst_362 : f32 to vector<8x128xf32>
    %1189 = arith.subf %1188, %1186 : vector<8x128xf32>
    %1190 = arith.mulf %1189, %1135 : vector<8x128xf32>
    %1191 = arith.addf %1187, %1190 : vector<8x128xf32>
    %cst_363 = arith.constant 0.833333313 : f32
    %1192 = vector.broadcast %cst_363 : f32 to vector<8x128xf32>
    %1193 = arith.mulf %946, %1192 : vector<8x128xf32>
    %1194 = arith.mulf %1193, %1135 : vector<8x128xf32>
    %cst_364 = arith.constant 1.33333337 : f32
    %1195 = vector.broadcast %cst_364 : f32 to vector<8x128xf32>
    %1196 = arith.subf %1195, %1193 : vector<8x128xf32>
    %1197 = arith.mulf %1196, %1142 : vector<8x128xf32>
    %1198 = arith.addf %1194, %1197 : vector<8x128xf32>
    %cst_365 = arith.constant 0.833333313 : f32
    %1199 = vector.broadcast %cst_365 : f32 to vector<8x128xf32>
    %1200 = arith.mulf %948, %1199 : vector<8x128xf32>
    %1201 = arith.mulf %1200, %1142 : vector<8x128xf32>
    %cst_366 = arith.constant 1.33333337 : f32
    %1202 = vector.broadcast %cst_366 : f32 to vector<8x128xf32>
    %1203 = arith.subf %1202, %1200 : vector<8x128xf32>
    %1204 = arith.mulf %1203, %1149 : vector<8x128xf32>
    %1205 = arith.addf %1201, %1204 : vector<8x128xf32>
    %cst_367 = arith.constant 0.833333313 : f32
    %1206 = vector.broadcast %cst_367 : f32 to vector<8x128xf32>
    %1207 = arith.mulf %950, %1206 : vector<8x128xf32>
    %1208 = arith.mulf %1207, %1149 : vector<8x128xf32>
    %cst_368 = arith.constant 1.33333337 : f32
    %1209 = vector.broadcast %cst_368 : f32 to vector<8x128xf32>
    %1210 = arith.subf %1209, %1207 : vector<8x128xf32>
    %1211 = arith.mulf %1210, %1156 : vector<8x128xf32>
    %1212 = arith.addf %1208, %1211 : vector<8x128xf32>
    %cst_369 = arith.constant 0.833333313 : f32
    %1213 = vector.broadcast %cst_369 : f32 to vector<8x128xf32>
    %1214 = arith.mulf %952, %1213 : vector<8x128xf32>
    %1215 = arith.mulf %1214, %1156 : vector<8x128xf32>
    %cst_370 = arith.constant 1.33333337 : f32
    %1216 = vector.broadcast %cst_370 : f32 to vector<8x128xf32>
    %1217 = arith.subf %1216, %1214 : vector<8x128xf32>
    %1218 = arith.mulf %1217, %1163 : vector<8x128xf32>
    %1219 = arith.addf %1215, %1218 : vector<8x128xf32>
    %cst_371 = arith.constant 0.833333313 : f32
    %1220 = vector.broadcast %cst_371 : f32 to vector<8x128xf32>
    %1221 = arith.mulf %954, %1220 : vector<8x128xf32>
    %1222 = arith.mulf %1221, %1163 : vector<8x128xf32>
    %cst_372 = arith.constant 1.33333337 : f32
    %1223 = vector.broadcast %cst_372 : f32 to vector<8x128xf32>
    %1224 = arith.subf %1223, %1221 : vector<8x128xf32>
    %1225 = arith.mulf %1224, %1170 : vector<8x128xf32>
    %1226 = arith.addf %1222, %1225 : vector<8x128xf32>
    %1227 = arith.truncf %1177 : vector<8x128xf32> to vector<8x128xbf16>
    %1228 = arith.truncf %1184 : vector<8x128xf32> to vector<8x128xbf16>
    %1229 = arith.truncf %1191 : vector<8x128xf32> to vector<8x128xbf16>
    %1230 = arith.truncf %1198 : vector<8x128xf32> to vector<8x128xbf16>
    %1231 = arith.truncf %1205 : vector<8x128xf32> to vector<8x128xbf16>
    %1232 = arith.truncf %1212 : vector<8x128xf32> to vector<8x128xbf16>
    %1233 = arith.truncf %1219 : vector<8x128xf32> to vector<8x128xbf16>
    %1234 = arith.truncf %1226 : vector<8x128xf32> to vector<8x128xbf16>
    %1235 = tpu.concatenate %1227, %1228, %1229, %1230, %1231, %1232, %1233, %1234 in 1 : vector<8x128xbf16>, vector<8x128xbf16>, vector<8x128xbf16>, vector<8x128xbf16>, vector<8x128xbf16>, vector<8x128xbf16>, vector<8x128xbf16>, vector<8x128xbf16> -> vector<8x1024xbf16>
    %c0_373 = arith.constant 0 : index
    %c0_374 = arith.constant 0 : index
    %1236 = vector.load %arg7[%c0_373, %c0_374] : memref<1024x128xbf16, #tpu.memory_space<vmem>>, vector<1024x128xbf16>
    %cst_375 = arith.constant dense<0.000000e+00> : vector<8x128xf32>
    %1237 = tpu.matmul %1235, %1236, %cst_375 {dimension_numbers = #tpu.dot_dimension_numbers<[1], [0], [0], [1], [0, 0, 1, 1], [], []>} : vector<8x1024xbf16>, vector<1024x128xbf16>, vector<8x128xf32> -> vector<8x128xf32>
    %1238 = arith.addf %938, %1237 : vector<8x128xf32>
    %c0_376 = arith.constant 0 : index
    %c0_377 = arith.constant 0 : index
    %1239 = vector.load %arg8[%c0_376, %c0_377] : memref<8x128xf32, #tpu.memory_space<vmem>>, vector<8x128xf32>
    tpu.vector_store %arg8[%c0_376, %c0_377], %1238 {strides = array<i32>} : memref<8x128xf32, #tpu.memory_space<vmem>>, vector<8x128xf32>,
    return
  }
  func.func @transform_0(%arg0: i32) -> (i32, i32) {
    %c0_i32 = arith.constant 0 : i32
    %c0_i32_0 = arith.constant 0 : i32
    return %arg0, %c0_i32 : i32, i32
  }
  func.func @transform_1(%arg0: i32) -> (i32, i32) {
    %c0_i32 = arith.constant 0 : i32
    %c0_i32_0 = arith.constant 0 : i32
    %c0_i32_1 = arith.constant 0 : i32
    return %c0_i32, %c0_i32_0 : i32, i32
  }
  func.func @transform_2(%arg0: i32) -> (i32, i32) {
    %c0_i32 = arith.constant 0 : i32
    %c0_i32_0 = arith.constant 0 : i32
    %c0_i32_1 = arith.constant 0 : i32
    return %c0_i32, %c0_i32_0 : i32, i32
  }
  func.func @transform_3(%arg0: i32) -> (i32, i32) {
    %c0_i32 = arith.constant 0 : i32
    %c0_i32_0 = arith.constant 0 : i32
    %c0_i32_1 = arith.constant 0 : i32
    return %c0_i32, %c0_i32_0 : i32, i32
  }
  func.func @transform_4(%arg0: i32) -> (i32, i32) {
    %c0_i32 = arith.constant 0 : i32
    %c0_i32_0 = arith.constant 0 : i32
    %c0_i32_1 = arith.constant 0 : i32
    return %c0_i32, %c0_i32_0 : i32, i32
  }
  func.func @transform_5(%arg0: i32) -> (i32, i32) {
    %c0_i32 = arith.constant 0 : i32
    %c0_i32_0 = arith.constant 0 : i32
    %c0_i32_1 = arith.constant 0 : i32
    return %c0_i32, %c0_i32_0 : i32, i32
  }
  func.func @transform_6(%arg0: i32) -> (i32, i32) {
    %c0_i32 = arith.constant 0 : i32
    %c0_i32_0 = arith.constant 0 : i32
    %c0_i32_1 = arith.constant 0 : i32
    return %c0_i32, %c0_i32_0 : i32, i32
  }
  func.func @transform_7(%arg0: i32) -> (i32, i32) {
    %c0_i32 = arith.constant 0 : i32
    %c0_i32_0 = arith.constant 0 : i32
    return %arg0, %c0_i32 : i32, i32
  }
}

</mosaic_0001>

<bundles_post_ra>
// kernel: tpu_custom_call.1
= control target key start
LH: loop header
LB: loop body
LE: loop exit
PB: predicated region body
PF: predicated region fallthrough
CT: control target
= control target key end

     0   :  { %12 = vsyncpa [#allocation3], 0  ;;  %s5670_s0 = inlined_call_operand.hbm [shape: f32[8,128], index: 0, kind: input, shape index: {}]   ;;  %s5671_s1 = inlined_call_operand.hbm [shape: bf16[128,128], index: 1, kind: input, shape index: {}]   ;;  %s5672_s2 = inlined_call_operand.hbm [shape: bf16[1024,128], index: 2, kind: input, shape index: {}]   ;;  %s5673_s3 = inlined_call_operand.hbm [shape: bf16[128,128], index: 3, kind: input, shape index: {}]   ;;  %s5674_s4 = inlined_call_operand.hbm [shape: bf16[1024,128], index: 4, kind: input, shape index: {}]   ;;  %s5675_s5 = inlined_call_operand.hbm [shape: bf16[128,128], index: 5, kind: input, shape index: {}]   ;;  %s5676_s6 = inlined_call_operand.hbm [shape: bf16[1024,128], index: 6, kind: input, shape index: {}]   ;;  %s5677_s7 = inlined_call_operand.hbm [shape: f32[8,128], index: 7, kind: output, shape index: {}]  }
   0x1   :  { %13 = vsyncpa [#allocation6], 0 }
   0x2   :  { %14 = vsyncpa [#allocation9], 0 }
   0x3   :  { %15 = vsyncpa [#allocation12], 0 }
   0x4   :  { %16 = vsyncpa [#allocation4], 0  ;;  %s4749_s24 = smov [#allocation5]   ;;  %s4563_s28 = scalar_lea.hbm %s5671_s1, 1024 }
   0x5   :  { %s32_s25 = sshll.u32 %s4749_s24, 4  ;;  %p4564_p0 = scmp.ne.s32.totalorder %s5671_s1, %s4563_s28  ;;  %s33_s25 = int_to_ptr.vmem [resolvable:$true] %s32_s25 }
   0x6   :  { %p4567_p1 = scmp.lt.u32.totalorder %s4563_s28, %s5671_s1 }
   0x8   :  { %p4569_p2 = pnand %p4567_p1, %p4564_p0 }
   0xa   :  { %4572 = shalt.err (!%p4569_p2)
}
   0xb   :  { %s4573_s10 = scalar_lea.vmem %s33_s25, 1024  ;;  %p4578_p4 = scmp.lt.s32.totalorder %s33_s25, %s33_s25 }
   0xc   :  { %p4574_p3 = scmp.ne.s32.totalorder %s33_s25, %s4573_s10  ;;  %p4579_p5 = scmp.lt.s32.totalorder %s4573_s10, %s4573_s10 }
   0xe   :  { %p4580_p6 = por %p4579_p5, %p4578_p4 }
  0x10   :  { %p4581_p7 = pnand %p4580_p6, %p4574_p3 }
  0x12   :  { %4584 = shalt.err (!%p4581_p7)
}
  0x13   :  { %s4750_s11 = smov 64   ;;  %s4751_s12 = smov 4  }
  0x14   :  { %38 = dma.hbm_to_vmem [thread:$0]  %s5671_s1, 1024, %s33_s25, [#allocation6], %s4750_s11, %s4750_s11, %s4751_s12  }
  0x15   :  { %s4752_s15 = smov [#allocation8]   ;;  %s4753_s17 = smov [#allocation11]  }
  0x16   :  { %s56_s16 = sshll.u32 %s4752_s15, 4  ;;  %s80_s18 = sshll.u32 %s4753_s17, 4  ;;  %s57_s16 = int_to_ptr.vmem [resolvable:$true] %s56_s16  ;;  %s81_s18 = int_to_ptr.vmem [resolvable:$true] %s80_s18 }
  0x17   :  { %s4585_s21 = scalar_lea.hbm %s5673_s3, 1024 }
  0x18   :  { %p4586_p8 = scmp.ne.s32.totalorder %s5673_s3, %s4585_s21  ;;  %p4589_p9 = scmp.lt.u32.totalorder %s4585_s21, %s5673_s3 }
  0x1a   :  { %p4591_p10 = pnand %p4589_p9, %p4586_p8 }
  0x1c   :  { %4594 = shalt.err (!%p4591_p10)
}
  0x1d   :  { %s4595_s1 = scalar_lea.vmem %s57_s16, 1024  ;;  %p4600_p12 = scmp.lt.s32.totalorder %s57_s16, %s57_s16 }
  0x1e   :  { %p4596_p11 = scmp.ne.s32.totalorder %s57_s16, %s4595_s1  ;;  %p4601_p13 = scmp.lt.s32.totalorder %s4595_s1, %s4595_s1 }
  0x20   :  { %p4602_p0 = por %p4601_p13, %p4600_p12 }
  0x22   :  { %p4603_p1 = pnand %p4602_p0, %p4596_p11 }
  0x24   :  { %4606 = shalt.err (!%p4603_p1)
}
  0x25   :  { %62 = dma.hbm_to_vmem [thread:$0]  %s5673_s3, 1024, %s57_s16, [#allocation9], %s4750_s11, %s4750_s11, %s4751_s12  }
  0x26   :  { %s4607_s30 = scalar_lea.hbm %s5675_s5, 1024 }
  0x27   :  { %p4608_p2 = scmp.ne.s32.totalorder %s5675_s5, %s4607_s30  ;;  %p4611_p3 = scmp.lt.u32.totalorder %s4607_s30, %s5675_s5 }
  0x29   :  { %p4613_p4 = pnand %p4611_p3, %p4608_p2 }
  0x2b   :  { %4616 = shalt.err (!%p4613_p4)
}
  0x2c   :  { %s4617_s14 = scalar_lea.vmem %s81_s18, 1024  ;;  %p4622_p6 = scmp.lt.s32.totalorder %s81_s18, %s81_s18 }
  0x2d   :  { %p4618_p5 = scmp.ne.s32.totalorder %s81_s18, %s4617_s14  ;;  %p4623_p7 = scmp.lt.s32.totalorder %s4617_s14, %s4617_s14 }
  0x2f   :  { %p4624_p8 = por %p4623_p7, %p4622_p6 }
  0x31   :  { %p4625_p9 = pnand %p4624_p8, %p4618_p5 }
  0x33   :  { %4628 = shalt.err (!%p4625_p9)
}
  0x34   :  { %86 = dma.hbm_to_vmem [thread:$0]  %s5675_s5, 1024, %s81_s18, [#allocation12], %s4750_s11, %s4750_s11, %s4751_s12  }
  0x35   :  { %s4754_s16 = smov [#allocation2]   ;;  %s4755_s19 = smov [#allocation7]  }
  0x36   :  { %s23_s17 = sshll.u32 %s4754_s16, 4  ;;  %s44_s20 = sshll.u32 %s4755_s19, 4  ;;  %s24_s17 = int_to_ptr.vmem [resolvable:$true] %s23_s17  ;;  %s45_s20 = int_to_ptr.vmem [resolvable:$true] %s44_s20 }
  0x37   :  { %s4629_s23 = scalar_lea.hbm %s5670_s0, 128 }
  0x38   :  { %p4630_p10 = scmp.ne.s32.totalorder %s5670_s0, %s4629_s23  ;;  %p4633_p11 = scmp.lt.u32.totalorder %s4629_s23, %s5670_s0 }
  0x3a   :  { %p4635_p12 = pnand %p4633_p11, %p4630_p10 }
  0x3c   :  { %4638 = shalt.err (!%p4635_p12)
}
  0x3d   :  { %s4639_s5 = scalar_lea.vmem %s24_s17, 128  ;;  %p4644_p0 = scmp.lt.s32.totalorder %s24_s17, %s24_s17 }
  0x3e   :  { %p4640_p13 = scmp.ne.s32.totalorder %s24_s17, %s4639_s5  ;;  %p4645_p1 = scmp.lt.s32.totalorder %s4639_s5, %s4639_s5 }
  0x40   :  { %p4646_p2 = por %p4645_p1, %p4644_p0 }
  0x42   :  { %p4647_p3 = pnand %p4646_p2, %p4640_p13 }
  0x44   :  { %4650 = shalt.err (!%p4647_p3)
}
  0x45   :  { %26 = dma.hbm_to_vmem [thread:$0]  %s5670_s0, 128, %s24_s17, [#allocation3]  }
  0x46   :  { %s4651_s30 = scalar_lea.hbm %s5672_s2, 8192 }
  0x47   :  { %p4652_p4 = scmp.ne.s32.totalorder %s5672_s2, %s4651_s30  ;;  %p4655_p5 = scmp.lt.u32.totalorder %s4651_s30, %s5672_s2 }
  0x49   :  { %p4657_p6 = pnand %p4655_p5, %p4652_p4 }
  0x4b   :  { %4660 = shalt.err (!%p4657_p6)
}
  0x4c   :  { %s4661_s14 = scalar_lea.vmem %s45_s20, 8192  ;;  %p4666_p8 = scmp.lt.s32.totalorder %s45_s20, %s45_s20 }
  0x4d   :  { %p4662_p7 = scmp.ne.s32.totalorder %s45_s20, %s4661_s14  ;;  %p4667_p9 = scmp.lt.s32.totalorder %s4661_s14, %s4661_s14 }
  0x4f   :  { %p4668_p10 = por %p4667_p9, %p4666_p8 }
  0x51   :  { %p4669_p11 = pnand %p4668_p10, %p4662_p7 }
  0x53   :  { %4672 = shalt.err (!%p4669_p11)
}
  0x54   :  { %50 = dma.hbm_to_vmem [thread:$0]  %s5672_s2, 8192, %s45_s20, [#allocation6], %s4750_s11, %s4750_s11, %s4751_s12  }
  0x55   :  { %s4756_s15 = smov [#allocation10]   ;;  %s4757_s17 = smov [#allocation13]  }
  0x56   :  { %s68_s16 = sshll.u32 %s4756_s15, 4  ;;  %s92_s19 = sshll.u32 %s4757_s17, 4  ;;  %s69_s16 = int_to_ptr.vmem [resolvable:$true] %s68_s16  ;;  %s93_s19 = int_to_ptr.vmem [resolvable:$true] %s92_s19 }
  0x57   :  { %s4673_s23 = scalar_lea.hbm %s5674_s4, 8192 }
  0x58   :  { %p4674_p12 = scmp.ne.s32.totalorder %s5674_s4, %s4673_s23  ;;  %p4677_p13 = scmp.lt.u32.totalorder %s4673_s23, %s5674_s4 }
  0x5a   :  { %p4679_p0 = pnand %p4677_p13, %p4674_p12 }
  0x5c   :  { %4682 = shalt.err (!%p4679_p0)
}
  0x5d   :  { %s4683_s2 = scalar_lea.vmem %s69_s16, 8192  ;;  %p4688_p2 = scmp.lt.s32.totalorder %s69_s16, %s69_s16 }
  0x5e   :  { %p4684_p1 = scmp.ne.s32.totalorder %s69_s16, %s4683_s2  ;;  %p4689_p3 = scmp.lt.s32.totalorder %s4683_s2, %s4683_s2 }
  0x60   :  { %p4690_p4 = por %p4689_p3, %p4688_p2 }
  0x62   :  { %p4691_p5 = pnand %p4690_p4, %p4684_p1 }
  0x64   :  { %4694 = shalt.err (!%p4691_p5)
}
  0x65   :  { %74 = dma.hbm_to_vmem [thread:$0]  %s5674_s4, 8192, %s69_s16, [#allocation9], %s4750_s11, %s4750_s11, %s4751_s12  }
  0x66   :  { %s4695_s28 = scalar_lea.hbm %s5676_s6, 8192 }
  0x67   :  { %p4696_p6 = scmp.ne.s32.totalorder %s5676_s6, %s4695_s28  ;;  %p4699_p7 = scmp.lt.u32.totalorder %s4695_s28, %s5676_s6 }
  0x69   :  { %p4701_p8 = pnand %p4699_p7, %p4696_p6 }
  0x6b   :  { %4704 = shalt.err (!%p4701_p8)
}
  0x6c   :  { %s4705_s10 = scalar_lea.vmem %s93_s19, 8192  ;;  %p4710_p10 = scmp.lt.s32.totalorder %s93_s19, %s93_s19 }
  0x6d   :  { %p4706_p9 = scmp.ne.s32.totalorder %s93_s19, %s4705_s10  ;;  %p4711_p11 = scmp.lt.s32.totalorder %s4705_s10, %s4705_s10 }
  0x6f   :  { %p4712_p12 = por %p4711_p11, %p4710_p10 }
  0x71   :  { %p4713_p13 = pnand %p4712_p12, %p4706_p9 }
  0x73   :  { %4716 = shalt.err (!%p4713_p13)
}
  0x74   :  { %98 = dma.hbm_to_vmem [thread:$0]  %s5676_s6, 8192, %s93_s19, [#allocation12], %s4750_s11, %s4750_s11, %s4751_s12  }
  0x75   :  { %4739 = dma.done.wait [#allocation3], 128  }
  0x76   :  { %4740 = vsyncadd [#allocation3], 4294967168 }
  0x77   :  { %4741 = dma.done.wait [#allocation6], 9216  }
  0x78   :  { %4742 = vsyncadd [#allocation6], 4294958080 }
  0x79   :  { %4743 = dma.done.wait [#allocation9], 9216  }
  0x7a   :  { %4744 = vsyncadd [#allocation9], 4294958080 }
  0x7b   :  { %4745 = dma.done.wait [#allocation12], 9216  }
  0x7c   :  { %4746 = vsyncadd [#allocation12], 4294958080  ;;  %v4327_v0 = vld [vmem:[#allocation7 + $0x40] sm:$0xff]   ;;  %v4331_v4 = vld [vmem:[#allocation7 + $0x48] sm:$0xff]   ;;  %v5686_v39 = vmov 0.0   ;;  %s4760_s6 = smov [#allocation14]  }
  0x7d   :  { %v4328_v1 = vld [vmem:[#allocation7 + $0xc0] sm:$0xff]   ;;  %3847 = vmatprep.subr.bf16.mxu0 %v4327_v0  ;;  %v4332_v5 = vld [vmem:[#allocation7 + $0xc8] sm:$0xff]   ;;  %v4335_v8 = vld [vmem:[#allocation7 + $0x50] sm:$0xff]   ;;  %s3527_s11 = sshll.u32 %s4760_s6, 4  ;;  %s3528_s11 = int_to_ptr.vmem [resolvable:$true] %s3527_s11 }
  0x7e   :  { %v4329_v2 = vld [vmem:[#allocation7] sm:$0xff]   ;;  %3869 = vmatprep.subr.bf16.mxu1 %v4328_v1  ;;  %v4333_v6 = vld [vmem:[#allocation7 + $0x8] sm:$0xff]   ;;  %v4336_v9 = vld [vmem:[#allocation7 + $0xd0] sm:$0xff]   ;;  %s4717_s12 = scalar_lea.vmem %s3528_s11, 128  ;;  %p4722_p1 = scmp.lt.s32.totalorder %s3528_s11, %s3528_s11 }
  0x7f   :  { %v4330_v3 = vld [vmem:[#allocation7 + $0x80] sm:$0xff]   ;;  %3848 = vmatpush3.bf16.msra.mxu0 %v4329_v2  ;;  %v4334_v7 = vld [vmem:[#allocation7 + $0x88] sm:$0xff]   ;;  %v4337_v10 = vld [vmem:[#allocation7 + $0x10] sm:$0xff]   ;;  %p4718_p0 = scmp.ne.s32.totalorder %s3528_s11, %s4717_s12  ;;  %p4723_p2 = scmp.lt.s32.totalorder %s4717_s12, %s4717_s12 }
  0x80   :  { %3870 = vmatpush3.bf16.msra.mxu1 %v4330_v3  ;;  %3849 = vmatprep.subr.bf16.mxu0 %v4331_v4  ;;  %v4338_v11 = vld [vmem:[#allocation7 + $0x90] sm:$0xff]   ;;  %v4339_v12 = vld [vmem:[#allocation7 + $0x58] sm:$0xff]   ;;  %v4343_v16 = vld [vmem:[#allocation7 + $0x60] sm:$0xff]  }
  0x81   :  { %3871 = vmatprep.subr.bf16.mxu1 %v4332_v5  ;;  %v4340_v13 = vld [vmem:[#allocation7 + $0xd8] sm:$0xff]   ;;  %v4344_v17 = vld [vmem:[#allocation7 + $0xe0] sm:$0xff]   ;;  %v4347_v20 = vld [vmem:[#allocation7 + $0x68] sm:$0xff]   ;;  %p4724_p3 = por %p4723_p2, %p4722_p1 }
  0x82   :  { %v4341_v14 = vld [vmem:[#allocation7 + $0x18] sm:$0xff]   ;;  %v4345_v18 = vld [vmem:[#allocation7 + $0x20] sm:$0xff]   ;;  %v4348_v21 = vld [vmem:[#allocation7 + $0xe8] sm:$0xff]  }
  0x83   :  { %3850 = vmatpush3.bf16.msra.mxu0 %v4333_v6  ;;  %v4342_v15 = vld [vmem:[#allocation7 + $0x98] sm:$0xff]   ;;  %v4346_v19 = vld [vmem:[#allocation7 + $0xa0] sm:$0xff]   ;;  %v4349_v22 = vld [vmem:[#allocation7 + $0x28] sm:$0xff]   ;;  %p4725_p4 = pnand %p4724_p3, %p4718_p0 }
  0x84   :  { %3872 = vmatpush3.bf16.msra.mxu1 %v4334_v7  ;;  %3851 = vmatprep.subr.bf16.mxu0 %v4335_v8  ;;  %v4350_v23 = vld [vmem:[#allocation7 + $0xa8] sm:$0xff]   ;;  %v4351_v24 = vld [vmem:[#allocation7 + $0x70] sm:$0xff]   ;;  %v4355_v28 = vld [vmem:[#allocation7 + $0x78] sm:$0xff]  }
  0x85   :  { %3873 = vmatprep.subr.bf16.mxu1 %v4336_v9  ;;  %v4352_v25 = vld [vmem:[#allocation7 + $0xf0] sm:$0xff]   ;;  %v4356_v29 = vld [vmem:[#allocation7 + $0xf8] sm:$0xff]   ;;  %v4359_v38 = vld [vmem:[#allocation7 + $0x140] sm:$0xff]  }
  0x86   :  { %v4353_v26 = vld [vmem:[#allocation7 + $0x30] sm:$0xff]   ;;  %v4357_v30 = vld [vmem:[#allocation7 + $0x38] sm:$0xff]   ;;  %v4361_v55 = vld [vmem:[#allocation7 + $0x1c0] sm:$0xff]  }
  0x87   :  { %3852 = vmatpush3.bf16.msra.mxu0 %v4337_v10  ;;  %v4354_v27 = vld [vmem:[#allocation7 + $0xb0] sm:$0xff]   ;;  %v4358_v31 = vld [vmem:[#allocation7 + $0xb8] sm:$0xff]  }
  0x88   :  { %3874 = vmatpush3.bf16.msra.mxu1 %v4338_v11  ;;  %3853 = vmatprep.subr.bf16.mxu0 %v4339_v12  ;;  %v4903_v32 = vld [vmem:[#allocation2] sm:$0xff] }
  0x89   :  { %3875 = vmatprep.subr.bf16.mxu1 %v4340_v13  ;;  %v3541_v33 = vadd.f32 1.8, %v4903_v32  ;;  %v4907_v34 = vadd.f32 1.4, %v4903_v32  ;;  %v4910_v35 = vadd.f32 2.2, %v4903_v32 }
  0x8a   :  { %v4913_v36 = vadd.f32 1.0, %v4903_v32  ;;  %v4916_v37 = vadd.f32 0.6, %v4903_v32  ;;  %v4934_v50 = vadd.f32 0.19999999, %v4903_v32 }
  0x8b   :  { %3854 = vmatpush3.bf16.msra.mxu0 %v4341_v14  ;;  %vm162_vm0 = vcmp.ge.f32.partialorder %v3541_v33, 0.0  ;;  %vm163_vm1 = vcmp.lt.f32.partialorder %v3541_v33, 0.4  ;;  %vm167_vm2 = vcmp.ge.f32.partialorder %v4907_v34, 0.0  ;;  %vm168_vm3 = vcmp.lt.f32.partialorder %v4907_v34, 0.4 }
  0x8c   :  { %3876 = vmatpush3.bf16.msra.mxu1 %v4342_v15  ;;  %3855 = vmatprep.subr.bf16.mxu0 %v4343_v16  ;;  %vm164_vm4 = vmand %vm162_vm0, %vm163_vm1  ;;  %vm172_vm5 = vcmp.ge.f32.partialorder %v4913_v36, 0.0  ;;  %vm173_vm6 = vcmp.lt.f32.partialorder %v4913_v36, 0.4  ;;  %vm177_vm7 = vcmp.ge.f32.partialorder %v4916_v37, 0.0  ;;  %vm178_vm8 = vcmp.lt.f32.partialorder %v4916_v37, 0.4 }
  0x8d   :  { %3877 = vmatprep.subr.bf16.mxu1 %v4344_v17  ;;  %v4925_v40 = vsel %vm164_vm4, 1.0, %v5686_v39  ;;  %vm169_vm9 = vmand %vm167_vm2, %vm168_vm3  ;;  %v217_v41 = vmul.f32 2.5, %v3541_v33  ;;  %v222_v42 = vmul.f32 2.5, %v4907_v34  ;;  %v227_v44 = vmul.f32 2.5, %v4913_v36 }
  0x8e   :  { %v3553_v43 = vsel %vm169_vm9, 1.0, %v5686_v39  ;;  %vm174_vm10 = vmand %vm172_vm5, %vm173_vm6  ;;  %v267_v45 = vmul.f32 1.25, %v3541_v33  ;;  %v272_v46 = vmul.f32 1.25, %v4907_v34  ;;  %v4938_v52 = vmul.f32 2.5, %v4910_v35 }
  0x8f   :  { %3856 = vmatpush3.bf16.msra.mxu0 %v4345_v18  ;;  %v3554_v47 = vsel %vm174_vm10, 1.0, %v5686_v39  ;;  %vm179_vm11 = vmand %vm177_vm7, %vm178_vm8  ;;  %v218_v48 = vmul.f32 %v4925_v40, %v217_v41  ;;  %v219_v49 = vsub.f32 2.0, %v217_v41  ;;  %v223_v53 = vmul.f32 %v3553_v43, %v222_v42 }
  0x90   :  { %3878 = vmatpush3.bf16.msra.mxu1 %v4346_v19  ;;  %3857 = vmatprep.subr.bf16.mxu0 %v4347_v20  ;;  %v3555_v51 = vsel %vm179_vm11, 1.0, %v5686_v39  ;;  %v224_v54 = vsub.f32 2.0, %v222_v42  ;;  %v228_v57 = vmul.f32 %v3554_v47, %v227_v44  ;;  %v229_v58 = vsub.f32 2.0, %v227_v44 }
  0x91   :  { %3879 = vmatprep.subr.bf16.mxu1 %v4348_v21  ;;  %v220_v56 = vmul.f32 %v3553_v43, %v219_v49  ;;  %v269_v59 = vsub.f32 1.5, %v267_v45  ;;  %v274_v61 = vsub.f32 1.5, %v272_v46  ;;  %v312_v62 = vmul.f32 0.8333333, %v3541_v33 }
  0x92   :  { %v225_v60 = vmul.f32 %v3554_v47, %v224_v54  ;;  %v4941_v63 = vadd.f32 -0.20000005, %v4903_v32  ;;  %v230_v1 = vmul.f32 %v3555_v51, %v229_v58  ;;  %vm182_vm12 = vcmp.ge.f32.partialorder %v4934_v50, 0.0 }
  0x93   :  { %3858 = vmatpush3.bf16.msra.mxu0 %v4349_v22  ;;  %v221_v0 = vadd.f32 %v220_v56, %v218_v48  ;;  %vm183_vm13 = vcmp.lt.f32.partialorder %v4934_v50, 0.4  ;;  %v314_v3 = vsub.f32 1.3333334, %v312_v62  ;;  %v232_v7 = vmul.f32 2.5, %v4916_v37 }
  0x94   :  { %3880 = vmatpush3.bf16.msra.mxu1 %v4350_v23  ;;  %3859 = vmatprep.subr.bf16.mxu0 %v4351_v24  ;;  %v226_v2 = vadd.f32 %v225_v60, %v223_v53  ;;  %vm184_vm14 = vmand %vm182_vm12, %vm183_vm13  ;;  %vm187_vm15 = vcmp.ge.f32.partialorder %v4941_v63, 0.0  ;;  %vm188_vm0 = vcmp.lt.f32.partialorder %v4941_v63, 0.4  ;;  %v231_v4 = vadd.f32 %v230_v1, %v228_v57 }
  0x95   :  { %3881 = vmatprep.subr.bf16.mxu1 %v4352_v25  ;;  %v268_v5 = vmul.f32 %v267_v45, %v221_v0  ;;  %v3556_v6 = vsel %vm184_vm14, 1.0, %v5686_v39  ;;  %vm189_vm1 = vmand %vm187_vm15, %vm188_vm0  ;;  %v237_v10 = vmul.f32 2.5, %v4934_v50  ;;  %v233_v13 = vmul.f32 %v3555_v51, %v232_v7 }
  0x96   :  { %v270_v8 = vmul.f32 %v269_v59, %v226_v2  ;;  %v273_v9 = vmul.f32 %v272_v46, %v226_v2  ;;  %v275_v11 = vmul.f32 %v274_v61, %v231_v4  ;;  %v4951_v12 = vsel %vm189_vm1, 1.0, %v5686_v39 }
  0x97   :  { %3860 = vmatpush3.bf16.msra.mxu0 %v4353_v26  ;;  %v234_v14 = vsub.f32 2.0, %v232_v7  ;;  %v238_v16 = vmul.f32 %v3556_v6, %v237_v10  ;;  %v239_v17 = vsub.f32 2.0, %v237_v10  ;;  %v277_v18 = vmul.f32 1.25, %v4913_v36  ;;  %v4366_v10 = vld [vmem:[#allocation7 + $0x188] sm:$0xff]  }
  0x98   :  { %3882 = vmatpush3.bf16.msra.mxu1 %v4354_v27  ;;  %3861 = vmatprep.subr.bf16.mxu0 %v4355_v28  ;;  %v271_v15 = vadd.f32 %v270_v8, %v268_v5  ;;  %v214_v19 = vsub.f32 2.0, %v4938_v52  ;;  %v276_v20 = vadd.f32 %v275_v11, %v273_v9  ;;  %v282_v22 = vmul.f32 1.25, %v4916_v37  ;;  %v4362_v5 = vld [vmem:[#allocation7 + $0x180] sm:$0xff]   ;;  %v4363_v9 = vld [vmem:[#allocation7 + $0x148] sm:$0xff]  }
  0x99   :  { %3883 = vmatprep.subr.bf16.mxu1 %v4356_v29  ;;  %v235_v21 = vmul.f32 %v3556_v6, %v234_v14  ;;  %v240_v24 = vmul.f32 %v4951_v12, %v239_v17  ;;  %v278_v25 = vmul.f32 %v277_v18, %v231_v4  ;;  %v279_v26 = vsub.f32 1.5, %v277_v18  ;;  %v4360_v6 = vld [vmem:[#allocation7 + $0x100] sm:$0xff]   ;;  %v4364_v17 = vld [vmem:[#allocation7 + $0x108] sm:$0xff]  }
  0x9a   :  { %v313_v23 = vmul.f32 %v312_v62, %v271_v15  ;;  %v315_v27 = vmul.f32 %v314_v3, %v276_v20  ;;  %v284_v29 = vsub.f32 1.5, %v282_v22  ;;  %vm157_vm2 = vcmp.ge.f32.partialorder %v4910_v35, 0.0 }
  0x9b   :  { %3862 = vmatpush3.bf16.msra.mxu0 %v4357_v30  ;;  %v236_v28 = vadd.f32 %v235_v21, %v233_v13  ;;  %v322_v30 = vmul.f32 0.8333333, %v4913_v36  ;;  %vm158_vm3 = vcmp.lt.f32.partialorder %v4910_v35, 0.4  ;;  %v215_v33 = vmul.f32 %v4925_v40, %v214_v19 }
  0x9c   :  { %3884 = vmatpush3.bf16.msra.mxu1 %v4358_v31  ;;  %3891 = vmatprep.subr.bf16.mxu0 %v4359_v38  ;;  %v4958_v31 = vadd.f32 %v240_v24, %v238_v16  ;;  %v316_v38 = vadd.f32 %v315_v27, %v313_v23  ;;  %vm159_vm4 = vmand %vm157_vm2, %vm158_vm3  ;;  %v262_v46 = vmul.f32 1.25, %v4910_v35  ;;  %v307_v49 = vmul.f32 0.8333333, %v4910_v35  ;;  %v4368_v23 = vld [vmem:[#allocation7 + $0x110] sm:$0xff]  }
  0x9d   :  { %3913 = vmatprep.subr.bf16.mxu1 %v4361_v55  ;;  %v280_v41 = vmul.f32 %v279_v26, %v236_v28  ;;  %v283_v42 = vmul.f32 %v282_v22, %v236_v28  ;;  %v324_v44 = vsub.f32 1.3333334, %v322_v30  ;;  %v3551_v45 = vsel %vm159_vm4, 1.0, %v5686_v39  ;;  %v4373_v22 = vld [vmem:[#allocation7 + $0x1d8] sm:$0xff]  }
  0x9e   :  { %v285_v43 = vmul.f32 %v284_v29, %v4958_v31  ;;  %v348_v36 = vpack.c.bf16 %v316_v38, %v316_v38  ;;  %v213_v48 = vmul.f32 %v3551_v45, %v4938_v52  ;;  %v264_v40 = vsub.f32 1.5, %v262_v46  ;;  %v4374_v28 = vld [vmem:[#allocation7 + $0x198] sm:$0xff]  }
  0x9f   :  { %v281_v47 = vadd.f32 %v280_v41, %v278_v25  ;;  %v317_v53 = vmul.f32 0.8333333, %v4907_v34  ;;  %v309_v56 = vsub.f32 1.3333334, %v307_v49  ;;  %v4973_v34 = vmul.f32 0.8333333, %v4916_v37 }
  0xa0   :  { %v4968_v51 = vadd.f32 %v285_v43, %v283_v42  ;;  %899 = vmatprep.mubr.bf16.mxu0 %v348_v36  ;;  %v216_v55 = vadd.f32 %v215_v33, %v213_v48  ;;  %v265_v58 = vmul.f32 %v264_v40, %v221_v0  ;;  %v4365_v0 = vld [vmem:[#allocation7 + $0x1c8] sm:$0xff]   ;;  %v3548_v11 = vadd.f32 -1.0, %v4903_v32  ;;  %v4367_v37 = vld [vmem:[#allocation7 + $0x150] sm:$0xff]   ;;  %v4371_v25 = vld [vmem:[#allocation7 + $0x158] sm:$0xff]  }
  0xa1   :  { %v323_v54 = vmul.f32 %v322_v30, %v281_v47  ;;  %v318_v60 = vmul.f32 %v317_v53, %v276_v20  ;;  %v319_v61 = vsub.f32 1.3333334, %v317_v53  ;;  %v310_v52 = vmul.f32 %v309_v56, %v271_v15  ;;  %v4369_v15 = vld [vmem:[#allocation7 + $0x1d0] sm:$0xff]   ;;  %v4377_v41 = vld [vmem:[#allocation7 + $0x1e0] sm:$0xff]   ;;  %v4372_v43 = vld [vmem:[#allocation7 + $0x118] sm:$0xff]  }
  0xa2   :  { %v325_v57 = vmul.f32 %v324_v44, %v4968_v51  ;;  %v263_v59 = vmul.f32 %v262_v46, %v216_v55  ;;  %v242_v13 = vmul.f32 2.5, %v4941_v63  ;;  %v329_v16 = vsub.f32 1.3333334, %v4973_v34  ;;  %v4370_v20 = vld [vmem:[#allocation7 + $0x190] sm:$0xff]   ;;  %v4375_v46 = vld [vmem:[#allocation7 + $0x160] sm:$0xff]  }
  0xa3   :  { %v320_v2 = vmul.f32 %v319_v61, %v281_v47  ;;  %v4979_v18 = vmul.f32 1.25, %v4934_v50  ;;  %v4982_v19 = vmul.f32 1.25, %v4941_v63  ;;  %v4984_v21 = vmul.f32 2.5, %v3548_v11  ;;  %v4378_v48 = vld [vmem:[#allocation7 + $0x1a0] sm:$0xff]  }
  0xa4   :  { %v326_v62 = vadd.f32 %v325_v57, %v323_v54  ;;  %v266_v1 = vadd.f32 %v265_v58, %v263_v59  ;;  %vm197_vm5 = vcmp.ge.f32.partialorder %v3548_v11, 0.0  ;;  %v244_v24 = vsub.f32 2.0, %v242_v13  ;;  %v4376_v57 = vld [vmem:[#allocation7 + $0x120] sm:$0xff]  }
  0xa5   :  { %v321_v4 = vadd.f32 %v320_v2, %v318_v60  ;;  %v289_v26 = vsub.f32 1.5, %v4979_v18  ;;  %v294_v27 = vsub.f32 1.5, %v4982_v19  ;;  %v3547_v29 = vadd.f32 -0.6, %v4903_v32 }
  0xa6   :  { %v350_v35 = vpack.c.bf16 %v326_v62, %v326_v62  ;;  %v308_v3 = vmul.f32 %v307_v49, %v266_v1  ;;  %v254_v30 = vsub.f32 2.0, %v4984_v21  ;;  %v4990_v33 = vmul.f32 1.25, %v3548_v11 }
  0xa7   :  { %v349_v8 = vpack.c.bf16 %v321_v4, %v321_v4  ;;  %v243_v38 = vmul.f32 %v4951_v12, %v242_v13  ;;  %vm198_vm6 = vcmp.lt.f32.partialorder %v3548_v11, 0.4  ;;  %v4994_v42 = vmul.f32 0.8333333, %v4934_v50  ;;  %v4379_v4 = vld [vmem:[#allocation7 + $0x168] sm:$0xff]  }
  0xa8   :  { %939 = vmatprep.mubr.bf16.mxu1 %v350_v35  ;;  %v311_v7 = vadd.f32 %v310_v52, %v308_v3  ;;  %vm192_vm7 = vcmp.ge.f32.partialorder %v3547_v29, 0.0  ;;  %vm193_vm8 = vcmp.lt.f32.partialorder %v3547_v29, 0.4  ;;  %vm199_vm9 = vmand %vm197_vm5, %vm198_vm6  ;;  %v247_v44 = vmul.f32 2.5, %v3547_v29 }
  0xa9   :  { %940 = vmatmul.mubr.bf16.vlgmr.msra.gmra.mrb[0].mxu1 %v349_v8  ;;  %v288_v45 = vmul.f32 %v4979_v18, %v4958_v31  ;;  %vm194_vm10 = vmand %vm192_vm7, %vm193_vm8  ;;  %v3559_v12 = vsel %vm199_vm9, 1.0, %v5686_v39  ;;  %v334_v36 = vsub.f32 1.3333334, %v4994_v42  ;;  %v3549_v50 = vadd.f32 -1.4000001, %v4903_v32  ;;  %v4381_v31 = vld [vmem:[#allocation7 + $0x1e8] sm:$0xff]  }
  0xaa   :  { %v347_v14 = vpack.c.bf16 %v311_v7, %v311_v7  ;;  %3914 = vmatpush3.bf16.msra.mxu1 %v4362_v5  ;;  %v297_v47 = vmul.f32 1.25, %v3547_v29  ;;  %v3558_v49 = vsel %vm194_vm10, 1.0, %v5686_v39  ;;  %v249_v40 = vsub.f32 2.0, %v247_v44 }
  0xab   :  { %3915 = vmatprep.subr.bf16.mxu1 %v4365_v0  ;;  %v3550_v53 = vadd.f32 -1.8, %v4903_v32  ;;  %v253_v54 = vmul.f32 %v3559_v12, %v4984_v21  ;;  %v245_v55 = vmul.f32 %v3558_v49, %v244_v24  ;;  %v248_v56 = vmul.f32 %v3558_v49, %v247_v44  ;;  %v4382_v0 = vld [vmem:[#allocation7 + $0x1a8] sm:$0xff]  }
  0xac   :  { %900 = vmatmul.mubr.bf16.vlgmr.msra.gmra.mrb[0].mxu0 %v347_v14  ;;  %vm202_vm11 = vcmp.ge.f32.partialorder %v3549_v50, 0.0  ;;  %vm203_vm12 = vcmp.lt.f32.partialorder %v3549_v50, 0.4  ;;  %v250_v58 = vmul.f32 %v3559_v12, %v249_v40  ;;  %v257_v59 = vmul.f32 2.5, %v3549_v50  ;;  %v4388_v50 = vld [vmem:[#allocation7 + $0x138] sm:$0xff]  }
  0xad   :  { %3892 = vmatpush3.bf16.msra.mxu0 %v4360_v6  ;;  %vm204_vm13 = vmand %vm202_vm11, %vm203_vm12  ;;  %vm207_vm14 = vcmp.ge.f32.partialorder %v3550_v53, 0.0  ;;  %vm208_vm15 = vcmp.lt.f32.partialorder %v3550_v53, 0.4  ;;  %v246_v60 = vadd.f32 %v245_v55, %v243_v38  ;;  %v304_v62 = vsub.f32 1.5, %v4990_v33  ;;  %v4392_v55 = vld [vmem:[#allocation5 + $0x8] sm:$0xff]  }
  0xae   :  { %3893 = vmatprep.subr.bf16.mxu0 %v4363_v9  ;;  %3916 = vmatpush3.bf16.msra.mxu1 %v4366_v10  ;;  %v3560_v61 = vsel %vm204_vm13, 1.0, %v5686_v39  ;;  %vm209_vm0 = vmand %vm207_vm14, %vm208_vm15  ;;  %v342_v1 = vmul.f32 0.8333333, %v3547_v29  ;;  %v251_v52 = vadd.f32 %v250_v58, %v248_v56  ;;  %v299_v3 = vsub.f32 1.5, %v297_v47  ;;  %v4380_v9 = vld [vmem:[#allocation7 + $0x128] sm:$0xff]   ;;  %v4385_v10 = vld [vmem:[#allocation7 + $0x1f0] sm:$0xff]  }
  0xaf   :  { %3917 = vmatprep.subr.bf16.mxu1 %v4369_v15  ;;  %v3561_v2 = vsel %vm209_vm0, 1.0, %v5686_v39  ;;  %v255_v35 = vmul.f32 %v3560_v61, %v254_v30  ;;  %v290_v5 = vmul.f32 %v289_v26, %v246_v60  ;;  %v293_v6 = vmul.f32 %v4982_v19, %v246_v60  ;;  %v4384_v26 = vld [vmem:[#allocation7 + $0x130] sm:$0xff]   ;;  %v4394_v58 = vld [vmem:[#allocation5 + $0x18] sm:$0xff]   ;;  %v4396_v60 = vld [vmem:[#allocation5 + $0x28] sm:$0xff]  }
  0xb0   :  { %v258_v7 = vmul.f32 %v3560_v61, %v257_v59  ;;  %v259_v8 = vsub.f32 2.0, %v257_v59  ;;  %v295_v11 = vmul.f32 %v294_v27, %v251_v52  ;;  %v298_v14 = vmul.f32 %v297_v47, %v251_v52  ;;  %v4386_v27 = vld [vmem:[#allocation7 + $0x1b0] sm:$0xff]   ;;  %v4395_v59 = vld [vmem:[#allocation5 + $0x20] sm:$0xff]  }
  0xb1   :  { %3894 = vmatpush3.bf16.msra.mxu0 %v4364_v17  ;;  %v256_v13 = vadd.f32 %v255_v35, %v253_v54  ;;  %v337_v15 = vmul.f32 0.8333333, %v4941_v63  ;;  %v4383_v17 = vld [vmem:[#allocation7 + $0x170] sm:$0xff]   ;;  %v3539_v38 = vmul.f32 -1.442695, %v4903_v32  ;;  %vm4759_vm1 = vmmov 0  }
  0xb2   :  { %3895 = vmatprep.subr.bf16.mxu0 %v4367_v37  ;;  %3918 = vmatpush3.bf16.msra.mxu1 %v4370_v20  ;;  %v291_v37 = vadd.f32 %v290_v5, %v288_v45  ;;  %v260_v18 = vmul.f32 %v3561_v2, %v259_v8  ;;  %v296_v20 = vadd.f32 %v295_v11, %v293_v6  ;;  %v4397_v61 = vld [vmem:[#allocation5 + $0x30] sm:$0xff]   ;;  %v5032_v35 = vld [vmem:[#allocation10 + $0x40] sm:$0xff]   ;;  %v5046_v6 = vld [vmem:[#allocation10 + $0xc8] sm:$0xff]  }
  0xb3   :  { %3919 = vmatprep.subr.bf16.mxu1 %v4373_v22  ;;  %v300_v21 = vmul.f32 %v299_v3, %v256_v13  ;;  %v344_v22 = vsub.f32 1.3333334, %v342_v1  ;;  %v303_v19 = vmul.f32 %v4990_v33, %v256_v13  ;;  %4543 = vpow2.f32 %v3539_v38  ;;  %v5034_v3 = vld [vmem:[#allocation10 + $0xc0] sm:$0xff]   ;;  %v5050_v8 = vld [vmem:[#allocation10 + $0x88] sm:$0xff]   ;;  %v5062_v11 = vld [vmem:[#allocation10 + $0x90] sm:$0xff]  }
  0xb4   :  { %v333_v24 = vmul.f32 %v4994_v42, %v291_v37  ;;  %v335_v63 = vmul.f32 %v334_v36, %v296_v20  ;;  %v338_v30 = vmul.f32 %v337_v15, %v296_v20  ;;  %v330_v44 = vmul.f32 %v329_v16, %v291_v37  ;;  %v4391_v16 = vld [vmem:[#allocation5] sm:$0xff]   ;;  %v5066_v13 = vld [vmem:[#allocation10 + $0x58] sm:$0xff]  }
  0xb5   :  { %3896 = vmatpush3.bf16.msra.mxu0 %v4368_v23  ;;  %v339_v23 = vsub.f32 1.3333334, %v337_v15  ;;  %v301_v29 = vadd.f32 %v300_v21, %v298_v14  ;;  %v5038_v5 = vld [vmem:[#allocation10 + $0x80] sm:$0xff]   ;;  %v5068_v14 = vld [vmem:[#allocation10 + $0xd8] sm:$0xff]  }
  0xb6   :  { %3897 = vmatprep.subr.bf16.mxu0 %v4371_v25  ;;  %3920 = vmatpush3.bf16.msra.mxu1 %v4374_v28  ;;  %v261_v25 = vadd.f32 %v260_v18, %v258_v7  ;;  %v4389_v28 = vld [vmem:[#allocation7 + $0x1f8] sm:$0xff]   ;;  %v336_v45 = vadd.f32 %v335_v63, %v333_v24  ;;  %v5048_v7 = vld [vmem:[#allocation10 + $0x8] sm:$0xff]   ;;  %v5078_v37 = vld [vmem:[#allocation10 + $0x60] sm:$0xff]  }
  0xb7   :  { %3921 = vmatprep.subr.bf16.mxu1 %v4377_v41  ;;  %v328_v41 = vmul.f32 %v4973_v34, %v4968_v51  ;;  %v340_v12 = vmul.f32 %v339_v23, %v301_v29  ;;  %v343_v36 = vmul.f32 %v342_v1, %v301_v29  ;;  %v4398_v1 = vld [vmem:[#allocation5 + $0x38] sm:$0xff]   ;;  %v5080_v18 = vld [vmem:[#allocation10 + $0xe0] sm:$0xff]   ;;  %v5092_v23 = vld [vmem:[#allocation10 + $0xe8] sm:$0xff]  }
  0xb8   :  { %v305_v33 = vmul.f32 %v304_v62, %v261_v25  ;;  %v352_v47 = vpack.c.bf16 %v336_v45, %v336_v45  ;;  %v5072_v15 = vld [vmem:[#allocation10 + $0x18] sm:$0xff]   ;;  %5703 = vst [vmem:[#allocation20_spill] sm:$0xff] %v5080_v18  ;;  %v5084_v20 = vld [vmem:[#allocation10 + $0x20] sm:$0xff]   ;;  %5705 = vst [vmem:[#allocation22_spill] sm:$0xff] %v5092_v23 }
  0xb9   :  { %3898 = vmatpush3.bf16.msra.mxu0 %v4372_v43  ;;  %v4387_v43 = vld [vmem:[#allocation7 + $0x178] sm:$0xff]   ;;  %v331_v51 = vadd.f32 %v330_v44, %v328_v41  ;;  %v5086_v21 = vld [vmem:[#allocation10 + $0xa0] sm:$0xff]   ;;  %v5096_v24 = vld [vmem:[#allocation10 + $0x28] sm:$0xff]  }
  0xba   :  { %3899 = vmatprep.subr.bf16.mxu0 %v4375_v46  ;;  %3922 = vmatpush3.bf16.msra.mxu1 %v4378_v48  ;;  %v4390_v46 = vld [vmem:[#allocation7 + $0x1b8] sm:$0xff]   ;;  %v306_v42 = vadd.f32 %v305_v33, %v303_v19  ;;  %v341_v48 = vadd.f32 %v340_v12, %v338_v30  ;;  %5704 = vst [vmem:[#allocation21_spill] sm:$0xff] %v5086_v21  ;;  %v5098_v25 = vld [vmem:[#allocation10 + $0xa8] sm:$0xff]   ;;  %v5102_v19 = vld [vmem:[#allocation10 + $0x70] sm:$0xff]  }
  0xbb   :  { %3923 = vmatprep.subr.bf16.mxu1 %v4381_v31  ;;  %979 = vmatprep.mubr.bf16.mxu0 %v352_v47  ;;  %v351_v53 = vpack.c.bf16 %v331_v51, %v331_v51  ;;  %5706 = vst [vmem:[#allocation23_spill] sm:$0xff] %v5098_v25  ;;  %v5114_v63 = vld [vmem:[#allocation10 + $0x78] sm:$0xff]   ;;  %v5128_v41 = vld [vmem:[#allocation10 + $0x140] sm:$0xff]  }
  0xbc   :  { %v345_v49 = vmul.f32 %v344_v22, %v306_v42  ;;  %v353_v40 = vpack.c.bf16 %v341_v48, %v341_v48  ;;  %v5090_v22 = vld [vmem:[#allocation10 + $0x68] sm:$0xff]   ;;  %v5116_v29 = vld [vmem:[#allocation10 + $0xf8] sm:$0xff]  }
  0xbd   :  { %3900 = vmatpush3.bf16.msra.mxu0 %v4376_v57  ;;  %v4544_v31 = vpop.eup %4543  ;;  %v4393_v57 = vld [vmem:[#allocation5 + $0x10] sm:$0xff]   ;;  %5709 = vst [vmem:[#allocation26_spill] sm:$0xff] %v5116_v29  ;;  %v5120_v30 = vld [vmem:[#allocation10 + $0x38] sm:$0xff]  }
  0xbe   :  { %3901 = vmatprep.subr.bf16.mxu0 %v4379_v4  ;;  %3924 = vmatpush3.bf16.msra.mxu1 %v4382_v0  ;;  %v346_v34 = vadd.f32 %v345_v49, %v343_v36  ;;  %v125_v56 = vadd.f32 1.0, %v4544_v31  ;;  %v5036_v4 = vld [vmem:[#allocation10] sm:$0xff]   ;;  %v5054_v0 = vld [vmem:[#allocation10 + $0xd0] sm:$0xff]   ;;  %v5122_v38 = vld [vmem:[#allocation10 + $0xb8] sm:$0xff]  }
  0xbf   :  { %3925 = vmatprep.subr.bf16.mxu1 %v4385_v10  ;;  %v5060_v10 = vld [vmem:[#allocation10 + $0x10] sm:$0xff]   ;;  %5710 = vst [vmem:[#allocation27_spill] sm:$0xff] %v5122_v38 }
  0xc0   :  { %v354_v54 = vpack.c.bf16 %v346_v34, %v346_v34  ;;  %4545 = vrcp.f32 %v125_v56 }
  0xc1   :  { %3902 = vmatpush3.bf16.msra.mxu0 %v4380_v9  ;;  %v5052_v9 = vld [vmem:[#allocation10 + $0x50] sm:$0xff]  }
  0xc2   :  { %3903 = vmatprep.subr.bf16.mxu0 %v4383_v17  ;;  %3926 = vmatpush3.bf16.msra.mxu1 %v4386_v27  ;;  %v5074_v17 = vld [vmem:[#allocation10 + $0x98] sm:$0xff]   ;;  %v5108_v27 = vld [vmem:[#allocation10 + $0x30] sm:$0xff]  }
  0xc3   :  { %3927 = vmatprep.subr.bf16.mxu1 %v4389_v28  ;;  %1019 = vmatprep.mubr.bf16.mxu1 %v354_v54  ;;  %v5110_v28 = vld [vmem:[#allocation10 + $0xb0] sm:$0xff]  }
  0xc4   :  { %5708 = vst [vmem:[#allocation25_spill] sm:$0xff] %v5110_v28 }
  0xc5   :  { %3904 = vmatpush3.bf16.msra.mxu0 %v4384_v26  ;;  %v5104_v26 = vld [vmem:[#allocation10 + $0xf0] sm:$0xff]  }
  0xc6   :  { %3905 = vmatprep.subr.bf16.mxu0 %v4387_v43  ;;  %3928 = vmatpush3.bf16.msra.mxu1 %v4390_v46  ;;  %5707 = vst [vmem:[#allocation24_spill] sm:$0xff] %v5104_v26  ;;  %v5130_v43 = vld [vmem:[#allocation10 + $0x1c0] sm:$0xff]  }
  0xc7   :  { %3944 = vmatprep.subr.bf16.mxu1 %v5032_v35  ;;  %5711 = vst [vmem:[#allocation28_spill] sm:$0xff] %v5130_v43 }
  0xc9   :  { %3906 = vmatpush3.bf16.msra.mxu0 %v4388_v50  ;;  %1020 = vmatmul.mubr.bf16.vlgmr.msra.gmra.mrb[4].mxu1 %v353_v40 }
  0xca   :  { %4235 = vmatprep.subr.bf16.mxu0 %v5686_v39  ;;  %v4546_v62 = vpop.eup %4545  ;;  %3945 = vmatpush3.bf16.msra.mxu1 %v5036_v4 }
  0xcb   :  { %v128_v52 = vmul.f32 %v4546_v62, %v4903_v32  ;;  %v5044_v32 = vld [vmem:[#allocation10 + $0x48] sm:$0xff]  }
  0xcc   :  { %980 = vmatmul.mubr.bf16.vlgmr.msra.gmra.mrb[4].mxu0 %v351_v53  ;;  %3946 = vmatprep.subr.bf16.mxu1 %v5044_v32 }
  0xcd   :  { %4236 = vmatpush3.bf16.msra.mxu0 %v4391_v16  ;;  %4251 = vmatprep.mubr.msk.bf16.mxu0 %vm4759_vm1, %v5686_v39  ;;  %v129_v2 = vpack.c.bf16 %v128_v52, %v128_v52 }
  0xce   :  { %4237 = vmatprep.subr.bf16.mxu0 %v5686_v39  ;;  %3947 = vmatpush3.bf16.msra.mxu1 %v5048_v7 }
  0xcf   :  { %3948 = vmatprep.subr.bf16.mxu1 %v5052_v9 }
  0xd1   :  { %4238 = vmatpush3.bf16.msra.mxu0 %v4392_v55 }
  0xd2   :  { %4239 = vmatprep.subr.bf16.mxu0 %v5686_v39  ;;  %3949 = vmatpush3.bf16.msra.mxu1 %v5060_v10 }
  0xd3   :  { %3950 = vmatprep.subr.bf16.mxu1 %v5066_v13 }
  0xd5   :  { %4240 = vmatpush3.bf16.msra.mxu0 %v4393_v57 }
  0xd6   :  { %4241 = vmatprep.subr.bf16.mxu0 %v5686_v39  ;;  %3951 = vmatpush3.bf16.msra.mxu1 %v5072_v15 }
  0xd7   :  { %3952 = vmatprep.subr.bf16.mxu1 %v5078_v37 }
  0xd9   :  { %4242 = vmatpush3.bf16.msra.mxu0 %v4394_v58 }
  0xda   :  { %4243 = vmatprep.subr.bf16.mxu0 %v5686_v39  ;;  %3953 = vmatpush3.bf16.msra.mxu1 %v5084_v20 }
  0xdb   :  { %3954 = vmatprep.subr.bf16.mxu1 %v5090_v22 }
  0xdd   :  { %4244 = vmatpush3.bf16.msra.mxu0 %v4395_v59 }
  0xde   :  { %4245 = vmatprep.subr.bf16.mxu0 %v5686_v39  ;;  %3955 = vmatpush3.bf16.msra.mxu1 %v5096_v24 }
  0xdf   :  { %3956 = vmatprep.subr.bf16.mxu1 %v5102_v19 }
  0xe1   :  { %4246 = vmatpush3.bf16.msra.mxu0 %v4396_v60 }
  0xe2   :  { %4247 = vmatprep.subr.bf16.mxu0 %v5686_v39  ;;  %3957 = vmatpush3.bf16.msra.mxu1 %v5108_v27 }
  0xe3   :  { %3958 = vmatprep.subr.bf16.mxu1 %v5114_v63 }
  0xe5   :  { %4248 = vmatpush3.bf16.msra.mxu0 %v4397_v61 }
  0xe6   :  { %4249 = vmatprep.subr.bf16.mxu0 %v5686_v39  ;;  %3959 = vmatpush3.bf16.msra.mxu1 %v5120_v30 }
  0xe7   :  { %3988 = vmatprep.subr.bf16.mxu1 %v5128_v41 }
  0xe9   :  { %4250 = vmatpush3.bf16.msra.mxu0 %v4398_v1 }
  0xea   :  { %3966 = vmatprep.subr.bf16.mxu0 %v5034_v3 }
  0xec   :  { %4252 = vmatmul.mubr.bf16.vlgmr.msra.gmra.mrb[8].mxu0 %v129_v2 }
  0xed   :  { %3967 = vmatpush3.bf16.msra.mxu0 %v5038_v5 }
  0xee   :  { %3968 = vmatprep.subr.bf16.mxu0 %v5046_v6 }
  0xf1   :  { %3969 = vmatpush3.bf16.msra.mxu0 %v5050_v8 }
  0xf2   :  { %3970 = vmatprep.subr.bf16.mxu0 %v5054_v0 }
  0xf5   :  { %3971 = vmatpush3.bf16.msra.mxu0 %v5062_v11 }
  0xf6   :  { %3972 = vmatprep.subr.bf16.mxu0 %v5068_v14 }
  0xf9   :  { %3973 = vmatpush3.bf16.msra.mxu0 %v5074_v17 }
  0xfa   :  { %3974 = vmatprep.subr.bf16.mxu0 %v5080_v18 }
  0xfd   :  { %3975 = vmatpush3.bf16.msra.mxu0 %v5086_v21 }
  0xfe   :  { %3976 = vmatprep.subr.bf16.mxu0 %v5092_v23 }
 0x101   :  { %3977 = vmatpush3.bf16.msra.mxu0 %v5098_v25 }
 0x102   :  { %3978 = vmatprep.subr.bf16.mxu0 %v5104_v26 }
 0x105   :  { %3979 = vmatpush3.bf16.msra.mxu0 %v5110_v28 }
 0x106   :  { %3980 = vmatprep.subr.bf16.mxu0 %v5116_v29 }
 0x109   :  { %3981 = vmatpush3.bf16.msra.mxu0 %v5122_v38 }
 0x10a   :  { %4010 = vmatprep.subr.bf16.mxu0 %v5130_v43 }
 0x17c   :  { %v3885_v44 = vpop.f32.mrb[0].mxu1 }
 0x17d   :  { %v3886_v33 = vpop.f32.mrb[1].mxu1 }
 0x17e   :  { %v3887_v46 = vadd.f32 %v3886_v33, %v3885_v44  ;;  %v3888_v12 = vpop.f32.mrb[2].mxu1 }
 0x17f   :  { %v3863_v45 = vpop.f32.mrb[0].mxu0  ;;  %v3889_v36 = vpop.f32.mrb[3].mxu1 }
 0x180   :  { %v3864_v42 = vpop.f32.mrb[1].mxu0 }
 0x181   :  { %v3865_v50 = vadd.f32 %v3864_v42, %v3863_v45  ;;  %v3866_v47 = vpop.f32.mrb[2].mxu0 }
 0x182   :  { %v3867_v48 = vpop.f32.mrb[3].mxu0 }
 0x183   :  { %v942_v51 = vadd.f32 %v3887_v46, %v3865_v50 }
 0x19c   :  { %v3929_v49 = vpop.f32.mrb[4].mxu1 }
 0x19d   :  { %v3930_v16 = vpop.f32.mrb[5].mxu1 }
 0x19e   :  { %v3931_v53 = vadd.f32 %v3930_v16, %v3929_v49  ;;  %v3932_v54 = vpop.f32.mrb[6].mxu1 }
 0x19f   :  { %v3907_v34 = vpop.f32.mrb[4].mxu0  ;;  %v3933_v56 = vpop.f32.mrb[7].mxu1 }
 0x1a0   :  { %v3908_v40 = vpop.f32.mrb[5].mxu0 }
 0x1a1   :  { %v3909_v31 = vadd.f32 %v3908_v40, %v3907_v34  ;;  %v3910_v55 = vpop.f32.mrb[6].mxu0 }
 0x1a2   :  { %v3911_v57 = vpop.f32.mrb[7].mxu0 }
 0x1a3   :  { %v982_v58 = vadd.f32 %v3909_v31, %v942_v51 }
 0x1a5   :  { %v1022_v59 = vadd.f32 %v3931_v53, %v982_v58 }
 0x1bf   :  { %v1109_v60 = vpop.f32.mrb[8].mxu0 }
 0x1c0   :  { %v1110_v61 = vadd.f32 %v1109_v60, %v1022_v59  ;;  %v4253_v62 = vpop.f32.mrb[9].mxu0 }
 0x1c1   :  { %v1112_v1 = vpop.f32.mrb[10].mxu0 }
 0x1c2   :  { %4547 = vtanh.f32 %v1110_v61  ;;  %v4254_v52 = vpop.f32.mrb[11].mxu0 }
 0x1cc   :  { %v5134_v2 = vpop.eup %4547 }
 0x1cd   :  { %v5137_v44 = vadd.f32 2.2, %v5134_v2  ;;  %v3636_v33 = vadd.f32 1.8, %v5134_v2  ;;  %v5141_v45 = vadd.f32 1.4, %v5134_v2 }
 0x1ce   :  { %v5144_v46 = vadd.f32 1.0, %v5134_v2  ;;  %v5147_v12 = vadd.f32 0.6, %v5134_v2  ;;  %v5150_v42 = vadd.f32 0.19999999, %v5134_v2  ;;  %v5153_v36 = vadd.f32 -1.0, %v5134_v2 }
 0x1cf   :  { %vm1156_vm2 = vcmp.ge.f32.partialorder %v3636_v33, 0.0  ;;  %vm1157_vm3 = vcmp.lt.f32.partialorder %v3636_v33, 0.4  ;;  %vm1161_vm4 = vcmp.ge.f32.partialorder %v5141_v45, 0.0  ;;  %vm1162_vm5 = vcmp.lt.f32.partialorder %v5141_v45, 0.4 }
 0x1d0   :  { %vm1158_vm6 = vmand %vm1156_vm2, %vm1157_vm3  ;;  %vm1166_vm7 = vcmp.ge.f32.partialorder %v5144_v46, 0.0  ;;  %vm1167_vm8 = vcmp.lt.f32.partialorder %v5144_v46, 0.4  ;;  %vm1171_vm9 = vcmp.ge.f32.partialorder %v5147_v12, 0.0  ;;  %vm1172_vm10 = vcmp.lt.f32.partialorder %v5147_v12, 0.4 }
 0x1d1   :  { %v3647_v50 = vsel %vm1158_vm6, 1.0, %v5686_v39  ;;  %vm1163_vm11 = vmand %vm1161_vm4, %vm1162_vm5  ;;  %v5163_v47 = vmul.f32 2.5, %v5137_v44  ;;  %v1211_v48 = vmul.f32 2.5, %v3636_v33  ;;  %v1216_v51 = vmul.f32 2.5, %v5141_v45 }
 0x1d2   :  { %v3648_v49 = vsel %vm1163_vm11, 1.0, %v5686_v39  ;;  %vm1168_vm12 = vmand %vm1166_vm7, %vm1167_vm8  ;;  %v1221_v34 = vmul.f32 2.5, %v5144_v46  ;;  %v1261_v16 = vmul.f32 1.25, %v3636_v33  ;;  %v1266_v40 = vmul.f32 1.25, %v5141_v45 }
 0x1d3   :  { %v3649_v53 = vsel %vm1168_vm12, 1.0, %v5686_v39  ;;  %vm1173_vm13 = vmand %vm1171_vm9, %vm1172_vm10  ;;  %v1208_v54 = vsub.f32 2.0, %v5163_v47  ;;  %v1212_v31 = vmul.f32 %v3647_v50, %v1211_v48  ;;  %v1213_v55 = vsub.f32 2.0, %v1211_v48 }
 0x1d4   :  { %v3650_v56 = vsel %vm1173_vm13, 1.0, %v5686_v39  ;;  %v1217_v57 = vmul.f32 %v3648_v49, %v1216_v51  ;;  %v1218_v58 = vsub.f32 2.0, %v1216_v51  ;;  %v1222_v59 = vmul.f32 %v3649_v53, %v1221_v34 }
 0x1d5   :  { %v5172_v60 = vmul.f32 %v3647_v50, %v1208_v54  ;;  %v1214_v61 = vmul.f32 %v3648_v49, %v1213_v55  ;;  %v1223_v62 = vsub.f32 2.0, %v1221_v34  ;;  %v1263_v1 = vsub.f32 1.5, %v1261_v16 }
 0x1d6   :  { %v1219_v52 = vmul.f32 %v3649_v53, %v1218_v58  ;;  %v1268_v43 = vsub.f32 1.5, %v1266_v40  ;;  %v1306_v38 = vmul.f32 0.8333333, %v3636_v33  ;;  %v5175_v29 = vadd.f32 -0.20000005, %v5134_v2 }
 0x1d7   :  { %v1215_v28 = vadd.f32 %v1214_v61, %v1212_v31  ;;  %v1224_v26 = vmul.f32 %v3650_v56, %v1223_v62  ;;  %vm1176_vm14 = vcmp.ge.f32.partialorder %v5150_v42, 0.0  ;;  %vm1177_vm15 = vcmp.lt.f32.partialorder %v5150_v42, 0.4 }
 0x1d8   :  { %v1220_v48 = vadd.f32 %v1219_v52, %v1217_v57  ;;  %v1308_v51 = vsub.f32 1.3333334, %v1306_v38  ;;  %vm1178_vm0 = vmand %vm1176_vm14, %vm1177_vm15  ;;  %vm1181_vm2 = vcmp.ge.f32.partialorder %v5175_v29, 0.0  ;;  %vm1182_vm3 = vcmp.lt.f32.partialorder %v5175_v29, 0.4 }
 0x1d9   :  { %v1225_v50 = vadd.f32 %v1224_v26, %v1222_v59  ;;  %v1262_v49 = vmul.f32 %v1261_v16, %v1215_v28  ;;  %v3651_v33 = vsel %vm1178_vm0, 1.0, %v5686_v39  ;;  %vm1183_vm4 = vmand %vm1181_vm2, %vm1182_vm3  ;;  %v1226_v34 = vmul.f32 2.5, %v5147_v12 }
 0x1da   :  { %v1264_v53 = vmul.f32 %v1263_v1, %v1220_v48  ;;  %v1267_v54 = vmul.f32 %v1266_v40, %v1220_v48  ;;  %v5184_v31 = vsel %vm1183_vm4, 1.0, %v5686_v39  ;;  %v1231_v55 = vmul.f32 2.5, %v5150_v42 }
 0x1db   :  { %v1269_v57 = vmul.f32 %v1268_v43, %v1225_v50  ;;  %v1227_v58 = vmul.f32 %v3650_v56, %v1226_v34  ;;  %v1228_v61 = vsub.f32 2.0, %v1226_v34  ;;  %v1271_v62 = vmul.f32 1.25, %v5144_v46 }
 0x1dc   :  { %v1265_v52 = vadd.f32 %v1264_v53, %v1262_v49  ;;  %v1232_v26 = vmul.f32 %v3651_v33, %v1231_v55  ;;  %v1233_v16 = vsub.f32 2.0, %v1231_v55  ;;  %v1276_v59 = vmul.f32 1.25, %v5147_v12 }
 0x1dd   :  { %v1270_v25 = vadd.f32 %v1269_v57, %v1267_v54  ;;  %v1229_v23 = vmul.f32 %v3651_v33, %v1228_v61  ;;  %v1272_v21 = vmul.f32 %v1271_v62, %v1225_v50  ;;  %v1273_v1 = vsub.f32 1.5, %v1271_v62 }
 0x1de   :  { %v1307_v40 = vmul.f32 %v1306_v38, %v1265_v52  ;;  %v1234_v48 = vmul.f32 %v5184_v31, %v1233_v16  ;;  %v1278_v39 = vsub.f32 1.5, %v1276_v59  ;;  %v1316_v18 = vmul.f32 0.8333333, %v5144_v46 }
 0x1df   :  { %v1309_v43 = vmul.f32 %v1308_v51, %v1270_v25  ;;  %v1230_v56 = vadd.f32 %v1229_v23, %v1227_v58  ;;  %vm1151_vm5 = vcmp.ge.f32.partialorder %v5137_v44, 0.0  ;;  %vm1152_vm6 = vcmp.lt.f32.partialorder %v5137_v44, 0.4 }
 0x1e0   :  { %v1235_v49 = vadd.f32 %v1234_v48, %v1232_v26  ;;  %v1318_v34 = vsub.f32 1.3333334, %v1316_v18  ;;  %vm1153_vm7 = vmand %vm1151_vm5, %vm1152_vm6  ;;  %v1256_v53 = vmul.f32 1.25, %v5137_v44  ;;  %v1301_v50 = vmul.f32 0.8333333, %v5137_v44 }
 0x1e1   :  { %v1310_v33 = vadd.f32 %v1309_v43, %v1307_v40  ;;  %v1274_v38 = vmul.f32 %v1273_v1, %v1230_v56  ;;  %v1277_v54 = vmul.f32 %v1276_v59, %v1230_v56  ;;  %v5712_v55 = vmov 0.0  }
 0x1e2   :  { %v3646_v57 = vsel %vm1153_vm7, 1.0, %v5712_v55  ;;  %v1279_v61 = vmul.f32 %v1278_v39, %v1235_v49  ;;  %v1258_v23 = vsub.f32 1.5, %v1256_v53  ;;  %v1303_v51 = vsub.f32 1.3333334, %v1301_v50 }
 0x1e3   :  { %v1207_v46 = vmul.f32 %v3646_v57, %v5163_v47  ;;  %v1342_v58 = vpack.c.bf16 %v1310_v33, %v1310_v33  ;;  %v1275_v62 = vadd.f32 %v1274_v38, %v1272_v21  ;;  %v1311_v26 = vmul.f32 0.8333333, %v5141_v45 }
 0x1e4   :  { %v5199_v16 = vadd.f32 -0.6, %v5134_v2  ;;  %v5201_v48 = vadd.f32 %v1279_v61, %v1277_v54  ;;  %v1259_v1 = vmul.f32 %v1258_v23, %v1215_v28  ;;  %v1304_v59 = vmul.f32 %v1303_v51, %v1265_v52  ;;  %v5215_v61 = vld [vmem:[#allocation10 + $0x180] sm:$0xff]  }
 0x1e5   :  { %v1210_v44 = vadd.f32 %v5172_v60, %v1207_v46  ;;  %1893 = vmatprep.mubr.bf16.mxu1 %v1342_v58  ;;  %v1317_v40 = vmul.f32 %v1316_v18, %v1275_v62  ;;  %v1312_v39 = vmul.f32 %v1311_v26, %v1270_v25  ;;  %v1313_v43 = vsub.f32 1.3333334, %v1311_v26 }
 0x1e6   :  { %vm1186_vm8 = vcmp.ge.f32.partialorder %v5199_v16, 0.0  ;;  %v1319_v47 = vmul.f32 %v1318_v34, %v5201_v48  ;;  %vm1187_vm9 = vcmp.lt.f32.partialorder %v5199_v16, 0.4  ;;  %vm1191_vm10 = vcmp.ge.f32.partialorder %v5153_v36, 0.0 }
 0x1e7   :  { %v1257_v21 = vmul.f32 %v1256_v53, %v1210_v44  ;;  %v1314_v45 = vmul.f32 %v1313_v43, %v1275_v62  ;;  %vm1188_vm11 = vmand %vm1186_vm8, %vm1187_vm9  ;;  %vm1192_vm12 = vcmp.lt.f32.partialorder %v5153_v36, 0.4  ;;  %v1236_v28 = vmul.f32 2.5, %v5175_v29  ;;  %v5217_v44 = vld [vmem:[#allocation10 + $0x1c8] sm:$0xff]   ;;  %v5221_v43 = vld [vmem:[#allocation10 + $0x100] sm:$0xff]  }
 0x1e8   :  { %v1241_v60 = vmul.f32 2.5, %v5199_v16  ;;  %v1320_v18 = vadd.f32 %v1319_v47, %v1317_v40  ;;  %v3653_v52 = vsel %vm1188_vm11, 1.0, %v5712_v55  ;;  %vm1193_vm13 = vmand %vm1191_vm10, %vm1192_vm12  ;;  %v1281_v56 = vmul.f32 1.25, %v5150_v42 }
 0x1e9   :  { %v1260_v25 = vadd.f32 %v1259_v1, %v1257_v21  ;;  %v1315_v34 = vadd.f32 %v1314_v45, %v1312_v39  ;;  %v3654_v53 = vsel %vm1193_vm13, 1.0, %v5712_v55  ;;  %v1237_v33 = vmul.f32 %v5184_v31, %v1236_v28 }
 0x1ea   :  { %v1238_v38 = vsub.f32 2.0, %v1236_v28  ;;  %v1344_v54 = vpack.c.bf16 %v1320_v18, %v1320_v18  ;;  %v1242_v46 = vmul.f32 %v3653_v52, %v1241_v60  ;;  %v1243_v23 = vsub.f32 2.0, %v1241_v60  ;;  %v5227_v18 = vld [vmem:[#allocation10 + $0x148] sm:$0xff]  }
 0x1eb   :  { %v1302_v57 = vmul.f32 %v1301_v50, %v1260_v25  ;;  %v1343_v51 = vpack.c.bf16 %v1315_v34, %v1315_v34  ;;  %v1282_v62 = vmul.f32 %v1281_v56, %v1235_v49  ;;  %v1283_v26 = vsub.f32 1.5, %v1281_v56  ;;  %v5229_v25 = vld [vmem:[#allocation10 + $0x188] sm:$0xff]   ;;  %v5232_v56 = vld [vmem:[#allocation10 + $0x1d0] sm:$0xff]  }
 0x1ec   :  { %v1239_v58 = vmul.f32 %v3653_v52, %v1238_v38  ;;  %1933 = vmatprep.mubr.bf16.mxu0 %v1344_v54  ;;  %v1244_v40 = vmul.f32 %v3654_v53, %v1243_v23  ;;  %v1286_v39 = vmul.f32 1.25, %v5175_v29  ;;  %v1326_v31 = vmul.f32 0.8333333, %v5150_v42  ;;  %5713 = vst [vmem:[#allocation29_spill] sm:$0xff] %v5229_v25  ;;  %v5238_v23 = vld [vmem:[#allocation10 + $0x108] sm:$0xff]  }
 0x1ed   :  { %v1305_v1 = vadd.f32 %v1304_v59, %v1302_v57  ;;  %1934 = vmatmul.mubr.bf16.vlgmr.msra.gmra.mrb[12].mxu0 %v1343_v51  ;;  %v3644_v47 = vadd.f32 -1.4000001, %v5134_v2  ;;  %v3645_v21 = vadd.f32 -1.8, %v5134_v2  ;;  %v1246_v49 = vmul.f32 2.5, %v5153_v36 }
 0x1ee   :  { %v1240_v50 = vadd.f32 %v1239_v58, %v1237_v33  ;;  %4011 = vmatpush3.bf16.msra.mxu0 %v5215_v61  ;;  %v1245_v28 = vadd.f32 %v1244_v40, %v1242_v46  ;;  %v1288_v59 = vsub.f32 1.5, %v1286_v39  ;;  %v1328_v60 = vsub.f32 1.3333334, %v1326_v31 }
 0x1ef   :  { %v1341_v45 = vpack.c.bf16 %v1305_v1, %v1305_v1  ;;  %vm1196_vm14 = vcmp.ge.f32.partialorder %v3644_v47, 0.0  ;;  %vm1197_vm15 = vcmp.lt.f32.partialorder %v3644_v47, 0.4  ;;  %4012 = vmatprep.subr.bf16.mxu0 %v5217_v44  ;;  %vm1201_vm2 = vcmp.ge.f32.partialorder %v3645_v21, 0.0 }
 0x1f0   :  { %v1284_v42 = vmul.f32 %v1283_v26, %v1240_v50  ;;  %v1287_v52 = vmul.f32 %v1286_v39, %v1240_v50  ;;  %v1289_v34 = vmul.f32 %v1288_v59, %v1245_v28  ;;  %vm1198_vm0 = vmand %vm1196_vm14, %vm1197_vm15  ;;  %vm1202_vm3 = vcmp.lt.f32.partialorder %v3645_v21, 0.4  ;;  %v5253_v21 = vld [vmem:[#allocation10 + $0x1d8] sm:$0xff]  }
 0x1f1   :  { %1894 = vmatmul.mubr.bf16.vlgmr.msra.gmra.mrb[8].mxu1 %v1341_v45  ;;  %v1247_v33 = vmul.f32 %v3654_v53, %v1246_v49  ;;  %v3655_v54 = vsel %vm1198_vm0, 1.0, %v5712_v55  ;;  %vm1203_vm4 = vmand %vm1201_vm2, %vm1202_vm3  ;;  %v1248_v57 = vsub.f32 2.0, %v1246_v49  ;;  %v1251_v46 = vmul.f32 2.5, %v3644_v47  ;;  %v5247_v53 = vld [vmem:[#allocation10 + $0x150] sm:$0xff]  }
 0x1f2   :  { %3989 = vmatpush3.bf16.msra.mxu1 %v5221_v43  ;;  %v5235_v38 = vadd.f32 %v1284_v42, %v1282_v62  ;;  %v5240_v51 = vadd.f32 %v1289_v34, %v1287_v52  ;;  %v3656_v58 = vsel %vm1203_vm4, 1.0, %v5712_v55  ;;  %v1291_v26 = vmul.f32 1.25, %v5199_v16  ;;  %4013 = vmatpush3.bf16.msra.mxu0 %v5229_v25  ;;  %v5249_v62 = vld [vmem:[#allocation10 + $0x190] sm:$0xff]  }
 0x1f3   :  { %v1296_v1 = vmul.f32 1.25, %v5153_v36  ;;  %3990 = vmatprep.subr.bf16.mxu1 %v5227_v18  ;;  %v1249_v39 = vmul.f32 %v3655_v54, %v1248_v57  ;;  %v1252_v50 = vmul.f32 %v3655_v54, %v1251_v46  ;;  %v1253_v47 = vsub.f32 2.0, %v1251_v46  ;;  %4014 = vmatprep.subr.bf16.mxu0 %v5232_v56  ;;  %v5257_v52 = vld [vmem:[#allocation10 + $0x110] sm:$0xff]  }
 0x1f4   :  { %v1327_v40 = vmul.f32 %v1326_v31, %v5235_v38  ;;  %v1329_v49 = vmul.f32 %v1328_v60, %v5240_v51  ;;  %v1292_v59 = vmul.f32 %v1291_v26, %v1245_v28  ;;  %v1293_v42 = vsub.f32 1.5, %v1291_v26  ;;  %v5261_v31 = vld [vmem:[#allocation10 + $0x158] sm:$0xff]  }
 0x1f5   :  { %v1250_v36 = vadd.f32 %v1249_v39, %v1247_v33  ;;  %v1254_v45 = vmul.f32 %v3656_v58, %v1253_v47  ;;  %v1298_v25 = vsub.f32 1.5, %v1296_v1  ;;  %v1336_v60 = vmul.f32 0.8333333, %v5199_v16  ;;  %v5265_v28 = vld [vmem:[#allocation10 + $0x198] sm:$0xff]   ;;  %v5267_v58 = vld [vmem:[#allocation10 + $0x1e0] sm:$0xff]  }
 0x1f6   :  { %3991 = vmatpush3.bf16.msra.mxu1 %v5238_v23  ;;  %v1330_v34 = vadd.f32 %v1329_v49, %v1327_v40  ;;  %4015 = vmatpush3.bf16.msra.mxu0 %v5249_v62  ;;  %v5270_v39 = vld [vmem:[#allocation10 + $0x118] sm:$0xff]   ;;  %v5276_v49 = vld [vmem:[#allocation10 + $0x1a0] sm:$0xff]  }
 0x1f7   :  { %3992 = vmatprep.subr.bf16.mxu1 %v5247_v53  ;;  %v1255_v54 = vadd.f32 %v1254_v45, %v1252_v50  ;;  %v1294_v57 = vmul.f32 %v1293_v42, %v1250_v36  ;;  %v1297_v46 = vmul.f32 %v1296_v1, %v1250_v36  ;;  %4016 = vmatprep.subr.bf16.mxu0 %v5253_v21  ;;  %v5273_v50 = vld [vmem:[#allocation10 + $0x160] sm:$0xff]   ;;  %v1338_v47 = vsub.f32 1.3333334, %v1336_v60  ;;  %v5279_v36 = vld [vmem:[#allocation10 + $0x1e8] sm:$0xff]  }
 0x1f8   :  { %v1346_v33 = vpack.c.bf16 %v1330_v34, %v1330_v34  ;;  %v5282_v45 = vld [vmem:[#allocation10 + $0x120] sm:$0xff]   ;;  %v1331_v42 = vmul.f32 0.8333333, %v5175_v29 }
 0x1f9   :  { %v1295_v26 = vadd.f32 %v1294_v57, %v1292_v59  ;;  %v1299_v40 = vmul.f32 %v1298_v25, %v1255_v54  ;;  %v5285_v59 = vld [vmem:[#allocation10 + $0x168] sm:$0xff]   ;;  %v5292_v57 = vld [vmem:[#allocation10 + $0x1f0] sm:$0xff]  }
 0x1fa   :  { %3993 = vmatpush3.bf16.msra.mxu1 %v5257_v52  ;;  %1973 = vmatprep.mubr.bf16.mxu1 %v1346_v33  ;;  %5714 = vst [vmem:[#allocation30_spill] sm:$0xff] %v5285_v59  ;;  %v5289_v54 = vld [vmem:[#allocation10 + $0x1a8] sm:$0xff]   ;;  %5716 = vst [vmem:[#allocation32_spill] sm:$0xff] %v5292_v57  ;;  %v1333_v29 = vsub.f32 1.3333334, %v1331_v42 }
 0x1fb   :  { %3994 = vmatprep.subr.bf16.mxu1 %v5261_v31  ;;  %v1300_v1 = vadd.f32 %v1299_v40, %v1297_v46  ;;  %v1337_v16 = vmul.f32 %v1336_v60, %v1295_v26  ;;  %4017 = vmatpush3.bf16.msra.mxu0 %v5265_v28  ;;  %5715 = vst [vmem:[#allocation31_spill] sm:$0xff] %v5289_v54  ;;  %v1321_v46 = vmul.f32 0.8333333, %v5147_v12  ;;  %v5296_v33 = vld [vmem:[#allocation10 + $0x128] sm:$0xff]   ;;  %v5299_v40 = vld [vmem:[#allocation10 + $0x170] sm:$0xff]  }
 0x1fc   :  { %4018 = vmatprep.subr.bf16.mxu0 %v5267_v58 }
 0x1fd   :  { %v1339_v25 = vmul.f32 %v1338_v47, %v1300_v1  ;;  %v5302_v1 = vld [vmem:[#allocation10 + $0x1b0] sm:$0xff]   ;;  %v1323_v12 = vsub.f32 1.3333334, %v1321_v46  ;;  %v1332_v47 = vmul.f32 %v1331_v42, %v5240_v51  ;;  %v5322_v42 = vld [vmem:[#allocation10 + $0x138] sm:$0xff]  }
 0x1fe   :  { %3995 = vmatpush3.bf16.msra.mxu1 %v5270_v39  ;;  %5718 = vst [vmem:[#allocation34_spill] sm:$0xff] %v5322_v42 }
 0x1ff   :  { %3996 = vmatprep.subr.bf16.mxu1 %v5273_v50  ;;  %v1340_v34 = vadd.f32 %v1339_v25, %v1337_v16  ;;  %4019 = vmatpush3.bf16.msra.mxu0 %v5276_v49  ;;  %v5305_v16 = vld [vmem:[#allocation10 + $0x1f8] sm:$0xff]   ;;  %v1334_v25 = vmul.f32 %v1333_v29, %v1295_v26  ;;  %v3634_v26 = vmul.f32 -1.442695, %v5134_v2 }
 0x200   :  { %4020 = vmatprep.subr.bf16.mxu0 %v5279_v36 }
 0x201   :  { %v1348_v60 = vpack.c.bf16 %v1340_v34, %v1340_v34  ;;  %v5309_v34 = vld [vmem:[#allocation10 + $0x130] sm:$0xff]   ;;  %v1335_v51 = vadd.f32 %v1334_v25, %v1332_v47  ;;  %4549 = vpow2.f32 %v3634_v26 }
 0x202   :  { %3997 = vmatpush3.bf16.msra.mxu1 %v5282_v45 }
 0x203   :  { %3998 = vmatprep.subr.bf16.mxu1 %v5285_v59  ;;  %2013 = vmatprep.mubr.bf16.mxu0 %v1348_v60  ;;  %v5312_v59 = vld [vmem:[#allocation10 + $0x178] sm:$0xff]   ;;  %v1322_v60 = vmul.f32 %v1321_v46, %v5201_v48  ;;  %v1347_v48 = vpack.c.bf16 %v1335_v51, %v1335_v51 }
 0x204   :  { %4021 = vmatpush3.bf16.msra.mxu0 %v5289_v54  ;;  %v1324_v54 = vmul.f32 %v1323_v12, %v5235_v38  ;;  %v5328_v38 = vld [vmem:[#allocation8] sm:$0xff]  }
 0x205   :  { %4022 = vmatprep.subr.bf16.mxu0 %v5292_v57  ;;  %v5317_v57 = vld [vmem:[#allocation10 + $0x1b8] sm:$0xff]   ;;  %5719 = vst [vmem:[#allocation35_spill] sm:$0xff] %v5328_v38 }
 0x206   :  { %3999 = vmatpush3.bf16.msra.mxu1 %v5296_v33  ;;  %5717 = vst [vmem:[#allocation33_spill] sm:$0xff] %v5317_v57  ;;  %v1325_v29 = vadd.f32 %v1324_v54, %v1322_v60  ;;  %v5334_v54 = vld [vmem:[#allocation8 + $0x8] sm:$0xff]  }
 0x207   :  { %4000 = vmatprep.subr.bf16.mxu1 %v5299_v40  ;;  %5720 = vst [vmem:[#allocation36_spill] sm:$0xff] %v5334_v54 }
 0x208   :  { %4023 = vmatpush3.bf16.msra.mxu0 %v5302_v1  ;;  %v1345_v46 = vpack.c.bf16 %v1325_v29, %v1325_v29 }
 0x209   :  { %4024 = vmatprep.subr.bf16.mxu0 %v5305_v16 }
 0x20a   :  { %4001 = vmatpush3.bf16.msra.mxu1 %v5309_v34 }
 0x20b   :  { %4002 = vmatprep.subr.bf16.mxu1 %v5312_v59 }
 0x20c   :  { %4025 = vmatpush3.bf16.msra.mxu0 %v5317_v57 }
 0x20d   :  { %4041 = vmatprep.subr.bf16.mxu0 %v5032_v35  ;;  %v5342_v35 = vld [vmem:[#allocation8 + $0x10] sm:$0xff]  }
 0x20e   :  { %4003 = vmatpush3.bf16.msra.mxu1 %v5322_v42  ;;  %5721 = vst [vmem:[#allocation37_spill] sm:$0xff] %v5342_v35 }
 0x20f   :  { %2014 = vmatmul.mubr.bf16.vlgmr.msra.gmra.mrb[16].mxu0 %v1347_v48  ;;  %4255 = vmatprep.subr.bf16.mxu1 %v5712_v55 }
 0x210   :  { %4042 = vmatpush3.bf16.msra.mxu0 %v5036_v4  ;;  %v4550_v4 = vpop.eup %4549 }
 0x211   :  { %1974 = vmatmul.mubr.bf16.vlgmr.msra.gmra.mrb[12].mxu1 %v1345_v46  ;;  %4043 = vmatprep.subr.bf16.mxu0 %v5044_v32  ;;  %v5348_v32 = vld [vmem:[#allocation8 + $0x18] sm:$0xff]   ;;  %v1119_v12 = vadd.f32 1.0, %v4550_v4 }
 0x212   :  { %4256 = vmatpush3.bf16.msra.mxu1 %v5328_v38  ;;  %4271 = vmatprep.mubr.msk.bf16.mxu1 %vm4759_vm1, %v5712_v55  ;;  %5722 = vst [vmem:[#allocation38_spill] sm:$0xff] %v5348_v32 }
 0x213   :  { %4257 = vmatprep.subr.bf16.mxu1 %v5712_v55  ;;  %4551 = vrcp.f32 %v1119_v12 }
 0x214   :  { %4044 = vmatpush3.bf16.msra.mxu0 %v5048_v7  ;;  %v5354_v7 = vld [vmem:[#allocation8 + $0x20] sm:$0xff]  }
 0x215   :  { %4045 = vmatprep.subr.bf16.mxu0 %v5052_v9  ;;  %5723 = vst [vmem:[#allocation39_spill] sm:$0xff] %v5354_v7  ;;  %v5360_v9 = vld [vmem:[#allocation8 + $0x28] sm:$0xff]  }
 0x216   :  { %4258 = vmatpush3.bf16.msra.mxu1 %v5334_v54  ;;  %5724 = vst [vmem:[#allocation40_spill] sm:$0xff] %v5360_v9 }
 0x217   :  { %4259 = vmatprep.subr.bf16.mxu1 %v5712_v55 }
 0x218   :  { %4046 = vmatpush3.bf16.msra.mxu0 %v5060_v10  ;;  %v5366_v10 = vld [vmem:[#allocation8 + $0x30] sm:$0xff]  }
 0x219   :  { %4047 = vmatprep.subr.bf16.mxu0 %v5066_v13  ;;  %5725 = vst [vmem:[#allocation41_spill] sm:$0xff] %v5366_v10 }
 0x21a   :  { %4260 = vmatpush3.bf16.msra.mxu1 %v5342_v35 }
 0x21b   :  { %4261 = vmatprep.subr.bf16.mxu1 %v5712_v55 }
 0x21c   :  { %4048 = vmatpush3.bf16.msra.mxu0 %v5072_v15  ;;  %v5372_v15 = vld [vmem:[#allocation8 + $0x38] sm:$0xff]  }
 0x21d   :  { %4049 = vmatprep.subr.bf16.mxu0 %v5078_v37  ;;  %v4552_v13 = vpop.eup %4551  ;;  %5726 = vst [vmem:[#allocation42_spill] sm:$0xff] %v5372_v15 }
 0x21e   :  { %4262 = vmatpush3.bf16.msra.mxu1 %v5348_v32  ;;  %v1122_v37 = vmul.f32 %v4552_v13, %v5134_v2 }
 0x21f   :  { %4263 = vmatprep.subr.bf16.mxu1 %v5712_v55 }
 0x220   :  { %4050 = vmatpush3.bf16.msra.mxu0 %v5084_v20  ;;  %v1123_v20 = vpack.c.bf16 %v1122_v37, %v1122_v37 }
 0x221   :  { %4051 = vmatprep.subr.bf16.mxu0 %v5090_v22  ;;  %v5727_v22 = vld [vmem:[#allocation20_spill] sm:$0xff] }
 0x222   :  { %4264 = vmatpush3.bf16.msra.mxu1 %v5354_v7 }
 0x223   :  { %4265 = vmatprep.subr.bf16.mxu1 %v5712_v55 }
 0x224   :  { %4052 = vmatpush3.bf16.msra.mxu0 %v5096_v24  ;;  %v5728_v24 = vld [vmem:[#allocation21_spill] sm:$0xff] }
 0x225   :  { %4053 = vmatprep.subr.bf16.mxu0 %v5102_v19  ;;  %v5730_v19 = vld [vmem:[#allocation23_spill] sm:$0xff] }
 0x226   :  { %4266 = vmatpush3.bf16.msra.mxu1 %v5360_v9 }
 0x227   :  { %4267 = vmatprep.subr.bf16.mxu1 %v5712_v55 }
 0x228   :  { %4054 = vmatpush3.bf16.msra.mxu0 %v5108_v27 }
 0x229   :  { %4055 = vmatprep.subr.bf16.mxu0 %v5114_v63 }
 0x22a   :  { %4268 = vmatpush3.bf16.msra.mxu1 %v5366_v10 }
 0x22b   :  { %4269 = vmatprep.subr.bf16.mxu1 %v5712_v55 }
 0x22c   :  { %4056 = vmatpush3.bf16.msra.mxu0 %v5120_v30 }
 0x22d   :  { %4085 = vmatprep.subr.bf16.mxu0 %v5128_v41 }
 0x22e   :  { %4270 = vmatpush3.bf16.msra.mxu1 %v5372_v15 }
 0x22f   :  { %4063 = vmatprep.subr.bf16.mxu1 %v5034_v3  ;;  %v5729_v3 = vld [vmem:[#allocation22_spill] sm:$0xff] }
 0x231   :  { %4272 = vmatmul.mubr.bf16.vlgmr.msra.gmra.mrb[16].mxu1 %v1123_v20 }
 0x232   :  { %4064 = vmatpush3.bf16.msra.mxu1 %v5038_v5  ;;  %v5731_v5 = vld [vmem:[#allocation24_spill] sm:$0xff] }
 0x233   :  { %4065 = vmatprep.subr.bf16.mxu1 %v5046_v6  ;;  %v5732_v6 = vld [vmem:[#allocation25_spill] sm:$0xff] }
 0x236   :  { %4066 = vmatpush3.bf16.msra.mxu1 %v5050_v8  ;;  %v5733_v8 = vld [vmem:[#allocation26_spill] sm:$0xff] }
 0x237   :  { %4067 = vmatprep.subr.bf16.mxu1 %v5054_v0  ;;  %v5734_v0 = vld [vmem:[#allocation27_spill] sm:$0xff] }
 0x23a   :  { %4068 = vmatpush3.bf16.msra.mxu1 %v5062_v11  ;;  %v5735_v11 = vld [vmem:[#allocation28_spill] sm:$0xff] }
 0x23b   :  { %4069 = vmatprep.subr.bf16.mxu1 %v5068_v14 }
 0x23e   :  { %4070 = vmatpush3.bf16.msra.mxu1 %v5074_v17 }
 0x23f   :  { %4071 = vmatprep.subr.bf16.mxu1 %v5727_v22 }
 0x242   :  { %4072 = vmatpush3.bf16.msra.mxu1 %v5728_v24 }
 0x243   :  { %4073 = vmatprep.subr.bf16.mxu1 %v5729_v3 }
 0x246   :  { %4074 = vmatpush3.bf16.msra.mxu1 %v5730_v19 }
 0x247   :  { %4075 = vmatprep.subr.bf16.mxu1 %v5731_v5 }
 0x24a   :  { %4076 = vmatpush3.bf16.msra.mxu1 %v5732_v6 }
 0x24b   :  { %4077 = vmatprep.subr.bf16.mxu1 %v5733_v8 }
 0x24e   :  { %4078 = vmatpush3.bf16.msra.mxu1 %v5734_v0 }
 0x24f   :  { %4107 = vmatprep.subr.bf16.mxu1 %v5735_v11 }
 0x2c0   :  { %v3982_v14 = vpop.f32.mrb[12].mxu0 }
 0x2c1   :  { %v3983_v17 = vpop.f32.mrb[13].mxu0 }
 0x2c2   :  { %v3984_v27 = vadd.f32 %v3983_v17, %v3982_v14  ;;  %v3985_v63 = vpop.f32.mrb[14].mxu0 }
 0x2c3   :  { %v3986_v41 = vpop.f32.mrb[15].mxu0 }
 0x2c4   :  { %v3960_v30 = vpop.f32.mrb[8].mxu1 }
 0x2c5   :  { %v3961_v2 = vpop.f32.mrb[9].mxu1 }
 0x2c6   :  { %v3962_v47 = vadd.f32 %v3961_v2, %v3960_v30  ;;  %v3963_v25 = vpop.f32.mrb[10].mxu1 }
 0x2c7   :  { %v3964_v60 = vpop.f32.mrb[11].mxu1 }
 0x2c8   :  { %v1936_v51 = vadd.f32 %v3984_v27, %v3962_v47 }
 0x2e2   :  { %v4026_v26 = vpop.f32.mrb[16].mxu0 }
 0x2e3   :  { %v4027_v29 = vpop.f32.mrb[17].mxu0 }
 0x2e4   :  { %v4004_v48 = vpop.f32.mrb[12].mxu1  ;;  %v4028_v46 = vadd.f32 %v4027_v29, %v4026_v26  ;;  %v4029_v4 = vpop.f32.mrb[18].mxu0 }
 0x2e5   :  { %v4005_v12 = vpop.f32.mrb[13].mxu1  ;;  %v4030_v13 = vpop.f32.mrb[19].mxu0 }
 0x2e6   :  { %v4006_v37 = vadd.f32 %v4005_v12, %v4004_v48  ;;  %v4007_v20 = vpop.f32.mrb[14].mxu1 }
 0x2e7   :  { %v4008_v22 = vpop.f32.mrb[15].mxu1 }
 0x2e8   :  { %v1976_v24 = vadd.f32 %v4006_v37, %v1936_v51 }
 0x2ea   :  { %v2016_v3 = vadd.f32 %v4028_v46, %v1976_v24 }
 0x304   :  { %v2103_v19 = vpop.f32.mrb[16].mxu1 }
 0x305   :  { %v2104_v5 = vadd.f32 %v2103_v19, %v2016_v3  ;;  %v4273_v6 = vpop.f32.mrb[17].mxu1 }
 0x306   :  { %v2106_v8 = vpop.f32.mrb[18].mxu1 }
 0x307   :  { %4553 = vtanh.f32 %v2104_v5  ;;  %v4274_v0 = vpop.f32.mrb[19].mxu1 }
 0x311   :  { %v5396_v11 = vpop.eup %4553 }
 0x312   :  { %v5399_v14 = vadd.f32 2.2, %v5396_v11  ;;  %v3731_v17 = vadd.f32 1.8, %v5396_v11  ;;  %v5403_v27 = vadd.f32 1.4, %v5396_v11 }
 0x313   :  { %v5406_v63 = vadd.f32 1.0, %v5396_v11  ;;  %v5409_v30 = vadd.f32 0.6, %v5396_v11  ;;  %v5412_v41 = vadd.f32 0.19999999, %v5396_v11  ;;  %v5415_v2 = vadd.f32 -1.0, %v5396_v11 }
 0x314   :  { %vm2134_vm5 = vcmp.ge.f32.partialorder %v3731_v17, 0.0  ;;  %vm2135_vm6 = vcmp.lt.f32.partialorder %v3731_v17, 0.4  ;;  %vm2139_vm7 = vcmp.ge.f32.partialorder %v5403_v27, 0.0  ;;  %vm2140_vm8 = vcmp.lt.f32.partialorder %v5403_v27, 0.4 }
 0x315   :  { %vm2136_vm9 = vmand %vm2134_vm5, %vm2135_vm6  ;;  %vm2144_vm10 = vcmp.ge.f32.partialorder %v5406_v63, 0.0  ;;  %vm2145_vm11 = vcmp.lt.f32.partialorder %v5406_v63, 0.4  ;;  %vm2149_vm12 = vcmp.ge.f32.partialorder %v5409_v30, 0.0  ;;  %vm2150_vm13 = vcmp.lt.f32.partialorder %v5409_v30, 0.4 }
 0x316   :  { %v3742_v47 = vsel %vm2136_vm9, 1.0, %v5712_v55  ;;  %vm2141_vm14 = vmand %vm2139_vm7, %vm2140_vm8  ;;  %v5425_v25 = vmul.f32 2.5, %v5399_v14  ;;  %v2189_v60 = vmul.f32 2.5, %v3731_v17  ;;  %v2194_v51 = vmul.f32 2.5, %v5403_v27 }
 0x317   :  { %v3743_v26 = vsel %vm2141_vm14, 1.0, %v5712_v55  ;;  %vm2146_vm15 = vmand %vm2144_vm10, %vm2145_vm11  ;;  %v2199_v29 = vmul.f32 2.5, %v5406_v63  ;;  %v2239_v48 = vmul.f32 1.25, %v3731_v17  ;;  %v2244_v46 = vmul.f32 1.25, %v5403_v27 }
 0x318   :  { %v3744_v4 = vsel %vm2146_vm15, 1.0, %v5712_v55  ;;  %vm2151_vm0 = vmand %vm2149_vm12, %vm2150_vm13  ;;  %v2186_v12 = vsub.f32 2.0, %v5425_v25  ;;  %v2190_v13 = vmul.f32 %v3742_v47, %v2189_v60  ;;  %v2191_v37 = vsub.f32 2.0, %v2189_v60 }
 0x319   :  { %v3745_v20 = vsel %vm2151_vm0, 1.0, %v5712_v55  ;;  %v2195_v22 = vmul.f32 %v3743_v26, %v2194_v51  ;;  %v2196_v24 = vsub.f32 2.0, %v2194_v51  ;;  %v2200_v3 = vmul.f32 %v3744_v4, %v2199_v29 }
 0x31a   :  { %v5434_v19 = vmul.f32 %v3742_v47, %v2186_v12  ;;  %v2192_v5 = vmul.f32 %v3743_v26, %v2191_v37  ;;  %v2201_v6 = vsub.f32 2.0, %v2199_v29  ;;  %v2241_v8 = vsub.f32 1.5, %v2239_v48 }
 0x31b   :  { %v2197_v0 = vmul.f32 %v3744_v4, %v2196_v24  ;;  %v2246_v15 = vsub.f32 1.5, %v2244_v46  ;;  %v2284_v10 = vmul.f32 0.8333333, %v3731_v17  ;;  %v5437_v9 = vadd.f32 -0.20000005, %v5396_v11 }
 0x31c   :  { %v2193_v7 = vadd.f32 %v2192_v5, %v2190_v13  ;;  %v2202_v32 = vmul.f32 %v3745_v20, %v2201_v6  ;;  %vm2154_vm2 = vcmp.ge.f32.partialorder %v5412_v41, 0.0  ;;  %vm2155_vm3 = vcmp.lt.f32.partialorder %v5412_v41, 0.4 }
 0x31d   :  { %v2198_v60 = vadd.f32 %v2197_v0, %v2195_v22  ;;  %v2286_v51 = vsub.f32 1.3333334, %v2284_v10  ;;  %vm2156_vm4 = vmand %vm2154_vm2, %vm2155_vm3  ;;  %vm2159_vm5 = vcmp.ge.f32.partialorder %v5437_v9, 0.0  ;;  %vm2160_vm6 = vcmp.lt.f32.partialorder %v5437_v9, 0.4 }
 0x31e   :  { %v2203_v47 = vadd.f32 %v2202_v32, %v2200_v3  ;;  %v2240_v26 = vmul.f32 %v2239_v48, %v2193_v7  ;;  %v3746_v17 = vsel %vm2156_vm4, 1.0, %v5712_v55  ;;  %vm2161_vm7 = vmand %vm2159_vm5, %vm2160_vm6  ;;  %v2204_v29 = vmul.f32 2.5, %v5409_v30 }
 0x31f   :  { %v2242_v4 = vmul.f32 %v2241_v8, %v2198_v60  ;;  %v2245_v12 = vmul.f32 %v2244_v46, %v2198_v60  ;;  %v5446_v13 = vsel %vm2161_vm7, 1.0, %v5712_v55  ;;  %v2209_v37 = vmul.f32 2.5, %v5412_v41 }
 0x320   :  { %v2247_v22 = vmul.f32 %v2246_v15, %v2203_v47  ;;  %v2205_v24 = vmul.f32 %v3745_v20, %v2204_v29  ;;  %v2206_v5 = vsub.f32 2.0, %v2204_v29  ;;  %v2249_v6 = vmul.f32 1.25, %v5406_v63 }
 0x321   :  { %v2243_v0 = vadd.f32 %v2242_v4, %v2240_v26  ;;  %v2210_v32 = vmul.f32 %v3746_v17, %v2209_v37  ;;  %v2211_v48 = vsub.f32 2.0, %v2209_v37  ;;  %v2254_v3 = vmul.f32 1.25, %v5409_v30 }
 0x322   :  { %v2248_v35 = vadd.f32 %v2247_v22, %v2245_v12  ;;  %v2207_v54 = vmul.f32 %v3746_v17, %v2206_v5  ;;  %v2250_v38 = vmul.f32 %v2249_v6, %v2203_v47  ;;  %v2251_v8 = vsub.f32 1.5, %v2249_v6 }
 0x323   :  { %v2285_v46 = vmul.f32 %v2284_v10, %v2243_v0  ;;  %v2212_v60 = vmul.f32 %v5446_v13, %v2211_v48  ;;  %v2256_v42 = vsub.f32 1.5, %v2254_v3  ;;  %v2294_v57 = vmul.f32 0.8333333, %v5406_v63 }
 0x324   :  { %v2287_v15 = vmul.f32 %v2286_v51, %v2248_v35  ;;  %v2208_v20 = vadd.f32 %v2207_v54, %v2205_v24  ;;  %vm2129_vm8 = vcmp.ge.f32.partialorder %v5399_v14, 0.0  ;;  %vm2130_vm9 = vcmp.lt.f32.partialorder %v5399_v14, 0.4 }
 0x325   :  { %v2213_v26 = vadd.f32 %v2212_v60, %v2210_v32  ;;  %v2296_v29 = vsub.f32 1.3333334, %v2294_v57  ;;  %vm2131_vm10 = vmand %vm2129_vm8, %vm2130_vm9  ;;  %v2234_v4 = vmul.f32 1.25, %v5399_v14  ;;  %v2279_v47 = vmul.f32 0.8333333, %v5399_v14 }
 0x326   :  { %v2288_v17 = vadd.f32 %v2287_v15, %v2285_v46  ;;  %v2252_v10 = vmul.f32 %v2251_v8, %v2208_v20  ;;  %v2255_v12 = vmul.f32 %v2254_v3, %v2208_v20  ;;  %v3741_v37 = vsel %vm2131_vm10, 1.0, %v5712_v55 }
 0x327   :  { %v2257_v22 = vmul.f32 %v2256_v42, %v2213_v26  ;;  %v2185_v63 = vmul.f32 %v3741_v37, %v5425_v25  ;;  %v2236_v54 = vsub.f32 1.5, %v2234_v4  ;;  %v2281_v51 = vsub.f32 1.3333334, %v2279_v47 }
 0x328   :  { %v2320_v24 = vpack.c.bf16 %v2288_v17, %v2288_v17  ;;  %v2253_v5 = vadd.f32 %v2252_v10, %v2250_v38  ;;  %v2289_v6 = vmul.f32 0.8333333, %v5403_v27  ;;  %v5461_v32 = vadd.f32 -0.6, %v5396_v11 }
 0x329   :  { %v5463_v48 = vadd.f32 %v2257_v22, %v2255_v12  ;;  %v2188_v14 = vadd.f32 %v5434_v19, %v2185_v63  ;;  %v2237_v8 = vmul.f32 %v2236_v54, %v2193_v7  ;;  %v2282_v3 = vmul.f32 %v2281_v51, %v2243_v0 }
 0x32a   :  { %2359 = vmatprep.mubr.bf16.mxu0 %v2320_v24  ;;  %v2295_v46 = vmul.f32 %v2294_v57, %v2253_v5  ;;  %v2290_v42 = vmul.f32 %v2289_v6, %v2248_v35  ;;  %v2291_v60 = vsub.f32 1.3333334, %v2289_v6  ;;  %vm2164_vm11 = vcmp.ge.f32.partialorder %v5461_v32, 0.0 }
 0x32b   :  { %v2297_v25 = vmul.f32 %v2296_v29, %v5463_v48  ;;  %v2235_v38 = vmul.f32 %v2234_v4, %v2188_v14  ;;  %vm2165_vm12 = vcmp.lt.f32.partialorder %v5461_v32, 0.4  ;;  %vm2169_vm13 = vcmp.ge.f32.partialorder %v5415_v2, 0.0 }
 0x32c   :  { %v2292_v27 = vmul.f32 %v2291_v60, %v2253_v5  ;;  %vm2166_vm14 = vmand %vm2164_vm11, %vm2165_vm12  ;;  %vm2170_vm15 = vcmp.lt.f32.partialorder %v5415_v2, 0.4  ;;  %v2214_v7 = vmul.f32 2.5, %v5437_v9  ;;  %v2219_v19 = vmul.f32 2.5, %v5461_v32 }
 0x32d   :  { %v2298_v57 = vadd.f32 %v2297_v25, %v2295_v46  ;;  %v2238_v35 = vadd.f32 %v2237_v8, %v2235_v38  ;;  %v3748_v0 = vsel %vm2166_vm14, 1.0, %v5712_v55  ;;  %vm2171_vm0 = vmand %vm2169_vm13, %vm2170_vm15  ;;  %v2259_v15 = vmul.f32 1.25, %v5412_v41 }
 0x32e   :  { %v2293_v20 = vadd.f32 %v2292_v27, %v2290_v42  ;;  %v3749_v29 = vsel %vm2171_vm0, 1.0, %v5712_v55  ;;  %v2215_v4 = vmul.f32 %v5446_v13, %v2214_v7  ;;  %v2216_v17 = vsub.f32 2.0, %v2214_v7 }
 0x32f   :  { %v2322_v10 = vpack.c.bf16 %v2298_v57, %v2298_v57  ;;  %v2280_v12 = vmul.f32 %v2279_v47, %v2238_v35  ;;  %v2220_v37 = vmul.f32 %v3748_v0, %v2219_v19  ;;  %v2221_v22 = vsub.f32 2.0, %v2219_v19 }
 0x330   :  { %v2321_v63 = vpack.c.bf16 %v2293_v20, %v2293_v20  ;;  %v2217_v54 = vmul.f32 %v3748_v0, %v2216_v17  ;;  %v2260_v51 = vmul.f32 %v2259_v15, %v2213_v26  ;;  %v2261_v24 = vsub.f32 1.5, %v2259_v15 }
 0x331   :  { %2399 = vmatprep.mubr.bf16.mxu1 %v2322_v10  ;;  %v2283_v5 = vadd.f32 %v2282_v3, %v2280_v12  ;;  %v2222_v6 = vmul.f32 %v3749_v29, %v2221_v22  ;;  %v2264_v14 = vmul.f32 1.25, %v5437_v9  ;;  %v2304_v8 = vmul.f32 0.8333333, %v5412_v41 }
 0x332   :  { %2400 = vmatmul.mubr.bf16.vlgmr.msra.gmra.mrb[20].mxu1 %v2321_v63  ;;  %v2218_v46 = vadd.f32 %v2217_v54, %v2215_v4  ;;  %v3739_v13 = vadd.f32 -1.4000001, %v5396_v11  ;;  %v3740_v42 = vadd.f32 -1.8, %v5396_v11  ;;  %v2224_v47 = vmul.f32 2.5, %v5415_v2  ;;  %v5736_v4 = vld [vmem:[#allocation29_spill] sm:$0xff] }
 0x333   :  { %v2319_v60 = vpack.c.bf16 %v2283_v5, %v2283_v5  ;;  %4108 = vmatpush3.bf16.msra.mxu1 %v5215_v61  ;;  %v2223_v26 = vadd.f32 %v2222_v6, %v2220_v37  ;;  %v2266_v25 = vsub.f32 1.5, %v2264_v14  ;;  %v2306_v38 = vsub.f32 1.3333334, %v2304_v8 }
 0x334   :  { %v2262_v3 = vmul.f32 %v2261_v24, %v2218_v46  ;;  %v2265_v27 = vmul.f32 %v2264_v14, %v2218_v46  ;;  %vm2174_vm2 = vcmp.ge.f32.partialorder %v3739_v13, 0.0  ;;  %vm2175_vm3 = vcmp.lt.f32.partialorder %v3739_v13, 0.4  ;;  %4109 = vmatprep.subr.bf16.mxu1 %v5217_v44 }
 0x335   :  { %2360 = vmatmul.mubr.bf16.vlgmr.msra.gmra.mrb[20].mxu0 %v2319_v60  ;;  %v2267_v41 = vmul.f32 %v2266_v25, %v2223_v26  ;;  %vm2176_vm4 = vmand %vm2174_vm2, %vm2175_vm3  ;;  %vm2179_vm5 = vcmp.ge.f32.partialorder %v3740_v42, 0.0  ;;  %vm2180_vm6 = vcmp.lt.f32.partialorder %v3740_v42, 0.4  ;;  %v2225_v7 = vmul.f32 %v3749_v29, %v2224_v47  ;;  %v5740_v60 = vld [vmem:[#allocation33_spill] sm:$0xff]  ;;  %v5745_v25 = vld [vmem:[#allocation38_spill] sm:$0xff] }
 0x336   :  { %4086 = vmatpush3.bf16.msra.mxu0 %v5221_v43  ;;  %v5485_v19 = vadd.f32 %v2262_v3, %v2260_v51  ;;  %v3750_v61 = vsel %vm2176_vm4, 1.0, %v5712_v55  ;;  %vm2181_vm7 = vmand %vm2179_vm5, %vm2180_vm6  ;;  %v2226_v57 = vsub.f32 2.0, %v2224_v47  ;;  %v2229_v35 = vmul.f32 2.5, %v3739_v13  ;;  %v5738_v13 = vld [vmem:[#allocation31_spill] sm:$0xff]  ;;  %v5747_v3 = vld [vmem:[#allocation40_spill] sm:$0xff] }
 0x337   :  { %v2268_v0 = vadd.f32 %v2267_v41, %v2265_v27  ;;  %v3751_v15 = vsel %vm2181_vm7, 1.0, %v5712_v55  ;;  %v2269_v44 = vmul.f32 1.25, %v5461_v32  ;;  %v2274_v20 = vmul.f32 1.25, %v5415_v2  ;;  %4087 = vmatprep.subr.bf16.mxu0 %v5227_v18  ;;  %4110 = vmatpush3.bf16.msra.mxu1 %v5736_v4  ;;  %v5748_v41 = vld [vmem:[#allocation41_spill] sm:$0xff]  ;;  %v4477_v4 = vld [vmem:[#allocation13 + $0x8] sm:$0xff]  }
 0x338   :  { %v2305_v43 = vmul.f32 %v2304_v8, %v5485_v19  ;;  %v2227_v29 = vmul.f32 %v3750_v61, %v2226_v57  ;;  %v2230_v17 = vmul.f32 %v3750_v61, %v2229_v35  ;;  %v2231_v10 = vsub.f32 2.0, %v2229_v35  ;;  %4111 = vmatprep.subr.bf16.mxu1 %v5232_v56  ;;  %v4471_v57 = vld [vmem:[#allocation13 + $0x40] sm:$0xff]  }
 0x339   :  { %v2307_v12 = vmul.f32 %v2306_v38, %v2268_v0  ;;  %v2270_v63 = vmul.f32 %v2269_v44, %v2223_v26  ;;  %v2271_v54 = vsub.f32 1.5, %v2269_v44  ;;  %v2276_v2 = vsub.f32 1.5, %v2274_v20  ;;  %v5746_v38 = vld [vmem:[#allocation39_spill] sm:$0xff]  ;;  %v4475_v44 = vld [vmem:[#allocation13 + $0x48] sm:$0xff]  }
 0x33a   :  { %v2228_v37 = vadd.f32 %v2227_v29, %v2225_v7  ;;  %v2232_v22 = vmul.f32 %v3751_v15, %v2231_v10  ;;  %4088 = vmatpush3.bf16.msra.mxu0 %v5238_v23  ;;  %v2314_v6 = vmul.f32 0.8333333, %v5461_v32  ;;  %v4472_v35 = vld [vmem:[#allocation13 + $0xc0] sm:$0xff]   ;;  %v4479_v29 = vld [vmem:[#allocation13 + $0x50] sm:$0xff]  }
 0x33b   :  { %v2308_v51 = vadd.f32 %v2307_v12, %v2305_v43  ;;  %4089 = vmatprep.subr.bf16.mxu0 %v5247_v53  ;;  %4112 = vmatpush3.bf16.msra.mxu1 %v5249_v62  ;;  %v4474_v15 = vld [vmem:[#allocation13 + $0x80] sm:$0xff]   ;;  %v4478_v43 = vld [vmem:[#allocation13 + $0x88] sm:$0xff]   ;;  %v4482_v10 = vld [vmem:[#allocation13 + $0x90] sm:$0xff]  }
 0x33c   :  { %v2233_v18 = vadd.f32 %v2232_v22, %v2230_v17  ;;  %v2272_v24 = vmul.f32 %v2271_v54, %v2228_v37  ;;  %v2275_v5 = vmul.f32 %v2274_v20, %v2228_v37  ;;  %4113 = vmatprep.subr.bf16.mxu1 %v5253_v21  ;;  %v2316_v53 = vsub.f32 1.3333334, %v2314_v6  ;;  %v4476_v20 = vld [vmem:[#allocation13 + $0xc8] sm:$0xff]   ;;  %v4481_v17 = vld [vmem:[#allocation13 + $0x10] sm:$0xff]   ;;  %v4483_v12 = vld [vmem:[#allocation13 + $0x58] sm:$0xff]  }
 0x33d   :  { %v2324_v56 = vpack.c.bf16 %v2308_v51, %v2308_v51  ;;  %v2309_v21 = vmul.f32 0.8333333, %v5437_v9  ;;  %v4484_v37 = vld [vmem:[#allocation13 + $0xd8] sm:$0xff]   ;;  %v4487_v54 = vld [vmem:[#allocation13 + $0x60] sm:$0xff]  }
 0x33e   :  { %v2273_v14 = vadd.f32 %v2272_v24, %v2270_v63  ;;  %v2277_v8 = vmul.f32 %v2276_v2, %v2233_v18  ;;  %4090 = vmatpush3.bf16.msra.mxu0 %v5257_v52  ;;  %v2299_v52 = vmul.f32 0.8333333, %v5409_v30  ;;  %v3729_v30 = vmul.f32 -1.442695, %v5396_v11  ;;  %v4485_v22 = vld [vmem:[#allocation13 + $0x18] sm:$0xff]   ;;  %v4488_v51 = vld [vmem:[#allocation13 + $0xe0] sm:$0xff]  }
 0x33f   :  { %2439 = vmatprep.mubr.bf16.mxu0 %v2324_v56  ;;  %4091 = vmatprep.subr.bf16.mxu0 %v5261_v31  ;;  %v2310_v9 = vmul.f32 %v2309_v21, %v2268_v0  ;;  %v4473_v0 = vld [vmem:[#allocation13] sm:$0xff]   ;;  %v4486_v63 = vld [vmem:[#allocation13 + $0x98] sm:$0xff]   ;;  %v4491_v24 = vld [vmem:[#allocation13 + $0x68] sm:$0xff]  }
 0x340   :  { %v2278_v23 = vadd.f32 %v2277_v8, %v2275_v5  ;;  %v2315_v46 = vmul.f32 %v2314_v6, %v2273_v14  ;;  %4114 = vmatpush3.bf16.msra.mxu1 %v5265_v28  ;;  %v5737_v28 = vld [vmem:[#allocation30_spill] sm:$0xff]  ;;  %4555 = vpow2.f32 %v3729_v30  ;;  %v4489_v2 = vld [vmem:[#allocation13 + $0x20] sm:$0xff]   ;;  %v4492_v5 = vld [vmem:[#allocation13 + $0xe8] sm:$0xff]  }
 0x341   :  { %4115 = vmatprep.subr.bf16.mxu1 %v5267_v58  ;;  %v2311_v58 = vsub.f32 1.3333334, %v2309_v21  ;;  %v4490_v18 = vld [vmem:[#allocation13 + $0xa0] sm:$0xff]   ;;  %v4493_v6 = vld [vmem:[#allocation13 + $0x28] sm:$0xff]   ;;  %v4496_v8 = vld [vmem:[#allocation13 + $0xf0] sm:$0xff]  }
 0x342   :  { %v2317_v62 = vmul.f32 %v2316_v53, %v2278_v23  ;;  %4092 = vmatpush3.bf16.msra.mxu0 %v5270_v39  ;;  %v5739_v39 = vld [vmem:[#allocation32_spill] sm:$0xff]  ;;  %v4497_v23 = vld [vmem:[#allocation13 + $0x30] sm:$0xff]   ;;  %v4499_v53 = vld [vmem:[#allocation13 + $0x78] sm:$0xff]  }
 0x343   :  { %4093 = vmatprep.subr.bf16.mxu0 %v5273_v50  ;;  %v2301_v50 = vsub.f32 1.3333334, %v2299_v52  ;;  %v2312_v42 = vmul.f32 %v2311_v58, %v2273_v14  ;;  %v4494_v56 = vld [vmem:[#allocation13 + $0xa8] sm:$0xff]   ;;  %v4495_v14 = vld [vmem:[#allocation13 + $0x70] sm:$0xff]   ;;  %v4501_v21 = vld [vmem:[#allocation13 + $0x38] sm:$0xff]  }
 0x344   :  { %v2318_v32 = vadd.f32 %v2317_v62, %v2315_v46  ;;  %4116 = vmatpush3.bf16.msra.mxu1 %v5276_v49  ;;  %v2300_v49 = vmul.f32 %v2299_v52, %v5463_v48  ;;  %v4498_v46 = vld [vmem:[#allocation13 + $0xb0] sm:$0xff]   ;;  %v4500_v62 = vld [vmem:[#allocation13 + $0xf8] sm:$0xff]   ;;  %v4503_v52 = vld [vmem:[#allocation13 + $0x140] sm:$0xff]  }
 0x345   :  { %4117 = vmatprep.subr.bf16.mxu1 %v5279_v36  ;;  %v2302_v36 = vmul.f32 %v2301_v50, %v5485_v19  ;;  %v5749_v19 = vld [vmem:[#allocation42_spill] sm:$0xff] }
 0x346   :  { %v2326_v31 = vpack.c.bf16 %v2318_v32, %v2318_v32  ;;  %4094 = vmatpush3.bf16.msra.mxu0 %v5282_v45  ;;  %v2313_v45 = vadd.f32 %v2312_v42, %v2310_v9  ;;  %v4502_v32 = vld [vmem:[#allocation13 + $0xb8] sm:$0xff]  }
 0x347   :  { %4095 = vmatprep.subr.bf16.mxu0 %v5737_v28  ;;  %v2303_v47 = vadd.f32 %v2302_v36, %v2300_v49 }
 0x348   :  { %2479 = vmatprep.mubr.bf16.mxu1 %v2326_v31  ;;  %4118 = vmatpush3.bf16.msra.mxu1 %v5738_v13  ;;  %v4504_v31 = vld [vmem:[#allocation13 + $0x1c0] sm:$0xff]  }
 0x349   :  { %4119 = vmatprep.subr.bf16.mxu1 %v5739_v39  ;;  %v2323_v48 = vpack.c.bf16 %v2303_v47, %v2303_v47 }
 0x34a   :  { %4096 = vmatpush3.bf16.msra.mxu0 %v5296_v33  ;;  %v2325_v33 = vpack.c.bf16 %v2313_v45, %v2313_v45 }
 0x34b   :  { %4097 = vmatprep.subr.bf16.mxu0 %v5299_v40  ;;  %v5741_v40 = vld [vmem:[#allocation34_spill] sm:$0xff] }
 0x34c   :  { %4120 = vmatpush3.bf16.msra.mxu1 %v5302_v1  ;;  %v5742_v1 = vld [vmem:[#allocation35_spill] sm:$0xff] }
 0x34d   :  { %4121 = vmatprep.subr.bf16.mxu1 %v5305_v16  ;;  %v4556_v16 = vpop.eup %4555 }
 0x34e   :  { %4098 = vmatpush3.bf16.msra.mxu0 %v5309_v34  ;;  %v5744_v34 = vld [vmem:[#allocation37_spill] sm:$0xff]  ;;  %v2113_v26 = vadd.f32 1.0, %v4556_v16 }
 0x34f   :  { %4099 = vmatprep.subr.bf16.mxu0 %v5312_v59  ;;  %v5743_v59 = vld [vmem:[#allocation36_spill] sm:$0xff] }
 0x350   :  { %4122 = vmatpush3.bf16.msra.mxu1 %v5740_v60  ;;  %4557 = vrcp.f32 %v2113_v26 }
 0x351   :  { %4138 = vmatprep.subr.bf16.mxu1 %v4471_v57 }
 0x352   :  { %4100 = vmatpush3.bf16.msra.mxu0 %v5741_v40 }
 0x353   :  { %2480 = vmatmul.mubr.bf16.vlgmr.msra.gmra.mrb[24].mxu1 %v2325_v33  ;;  %4275 = vmatprep.subr.bf16.mxu0 %v5712_v55 }
 0x354   :  { %4139 = vmatpush3.bf16.msra.mxu1 %v4473_v0 }
 0x355   :  { %2440 = vmatmul.mubr.bf16.vlgmr.msra.gmra.mrb[24].mxu0 %v2323_v48  ;;  %4140 = vmatprep.subr.bf16.mxu1 %v4475_v44 }
 0x356   :  { %4276 = vmatpush3.bf16.msra.mxu0 %v5742_v1  ;;  %4291 = vmatprep.mubr.msk.bf16.mxu0 %vm4759_vm1, %v5712_v55 }
 0x357   :  { %4277 = vmatprep.subr.bf16.mxu0 %v5712_v55 }
 0x358   :  { %4141 = vmatpush3.bf16.msra.mxu1 %v4477_v4 }
 0x359   :  { %4142 = vmatprep.subr.bf16.mxu1 %v4479_v29 }
 0x35a   :  { %4278 = vmatpush3.bf16.msra.mxu0 %v5743_v59  ;;  %v4558_v27 = vpop.eup %4557 }
 0x35b   :  { %4279 = vmatprep.subr.bf16.mxu0 %v5712_v55  ;;  %v2116_v7 = vmul.f32 %v4558_v27, %v5396_v11  ;;  %v4480_v11 = vld [vmem:[#allocation13 + $0xd0] sm:$0xff]  }
 0x35c   :  { %4143 = vmatpush3.bf16.msra.mxu1 %v4481_v17 }
 0x35d   :  { %v2117_v61 = vpack.c.bf16 %v2116_v7, %v2116_v7  ;;  %4144 = vmatprep.subr.bf16.mxu1 %v4483_v12 }
 0x35e   :  { %4280 = vmatpush3.bf16.msra.mxu0 %v5744_v34 }
 0x35f   :  { %4281 = vmatprep.subr.bf16.mxu0 %v5712_v55 }
 0x360   :  { %4145 = vmatpush3.bf16.msra.mxu1 %v4485_v22 }
 0x361   :  { %4146 = vmatprep.subr.bf16.mxu1 %v4487_v54 }
 0x362   :  { %4282 = vmatpush3.bf16.msra.mxu0 %v5745_v25 }
 0x363   :  { %4283 = vmatprep.subr.bf16.mxu0 %v5712_v55 }
 0x364   :  { %4147 = vmatpush3.bf16.msra.mxu1 %v4489_v2 }
 0x365   :  { %4148 = vmatprep.subr.bf16.mxu1 %v4491_v24 }
 0x366   :  { %4284 = vmatpush3.bf16.msra.mxu0 %v5746_v38 }
 0x367   :  { %4285 = vmatprep.subr.bf16.mxu0 %v5712_v55 }
 0x368   :  { %4149 = vmatpush3.bf16.msra.mxu1 %v4493_v6 }
 0x369   :  { %4150 = vmatprep.subr.bf16.mxu1 %v4495_v14 }
 0x36a   :  { %4286 = vmatpush3.bf16.msra.mxu0 %v5747_v3 }
 0x36b   :  { %4287 = vmatprep.subr.bf16.mxu0 %v5712_v55 }
 0x36c   :  { %4151 = vmatpush3.bf16.msra.mxu1 %v4497_v23 }
 0x36d   :  { %4152 = vmatprep.subr.bf16.mxu1 %v4499_v53 }
 0x36e   :  { %4288 = vmatpush3.bf16.msra.mxu0 %v5748_v41 }
 0x36f   :  { %4289 = vmatprep.subr.bf16.mxu0 %v5712_v55 }
 0x370   :  { %4153 = vmatpush3.bf16.msra.mxu1 %v4501_v21 }
 0x371   :  { %4182 = vmatprep.subr.bf16.mxu1 %v4503_v52 }
 0x372   :  { %4290 = vmatpush3.bf16.msra.mxu0 %v5749_v19 }
 0x373   :  { %4160 = vmatprep.subr.bf16.mxu0 %v4472_v35 }
 0x375   :  { %4292 = vmatmul.mubr.bf16.vlgmr.msra.gmra.mrb[28].mxu0 %v2117_v61 }
 0x376   :  { %4161 = vmatpush3.bf16.msra.mxu0 %v4474_v15 }
 0x377   :  { %4162 = vmatprep.subr.bf16.mxu0 %v4476_v20 }
 0x37a   :  { %4163 = vmatpush3.bf16.msra.mxu0 %v4478_v43 }
 0x37b   :  { %4164 = vmatprep.subr.bf16.mxu0 %v4480_v11 }
 0x37e   :  { %4165 = vmatpush3.bf16.msra.mxu0 %v4482_v10 }
 0x37f   :  { %4166 = vmatprep.subr.bf16.mxu0 %v4484_v37 }
 0x382   :  { %4167 = vmatpush3.bf16.msra.mxu0 %v4486_v63 }
 0x383   :  { %4168 = vmatprep.subr.bf16.mxu0 %v4488_v51 }
 0x386   :  { %4169 = vmatpush3.bf16.msra.mxu0 %v4490_v18 }
 0x387   :  { %4170 = vmatprep.subr.bf16.mxu0 %v4492_v5 }
 0x38a   :  { %4171 = vmatpush3.bf16.msra.mxu0 %v4494_v56 }
 0x38b   :  { %4172 = vmatprep.subr.bf16.mxu0 %v4496_v8 }
 0x38e   :  { %4173 = vmatpush3.bf16.msra.mxu0 %v4498_v46 }
 0x38f   :  { %4174 = vmatprep.subr.bf16.mxu0 %v4500_v62 }
 0x392   :  { %4175 = vmatpush3.bf16.msra.mxu0 %v4502_v32 }
 0x393   :  { %4204 = vmatprep.subr.bf16.mxu0 %v4504_v31 }
 0x405   :  { %v4079_v28 = vpop.f32.mrb[20].mxu1 }
 0x406   :  { %v4080_v58 = vpop.f32.mrb[21].mxu1 }
 0x407   :  { %v4081_v13 = vadd.f32 %v4080_v58, %v4079_v28  ;;  %v4082_v39 = vpop.f32.mrb[22].mxu1 }
 0x408   :  { %v4057_v50 = vpop.f32.mrb[20].mxu0  ;;  %v4083_v9 = vpop.f32.mrb[23].mxu1 }
 0x409   :  { %v4058_v42 = vpop.f32.mrb[21].mxu0 }
 0x40a   :  { %v4059_v49 = vadd.f32 %v4058_v42, %v4057_v50  ;;  %v4060_v36 = vpop.f32.mrb[22].mxu0 }
 0x40b   :  { %v4061_v45 = vpop.f32.mrb[23].mxu0 }
 0x40c   :  { %v2402_v30 = vadd.f32 %v4081_v13, %v4059_v49 }
 0x426   :  { %v4123_v47 = vpop.f32.mrb[24].mxu1 }
 0x427   :  { %v4124_v60 = vpop.f32.mrb[25].mxu1 }
 0x428   :  { %v4101_v33 = vpop.f32.mrb[24].mxu0  ;;  %v4125_v40 = vadd.f32 %v4124_v60, %v4123_v47  ;;  %v4126_v48 = vpop.f32.mrb[26].mxu1 }
 0x429   :  { %v4102_v1 = vpop.f32.mrb[25].mxu0  ;;  %v4127_v59 = vpop.f32.mrb[27].mxu1 }
 0x42a   :  { %v4103_v16 = vadd.f32 %v4102_v1, %v4101_v33  ;;  %v4104_v34 = vpop.f32.mrb[26].mxu0 }
 0x42b   :  { %v4105_v26 = vpop.f32.mrb[27].mxu0 }
 0x42c   :  { %v2442_v25 = vadd.f32 %v4103_v16, %v2402_v30 }
 0x42e   :  { %v2482_v38 = vadd.f32 %v4125_v40, %v2442_v25 }
 0x448   :  { %v2521_v3 = vpop.f32.mrb[28].mxu0 }
 0x449   :  { %v5544_v27 = vadd.f32 %v2521_v3, %v2482_v38  ;;  %v4293_v41 = vpop.f32.mrb[29].mxu0 }
 0x44a   :  { %v2524_v7 = vpop.f32.mrb[30].mxu0 }
 0x44b   :  { %v4294_v19 = vpop.f32.mrb[31].mxu0  ;;  %v5547_v61 = vadd.f32 2.2, %v5544_v27  ;;  %v3754_v57 = vadd.f32 1.8, %v5544_v27  ;;  %v5551_v35 = vadd.f32 1.0, %v5544_v27 }
 0x44c   :  { %v5554_v0 = vadd.f32 1.4, %v5544_v27  ;;  %v5557_v15 = vadd.f32 0.6, %v5544_v27  ;;  %v5560_v44 = vadd.f32 0.19999999, %v5544_v27 }
 0x44d   :  { %vm2567_vm8 = vcmp.ge.f32.partialorder %v3754_v57, 0.0  ;;  %vm2568_vm9 = vcmp.lt.f32.partialorder %v3754_v57, 0.4  ;;  %vm2577_vm10 = vcmp.ge.f32.partialorder %v5551_v35, 0.0  ;;  %vm2578_vm11 = vcmp.lt.f32.partialorder %v5551_v35, 0.4 }
 0x44e   :  { %vm2569_vm12 = vmand %vm2567_vm8, %vm2568_vm9  ;;  %vm2572_vm13 = vcmp.ge.f32.partialorder %v5554_v0, 0.0  ;;  %vm2573_vm14 = vcmp.lt.f32.partialorder %v5554_v0, 0.4  ;;  %vm2582_vm15 = vcmp.ge.f32.partialorder %v5557_v15, 0.0  ;;  %vm2583_vm0 = vcmp.lt.f32.partialorder %v5557_v15, 0.4 }
 0x44f   :  { %v3765_v20 = vsel %vm2569_vm12, 1.0, %v5712_v55  ;;  %vm2574_vm2 = vmand %vm2572_vm13, %vm2573_vm14  ;;  %v5570_v4 = vmul.f32 2.5, %v5547_v61  ;;  %v2622_v43 = vmul.f32 2.5, %v3754_v57  ;;  %v2627_v29 = vmul.f32 2.5, %v5554_v0 }
 0x450   :  { %v3766_v11 = vsel %vm2574_vm2, 1.0, %v5712_v55  ;;  %vm2579_vm3 = vmand %vm2577_vm10, %vm2578_vm11  ;;  %v2632_v17 = vmul.f32 2.5, %v5551_v35  ;;  %v2672_v10 = vmul.f32 1.25, %v3754_v57  ;;  %v2677_v12 = vmul.f32 1.25, %v5554_v0 }
 0x451   :  { %v3767_v37 = vsel %vm2579_vm3, 1.0, %v5712_v55  ;;  %vm2584_vm4 = vmand %vm2582_vm15, %vm2583_vm0  ;;  %v2619_v22 = vsub.f32 2.0, %v5570_v4  ;;  %v2623_v63 = vmul.f32 %v3765_v20, %v2622_v43  ;;  %v2624_v54 = vsub.f32 2.0, %v2622_v43 }
 0x452   :  { %v3768_v51 = vsel %vm2584_vm4, 1.0, %v5712_v55  ;;  %v2628_v2 = vmul.f32 %v3766_v11, %v2627_v29  ;;  %v2629_v18 = vsub.f32 2.0, %v2627_v29  ;;  %v2633_v24 = vmul.f32 %v3767_v37, %v2632_v17 }
 0x453   :  { %v5579_v5 = vmul.f32 %v3765_v20, %v2619_v22  ;;  %v2625_v6 = vmul.f32 %v3766_v11, %v2624_v54  ;;  %v2634_v56 = vsub.f32 2.0, %v2632_v17  ;;  %v2674_v14 = vsub.f32 1.5, %v2672_v10 }
 0x454   :  { %v2630_v8 = vmul.f32 %v3767_v37, %v2629_v18  ;;  %v2679_v23 = vsub.f32 1.5, %v2677_v12  ;;  %v2717_v46 = vmul.f32 0.8333333, %v3754_v57  ;;  %v5582_v53 = vadd.f32 -0.20000005, %v5544_v27 }
 0x455   :  { %v2626_v62 = vadd.f32 %v2625_v6, %v2623_v63  ;;  %v2635_v21 = vmul.f32 %v3768_v51, %v2634_v56  ;;  %vm2587_vm5 = vcmp.ge.f32.partialorder %v5560_v44, 0.0  ;;  %vm2588_vm6 = vcmp.lt.f32.partialorder %v5560_v44, 0.4 }
 0x456   :  { %v2631_v32 = vadd.f32 %v2630_v8, %v2628_v2  ;;  %v2719_v52 = vsub.f32 1.3333334, %v2717_v46  ;;  %vm2589_vm7 = vmand %vm2587_vm5, %vm2588_vm6  ;;  %vm2592_vm8 = vcmp.ge.f32.partialorder %v5582_v53, 0.0  ;;  %vm2593_vm9 = vcmp.lt.f32.partialorder %v5582_v53, 0.4 }
 0x457   :  { %v2636_v31 = vadd.f32 %v2635_v21, %v2633_v24  ;;  %v2673_v28 = vmul.f32 %v2672_v10, %v2626_v62  ;;  %v3769_v58 = vsel %vm2589_vm7, 1.0, %v5712_v55  ;;  %vm2594_vm10 = vmand %vm2592_vm8, %vm2593_vm9  ;;  %v2637_v13 = vmul.f32 2.5, %v5557_v15 }
 0x458   :  { %v2675_v39 = vmul.f32 %v2674_v14, %v2631_v32  ;;  %v2678_v50 = vmul.f32 %v2677_v12, %v2631_v32  ;;  %v5591_v9 = vsel %vm2594_vm10, 1.0, %v5712_v55  ;;  %v2642_v42 = vmul.f32 2.5, %v5560_v44 }
 0x459   :  { %v2680_v49 = vmul.f32 %v2679_v23, %v2636_v31  ;;  %v2638_v36 = vmul.f32 %v3768_v51, %v2637_v13  ;;  %v2639_v45 = vsub.f32 2.0, %v2637_v13  ;;  %v2682_v30 = vmul.f32 1.25, %v5551_v35 }
 0x45a   :  { %v2676_v47 = vadd.f32 %v2675_v39, %v2673_v28  ;;  %v2643_v60 = vmul.f32 %v3769_v58, %v2642_v42  ;;  %v2644_v33 = vsub.f32 2.0, %v2642_v42  ;;  %v2687_v40 = vmul.f32 1.25, %v5557_v15 }
 0x45b   :  { %v2681_v48 = vadd.f32 %v2680_v49, %v2678_v50  ;;  %v2640_v1 = vmul.f32 %v3769_v58, %v2639_v45  ;;  %v2683_v59 = vmul.f32 %v2682_v30, %v2636_v31  ;;  %v2684_v16 = vsub.f32 1.5, %v2682_v30  ;;  %v4506_v50 = vld [vmem:[#allocation13 + $0x180] sm:$0xff]  }
 0x45c   :  { %v2718_v34 = vmul.f32 %v2717_v46, %v2676_v47  ;;  %v2645_v26 = vmul.f32 %v5591_v9, %v2644_v33  ;;  %v2689_v25 = vsub.f32 1.5, %v2687_v40  ;;  %v2727_v38 = vmul.f32 0.8333333, %v5551_v35 }
 0x45d   :  { %v2720_v3 = vmul.f32 %v2719_v52, %v2681_v48  ;;  %v2641_v41 = vadd.f32 %v2640_v1, %v2638_v36  ;;  %vm2562_vm11 = vcmp.ge.f32.partialorder %v5547_v61, 0.0  ;;  %vm2563_vm12 = vcmp.lt.f32.partialorder %v5547_v61, 0.4  ;;  %v4505_v1 = vld [vmem:[#allocation13 + $0x100] sm:$0xff]  }
 0x45e   :  { %v2646_v7 = vadd.f32 %v2645_v26, %v2643_v60  ;;  %v2729_v19 = vsub.f32 1.3333334, %v2727_v38  ;;  %vm2564_vm13 = vmand %vm2562_vm11, %vm2563_vm12  ;;  %v2667_v57 = vmul.f32 1.25, %v5547_v61  ;;  %v2712_v20 = vmul.f32 0.8333333, %v5547_v61  ;;  %v4508_v60 = vld [vmem:[#allocation13 + $0x1c8] sm:$0xff]  }
 0x45f   :  { %v2721_v43 = vadd.f32 %v2720_v3, %v2718_v34  ;;  %v2685_v29 = vmul.f32 %v2684_v16, %v2641_v41  ;;  %v2688_v11 = vmul.f32 %v2687_v40, %v2641_v41  ;;  %v3764_v17 = vsel %vm2564_vm13, 1.0, %v5712_v55 }
 0x460   :  { %v2690_v10 = vmul.f32 %v2689_v25, %v2646_v7  ;;  %v2618_v35 = vmul.f32 %v3764_v17, %v5570_v4  ;;  %v2669_v12 = vsub.f32 1.5, %v2667_v57  ;;  %v2714_v37 = vsub.f32 1.3333334, %v2712_v20 }
 0x461   :  { %v2753_v22 = vpack.c.bf16 %v2721_v43, %v2721_v43  ;;  %v2686_v63 = vadd.f32 %v2685_v29, %v2683_v59  ;;  %v2722_v54 = vmul.f32 0.8333333, %v5554_v0  ;;  %v5606_v51 = vadd.f32 -0.6, %v5544_v27 }
 0x462   :  { %v5608_v2 = vadd.f32 %v2690_v10, %v2688_v11  ;;  %v2621_v61 = vadd.f32 %v5579_v5, %v2618_v35  ;;  %v2670_v18 = vmul.f32 %v2669_v12, %v2626_v62  ;;  %v2715_v24 = vmul.f32 %v2714_v37, %v2676_v47  ;;  %v4509_v12 = vld [vmem:[#allocation13 + $0x108] sm:$0xff]  }
 0x463   :  { %3304 = vmatprep.mubr.bf16.mxu1 %v2753_v22  ;;  %v2728_v6 = vmul.f32 %v2727_v38, %v2686_v63  ;;  %v2723_v56 = vmul.f32 %v2722_v54, %v2681_v48  ;;  %v2724_v14 = vsub.f32 1.3333334, %v2722_v54  ;;  %v5612_v4 = vadd.f32 -1.0, %v5544_v27 }
 0x464   :  { %v2730_v8 = vmul.f32 %v2729_v19, %v5608_v2  ;;  %v2668_v23 = vmul.f32 %v2667_v57, %v2621_v61  ;;  %vm2597_vm14 = vcmp.ge.f32.partialorder %v5606_v51, 0.0  ;;  %vm2598_vm15 = vcmp.lt.f32.partialorder %v5606_v51, 0.4  ;;  %v4507_v19 = vld [vmem:[#allocation13 + $0x148] sm:$0xff]   ;;  %v4511_v61 = vld [vmem:[#allocation13 + $0x150] sm:$0xff]  }
 0x465   :  { %v2725_v0 = vmul.f32 %v2724_v14, %v2686_v63  ;;  %vm2599_vm0 = vmand %vm2597_vm14, %vm2598_vm15  ;;  %vm2602_vm2 = vcmp.ge.f32.partialorder %v5612_v4, 0.0  ;;  %vm2603_vm3 = vcmp.lt.f32.partialorder %v5612_v4, 0.4  ;;  %v2647_v5 = vmul.f32 2.5, %v5582_v53  ;;  %v4510_v57 = vld [vmem:[#allocation13 + $0x188] sm:$0xff]   ;;  %v4516_v14 = vld [vmem:[#allocation13 + $0x1d8] sm:$0xff]  }
 0x466   :  { %v2731_v46 = vadd.f32 %v2730_v8, %v2728_v6  ;;  %v2671_v62 = vadd.f32 %v2670_v18, %v2668_v23  ;;  %v3771_v21 = vsel %vm2599_vm0, 1.0, %v5712_v55  ;;  %vm2604_vm4 = vmand %vm2602_vm2, %vm2603_vm3  ;;  %v2652_v32 = vmul.f32 2.5, %v5606_v51  ;;  %v4514_v18 = vld [vmem:[#allocation13 + $0x190] sm:$0xff]  }
 0x467   :  { %v2726_v52 = vadd.f32 %v2725_v0, %v2723_v56  ;;  %v3772_v31 = vsel %vm2604_vm4, 1.0, %v5712_v55  ;;  %v2648_v28 = vmul.f32 %v5591_v9, %v2647_v5  ;;  %v2649_v58 = vsub.f32 2.0, %v2647_v5 }
 0x468   :  { %v2755_v13 = vpack.c.bf16 %v2731_v46, %v2731_v46  ;;  %v2713_v39 = vmul.f32 %v2712_v20, %v2671_v62  ;;  %v2653_v42 = vmul.f32 %v3771_v21, %v2652_v32  ;;  %v2654_v49 = vsub.f32 2.0, %v2652_v32  ;;  %v4513_v46 = vld [vmem:[#allocation13 + $0x110] sm:$0xff]  }
 0x469   :  { %v2754_v36 = vpack.c.bf16 %v2726_v52, %v2726_v52  ;;  %v2650_v45 = vmul.f32 %v3771_v21, %v2649_v58  ;;  %v2692_v30 = vmul.f32 1.25, %v5560_v44  ;;  %v2697_v47 = vmul.f32 1.25, %v5582_v53 }
 0x46a   :  { %3344 = vmatprep.mubr.bf16.mxu0 %v2755_v13  ;;  %v2716_v33 = vadd.f32 %v2715_v24, %v2713_v39  ;;  %v2655_v40 = vmul.f32 %v3772_v31, %v2654_v49  ;;  %v2737_v48 = vmul.f32 0.8333333, %v5560_v44  ;;  %v3762_v9 = vadd.f32 -1.4000001, %v5544_v27  ;;  %v4512_v44 = vld [vmem:[#allocation13 + $0x1d0] sm:$0xff]   ;;  %v4518_v39 = vld [vmem:[#allocation13 + $0x198] sm:$0xff]  }
 0x46b   :  { %3345 = vmatmul.mubr.bf16.vlgmr.msra.gmra.mrb[32].mxu0 %v2754_v36  ;;  %v2651_v59 = vadd.f32 %v2650_v45, %v2648_v28  ;;  %v2693_v16 = vmul.f32 %v2692_v30, %v2646_v7  ;;  %v2694_v34 = vsub.f32 1.5, %v2692_v30  ;;  %v2699_v26 = vsub.f32 1.5, %v2697_v47  ;;  %v4517_v45 = vld [vmem:[#allocation13 + $0x118] sm:$0xff]  }
 0x46c   :  { %v2752_v25 = vpack.c.bf16 %v2716_v33, %v2716_v33  ;;  %4205 = vmatpush3.bf16.msra.mxu0 %v4506_v50  ;;  %v2656_v38 = vadd.f32 %v2655_v40, %v2653_v42  ;;  %v2739_v3 = vsub.f32 1.3333334, %v2737_v48  ;;  %v3763_v41 = vadd.f32 -1.8, %v5544_v27  ;;  %v4522_v40 = vld [vmem:[#allocation13 + $0x1a0] sm:$0xff]  }
 0x46d   :  { %v2695_v20 = vmul.f32 %v2694_v34, %v2651_v59  ;;  %v2698_v43 = vmul.f32 %v2697_v47, %v2651_v59  ;;  %vm2607_vm5 = vcmp.ge.f32.partialorder %v3762_v9, 0.0  ;;  %vm2608_vm6 = vcmp.lt.f32.partialorder %v3762_v9, 0.4  ;;  %4206 = vmatprep.subr.bf16.mxu0 %v4508_v60  ;;  %v4519_v47 = vld [vmem:[#allocation13 + $0x160] sm:$0xff]   ;;  %v4523_v59 = vld [vmem:[#allocation13 + $0x168] sm:$0xff]  }
 0x46e   :  { %3305 = vmatmul.mubr.bf16.vlgmr.msra.gmra.mrb[28].mxu1 %v2752_v25  ;;  %v2700_v29 = vmul.f32 %v2699_v26, %v2656_v38  ;;  %vm2609_vm7 = vmand %vm2607_vm5, %vm2608_vm6  ;;  %vm2612_vm8 = vcmp.ge.f32.partialorder %v3763_v41, 0.0  ;;  %vm2613_vm9 = vcmp.lt.f32.partialorder %v3763_v41, 0.4  ;;  %v2657_v7 = vmul.f32 2.5, %v5612_v4  ;;  %v4526_v26 = vld [vmem:[#allocation13 + $0x1a8] sm:$0xff]   ;;  %v4528_v25 = vld [vmem:[#allocation13 + $0x1f0] sm:$0xff]  }
 0x46f   :  { %4183 = vmatpush3.bf16.msra.mxu1 %v4505_v1  ;;  %v5630_v11 = vadd.f32 %v2695_v20, %v2693_v16  ;;  %v3773_v17 = vsel %vm2609_vm7, 1.0, %v5712_v55  ;;  %vm2614_vm10 = vmand %vm2612_vm8, %vm2613_vm9  ;;  %v2662_v10 = vmul.f32 2.5, %v3762_v9  ;;  %v2702_v35 = vmul.f32 1.25, %v5606_v51  ;;  %v4521_v1 = vld [vmem:[#allocation13 + $0x120] sm:$0xff]   ;;  %v4525_v41 = vld [vmem:[#allocation13 + $0x128] sm:$0xff]  }
 0x470   :  { %v5634_v37 = vadd.f32 %v2700_v29, %v2698_v43  ;;  %v3774_v22 = vsel %vm2614_vm10, 1.0, %v5712_v55  ;;  %v2658_v63 = vmul.f32 %v3772_v31, %v2657_v7  ;;  %v2659_v54 = vsub.f32 2.0, %v2657_v7  ;;  %4184 = vmatprep.subr.bf16.mxu1 %v4507_v19  ;;  %4207 = vmatpush3.bf16.msra.mxu0 %v4510_v57  ;;  %v4515_v31 = vld [vmem:[#allocation13 + $0x158] sm:$0xff]   ;;  %v4527_v19 = vld [vmem:[#allocation13 + $0x170] sm:$0xff]  }
 0x471   :  { %v2738_v24 = vmul.f32 %v2737_v48, %v5630_v11  ;;  %v2663_v6 = vmul.f32 %v3773_v17, %v2662_v10  ;;  %v2664_v56 = vsub.f32 2.0, %v2662_v10  ;;  %4208 = vmatprep.subr.bf16.mxu0 %v4512_v44  ;;  %v2707_v0 = vmul.f32 1.25, %v5612_v4  ;;  %v4520_v4 = vld [vmem:[#allocation13 + $0x1e0] sm:$0xff]   ;;  %v4530_v20 = vld [vmem:[#allocation13 + $0x1b0] sm:$0xff]   ;;  %v4532_v43 = vld [vmem:[#allocation13 + $0x1f8] sm:$0xff]  }
 0x472   :  { %v2740_v8 = vmul.f32 %v2739_v3, %v5634_v37  ;;  %v2660_v23 = vmul.f32 %v3773_v17, %v2659_v54  ;;  %v2703_v32 = vmul.f32 %v2702_v35, %v2656_v38  ;;  %v2704_v52 = vsub.f32 1.5, %v2702_v35  ;;  %v4529_v7 = vld [vmem:[#allocation13 + $0x130] sm:$0xff]   ;;  %v4531_v17 = vld [vmem:[#allocation13 + $0x178] sm:$0xff]  }
 0x473   :  { %v2665_v5 = vmul.f32 %v3774_v22, %v2664_v56  ;;  %4185 = vmatpush3.bf16.msra.mxu1 %v4509_v12  ;;  %v2709_v58 = vsub.f32 1.5, %v2707_v0  ;;  %v2747_v13 = vmul.f32 0.8333333, %v5606_v51  ;;  %v4524_v51 = vld [vmem:[#allocation13 + $0x1e8] sm:$0xff]   ;;  %v2742_v16 = vmul.f32 0.8333333, %v5582_v53 }
 0x474   :  { %v2741_v62 = vadd.f32 %v2740_v8, %v2738_v24  ;;  %v2661_v21 = vadd.f32 %v2660_v23, %v2658_v63  ;;  %4186 = vmatprep.subr.bf16.mxu1 %v4511_v61  ;;  %4209 = vmatpush3.bf16.msra.mxu0 %v4514_v18  ;;  %v2732_v38 = vmul.f32 0.8333333, %v5557_v15  ;;  %v4534_v35 = vld [vmem:[#allocation13 + $0x1b8] sm:$0xff]   ;;  %v3752_v22 = vmul.f32 -1.442695, %v5544_v27  ;;  %v4535_v61 = vld [vmem:[#allocation11] sm:$0xff]  }
 0x475   :  { %v2666_v28 = vadd.f32 %v2665_v5, %v2663_v6  ;;  %4210 = vmatprep.subr.bf16.mxu0 %v4516_v14  ;;  %v2749_v33 = vsub.f32 1.3333334, %v2747_v13  ;;  %v2744_v57 = vsub.f32 1.3333334, %v2742_v16  ;;  %v2743_v53 = vmul.f32 %v2742_v16, %v5634_v37  ;;  %v4533_v63 = vld [vmem:[#allocation13 + $0x138] sm:$0xff]   ;;  %v4539_v14 = vld [vmem:[#allocation11 + $0x20] sm:$0xff]  }
 0x476   :  { %v2757_v50 = vpack.c.bf16 %v2741_v62, %v2741_v62  ;;  %v2705_v42 = vmul.f32 %v2704_v52, %v2661_v21  ;;  %v2708_v49 = vmul.f32 %v2707_v0, %v2661_v21  ;;  %v2734_v44 = vsub.f32 1.3333334, %v2732_v38  ;;  %v4538_v6 = vld [vmem:[#allocation11 + $0x18] sm:$0xff]   ;;  %v4540_v8 = vld [vmem:[#allocation11 + $0x28] sm:$0xff]   ;;  %v4541_v23 = vld [vmem:[#allocation11 + $0x30] sm:$0xff]  }
 0x477   :  { %v2710_v36 = vmul.f32 %v2709_v58, %v2666_v28  ;;  %4187 = vmatpush3.bf16.msra.mxu1 %v4513_v46  ;;  %v2733_v15 = vmul.f32 %v2732_v38, %v5608_v2  ;;  %4559 = vpow2.f32 %v3752_v22  ;;  %v4536_v2 = vld [vmem:[#allocation11 + $0x8] sm:$0xff]   ;;  %v4542_v5 = vld [vmem:[#allocation11 + $0x38] sm:$0xff]  }
 0x478   :  { %3384 = vmatprep.mubr.bf16.mxu1 %v2757_v50  ;;  %v2706_v30 = vadd.f32 %v2705_v42, %v2703_v32  ;;  %4188 = vmatprep.subr.bf16.mxu1 %v4515_v31  ;;  %v2735_v10 = vmul.f32 %v2734_v44, %v5630_v11  ;;  %v4537_v11 = vld [vmem:[#allocation11 + $0x10] sm:$0xff]  }
 0x479   :  { %v2711_v60 = vadd.f32 %v2710_v36, %v2708_v49  ;;  %4211 = vmatpush3.bf16.msra.mxu0 %v4518_v39 }
 0x47a   :  { %v2748_v48 = vmul.f32 %v2747_v13, %v2706_v30  ;;  %4212 = vmatprep.subr.bf16.mxu0 %v4520_v4  ;;  %v2745_v29 = vmul.f32 %v2744_v57, %v2706_v30  ;;  %v2736_v54 = vadd.f32 %v2735_v10, %v2733_v15 }
 0x47b   :  { %v2750_v9 = vmul.f32 %v2749_v33, %v2711_v60  ;;  %4189 = vmatpush3.bf16.msra.mxu1 %v4517_v45 }
 0x47c   :  { %4190 = vmatprep.subr.bf16.mxu1 %v4519_v47  ;;  %v2746_v12 = vadd.f32 %v2745_v29, %v2743_v53  ;;  %v2756_v18 = vpack.c.bf16 %v2736_v54, %v2736_v54 }
 0x47d   :  { %v2751_v34 = vadd.f32 %v2750_v9, %v2748_v48  ;;  %4213 = vmatpush3.bf16.msra.mxu0 %v4522_v40 }
 0x47e   :  { %4214 = vmatprep.subr.bf16.mxu0 %v4524_v51  ;;  %v2758_v37 = vpack.c.bf16 %v2746_v12, %v2746_v12 }
 0x47f   :  { %v2759_v3 = vpack.c.bf16 %v2751_v34, %v2751_v34  ;;  %4191 = vmatpush3.bf16.msra.mxu1 %v4521_v1 }
 0x480   :  { %4192 = vmatprep.subr.bf16.mxu1 %v4523_v59 }
 0x481   :  { %3424 = vmatprep.mubr.bf16.mxu0 %v2759_v3  ;;  %4215 = vmatpush3.bf16.msra.mxu0 %v4526_v26  ;;  %v4560_v24 = vpop.eup %4559 }
 0x482   :  { %4216 = vmatprep.subr.bf16.mxu0 %v4528_v25  ;;  %v2530_v56 = vadd.f32 1.0, %v4560_v24 }
 0x483   :  { %4193 = vmatpush3.bf16.msra.mxu1 %v4525_v41 }
 0x484   :  { %4194 = vmatprep.subr.bf16.mxu1 %v4527_v19  ;;  %4561 = vrcp.f32 %v2530_v56 }
 0x485   :  { %4217 = vmatpush3.bf16.msra.mxu0 %v4530_v20 }
 0x486   :  { %4218 = vmatprep.subr.bf16.mxu0 %v4532_v43 }
 0x487   :  { %4195 = vmatpush3.bf16.msra.mxu1 %v4529_v7 }
 0x488   :  { %4196 = vmatprep.subr.bf16.mxu1 %v4531_v17 }
 0x489   :  { %4219 = vmatpush3.bf16.msra.mxu0 %v4534_v35 }
 0x48b   :  { %4197 = vmatpush3.bf16.msra.mxu1 %v4533_v63 }
 0x48c   :  { %3425 = vmatmul.mubr.bf16.vlgmr.msra.gmra.mrb[36].mxu0 %v2758_v37  ;;  %4295 = vmatprep.subr.bf16.mxu1 %v5712_v55 }
 0x48e   :  { %3385 = vmatmul.mubr.bf16.vlgmr.msra.gmra.mrb[32].mxu1 %v2756_v18  ;;  %v4562_v0 = vpop.eup %4561 }
 0x48f   :  { %4296 = vmatpush3.bf16.msra.mxu1 %v4535_v61  ;;  %4311 = vmatprep.mubr.msk.bf16.mxu1 %vm4759_vm1, %v5712_v55  ;;  %v2533_v46 = vmul.f32 %v4562_v0, %v5544_v27 }
 0x490   :  { %4297 = vmatprep.subr.bf16.mxu1 %v5712_v55 }
 0x491   :  { %v2534_v62 = vpack.c.bf16 %v2533_v46, %v2533_v46 }
 0x493   :  { %4298 = vmatpush3.bf16.msra.mxu1 %v4536_v2 }
 0x494   :  { %4299 = vmatprep.subr.bf16.mxu1 %v5712_v55 }
 0x497   :  { %4300 = vmatpush3.bf16.msra.mxu1 %v4537_v11 }
 0x498   :  { %4301 = vmatprep.subr.bf16.mxu1 %v5712_v55 }
 0x49b   :  { %4302 = vmatpush3.bf16.msra.mxu1 %v4538_v6 }
 0x49c   :  { %4303 = vmatprep.subr.bf16.mxu1 %v5712_v55 }
 0x49f   :  { %4304 = vmatpush3.bf16.msra.mxu1 %v4539_v14 }
 0x4a0   :  { %4305 = vmatprep.subr.bf16.mxu1 %v5712_v55 }
 0x4a3   :  { %4306 = vmatpush3.bf16.msra.mxu1 %v4540_v8 }
 0x4a4   :  { %4307 = vmatprep.subr.bf16.mxu1 %v5712_v55 }
 0x4a7   :  { %4308 = vmatpush3.bf16.msra.mxu1 %v4541_v23 }
 0x4a8   :  { %4309 = vmatprep.subr.bf16.mxu1 %v5712_v55 }
 0x4ab   :  { %4310 = vmatpush3.bf16.msra.mxu1 %v4542_v5 }
 0x4ae   :  { %4312 = vmatmul.mubr.bf16.vlgmr.msra.gmra.mrb[36].mxu1 %v2534_v62 }
 0x53e   :  { %v4176_v21 = vpop.f32.mrb[32].mxu0 }
 0x53f   :  { %v4177_v32 = vpop.f32.mrb[33].mxu0 }
 0x540   :  { %v4178_v52 = vadd.f32 %v4177_v32, %v4176_v21  ;;  %v4179_v31 = vpop.f32.mrb[34].mxu0 }
 0x541   :  { %v4154_v28 = vpop.f32.mrb[28].mxu1  ;;  %v4180_v58 = vpop.f32.mrb[35].mxu0 }
 0x542   :  { %v4155_v13 = vpop.f32.mrb[29].mxu1 }
 0x543   :  { %v4156_v39 = vadd.f32 %v4155_v13, %v4154_v28  ;;  %v4157_v50 = vpop.f32.mrb[30].mxu1 }
 0x544   :  { %v4158_v42 = vpop.f32.mrb[31].mxu1 }
 0x545   :  { %v3347_v49 = vadd.f32 %v4178_v52, %v4156_v39 }
 0x55f   :  { %v4220_v4 = vpop.f32.mrb[36].mxu0 }
 0x560   :  { %v4221_v36 = vpop.f32.mrb[37].mxu0 }
 0x561   :  { %v4198_v45 = vpop.f32.mrb[32].mxu1  ;;  %v4222_v55 = vadd.f32 %v4221_v36, %v4220_v4  ;;  %v4223_v30 = vpop.f32.mrb[38].mxu0 }
 0x562   :  { %v4199_v27 = vpop.f32.mrb[33].mxu1  ;;  %v4224_v47 = vpop.f32.mrb[39].mxu0 }
 0x563   :  { %v4200_v60 = vadd.f32 %v4199_v27, %v4198_v45  ;;  %v4201_v33 = vpop.f32.mrb[34].mxu1 }
 0x564   :  { %v4202_v40 = vpop.f32.mrb[35].mxu1 }
 0x565   :  { %v3387_v48 = vadd.f32 %v4200_v60, %v3347_v49 }
 0x567   :  { %v3427_v51 = vadd.f32 %v4222_v55, %v3387_v48 }
 0x581   :  { %v3514_v9 = vpop.f32.mrb[36].mxu1 }
 0x582   :  { %v3515_v1 = vadd.f32 %v3514_v9, %v3427_v51  ;;  %v4313_v59 = vpop.f32.mrb[37].mxu1 }
 0x583   :  { %v3517_v16 = vpop.f32.mrb[38].mxu1 }
 0x584   :  { %3520 = vst [vmem:[#allocation14] sm:$0xff] %v3515_v1  ;;  %v4314_v34 = vpop.f32.mrb[39].mxu1 }
 0x585   :  { %4728 = shalt.err (!%p4725_p4)
}
 0x586   :  { %s4729_s3 = scalar_lea.hbm %s5677_s7, 128 }
 0x587   :  { %p4730_p5 = scmp.ne.s32.totalorder %s5677_s7, %s4729_s3  ;;  %p4733_p6 = scmp.lt.u32.totalorder %s4729_s3, %s5677_s7 }
 0x589   :  { %p4735_p7 = pnand %p4733_p6, %p4730_p5 }
 0x58b   :  { %4738 = shalt.err (!%p4735_p7)
}
 0x58c   :  { %3530 = dma.vmem_to_hbm [thread:$0]  %s3528_s11, 128, %s5677_s7, [#allocation4]  }
 0x58d   :  { %4747 = dma.done.wait [#allocation4], 128  }
 0x58e   :  { %4748 = vsyncadd [#allocation4], 4294967168 }
 0x58f   :  { %3534 = vsyncpa [#allocation3], 1 }
 0x590   :  { %3535 = vsyncpa [#allocation6], 1 }
 0x591   :  { %3536 = vsyncpa [#allocation9], 1 }
 0x592   :  { %3537 = vsyncpa [#allocation12], 1 }
 0x593   :  { %3538 = vsyncpa [#allocation4], 1 }

</bundles_post_ra>
